<compile_context>
chip_gen: v7x
topology: tpu7x:2x2x1
jax: 0.10.0
libtpu: 0.0.40
codegen_flags: <defaults>
</compile_context>

<pallas_src>
import functools

import numpy as np
import jax
import jax.numpy as jnp
from jax.experimental import pallas as pl
from jax.experimental.pallas import tpu as pltpu


# ----------------------------------------------------------------------------------
# Parameter-setup-time helpers (hoisted out of the forward pass).
# ----------------------------------------------------------------------------------
@functools.lru_cache(maxsize=None)
def _adaptive_avgpool_matrix(H, W, out_h=7, out_w=7):
    """Pooling matrix P (H*W, out_h*out_w) so pooled = x_flat @ P, matching
    torch.nn.AdaptiveAvgPool2d bins: start=floor(i*H/out), end=ceil((i+1)*H/out)."""
    P = np.zeros((H * W, out_h * out_w), dtype=np.float64)
    for i in range(out_h):
        h0 = (i * H) // out_h
        h1 = -((-(i + 1) * H) // out_h)  # ceil
        for j in range(out_w):
            w0 = (j * W) // out_w
            w1 = -((-(j + 1) * W) // out_w)
            inv = 1.0 / float((h1 - h0) * (w1 - w0))
            for h in range(h0, h1):
                for w in range(w0, w1):
                    P[h * W + w, i * out_w + j] = inv
    return P


def fold_pool_into_classifier_weight(weight_flat, C, H, W):
    """Fold AdaptiveAvgPool2d((7,7)) into the Linear(512*7*7, 1, bias=False) weight.

    Returns weff of shape (1, C*H*W) so that
        logits[b] = sum_{c,hw} x[b, c, hw] * weff[0, c*HW + hw]
    equals Linear(flatten(avgpool(x))).  Done once per parameter set, not per call.
    """
    HW = H * W
    P = _adaptive_avgpool_matrix(H, W)                                   # (HW, 49) f64
    w2 = jnp.asarray(weight_flat, jnp.float32).reshape(C, 49)            # (C, 49)
    weff = jnp.dot(w2, jnp.asarray(P.T, dtype=jnp.float32),
                   precision=jax.lax.Precision.HIGHEST)                  # (C, HW)
    return weff.reshape(1, C * HW)


def _tile_config():
    """Per-generation (batch-tile cap, vmem_limit_bytes)."""
    try:
        vmem_bytes = int(pltpu.get_tpu_info().vmem_capacity_bytes)
    except Exception:
        vmem_bytes = None
    if vmem_bytes is not None and vmem_bytes > (96 << 20):
        return 32, 64 << 20          # v5e / v6e class: 128 MiB physical VMEM
    if vmem_bytes is not None:
        return 16, 40 << 20          # v7x class: 64 MiB physical VMEM per TC
    return 16, 48 << 20              # unknown: conservative, safe everywhere


# ----------------------------------------------------------------------------------
# Pallas kernel.
# ----------------------------------------------------------------------------------
def _dot_kernel(x_ref, w_ref, o_ref):
    # x_ref: (b_blk, f_blk) f32, lane-dense (f_blk % 128 == 0)
    # w_ref: (1, f_blk)     f32, pool-folded classifier weight (resident, const index)
    # o_ref: (1, b_blk, 1)  f32  partial dot for this (batch block, F block)
    b_blk, f_blk = x_ref.shape

    # Reduce F in 8 static sub-chunks so the elementwise x*w product only ever
    # materializes ~1/8 of the block in VMEM (never a full (b_blk, f_blk) temp).
    n_sub = 8
    sub = (f_blk // n_sub) // 128 * 128
    if sub == 0:
        bounds = [0, f_blk]
    else:
        bounds = [k * sub for k in range(n_sub)] + [f_blk]

    total = jnp.zeros((b_blk, 1), dtype=jnp.float32)
    for lo, hi in zip(bounds[:-1], bounds[1:]):
        if hi <= lo:
            continue
        xc = x_ref[:, lo:hi]                        # (b_blk, chunk)
        wc = w_ref[:, lo:hi]                        # (1, chunk) -> broadcast
        total = total + jnp.sum(xc * wc, axis=-1, keepdims=True)

    o_ref[...] = total[None]                        # (1, b_blk, 1)


# ----------------------------------------------------------------------------------
# Forward wrapper.
# ----------------------------------------------------------------------------------
def net_tail_forward(x_nchw, weff, linear_1_bias):
    """x_nchw: (B, 512, H, W) f32;  weff: (1, 512*H*W) pool-folded classifier weight;
       linear_1_bias: (num_classes-1,) f32.  Returns (logits, probas), each
       (B, num_classes-1)."""
    B, C, H, W = x_nchw.shape
    F = C * H * W
    assert weff.shape == (1, F), "weff must be the pool-folded weight of shape (1, C*H*W)"
    assert F % 128 == 0, "flattened feature axis must be lane-aligned (C=512 guarantees it)"

    x_flat = x_nchw.astype(jnp.float32).reshape(B, F)

    b_cap, vmem_limit = _tile_config()
    row_bytes = F * 4
    # Keep 2 double-buffered x blocks well inside the scoped VMEM limit.
    rows_fit = max(8, int((vmem_limit // 2) // (2 * row_bytes)) // 8 * 8)
    b_cap = max(8, min(b_cap, rows_fit))

    if B > b_cap:
        # Large batch: cdiv tiling over the batch axis (zero-pad the ragged tail).
        b_block = b_cap
        num_b = pl.cdiv(B, b_block)
        B_pad = num_b * b_block
        if B_pad != B:
            x_flat = jnp.pad(x_flat, ((0, B_pad - B), (0, 0)))
        num_f = 1
    else:
        # Small batch (single batch block): split F into two lane-aligned halves on a
        # second "parallel" axis -> v7x runs one half per TensorCore, and the BlockSpec
        # pipeline has >= 2 steps to overlap DMA with compute.
        b_block = B
        num_b = 1
        B_pad = B
        num_f = 2 if (F % 256 == 0) else 1
    f_blk = F // num_f

    partials = pl.pallas_call(
        _dot_kernel,
        out_shape=jax.ShapeDtypeStruct((num_f, B_pad, 1), jnp.float32),
        grid_spec=pltpu.PrefetchScalarGridSpec(
            num_scalar_prefetch=0,
            grid=(num_b, num_f),
            in_specs=[
                pl.BlockSpec((b_block, f_blk), lambda i, j: (i, j)),   # x batch/F block
                pl.BlockSpec((1, f_blk), lambda i, j: (0, j)),         # weight: constant
                                                                       # index along i ->
                                                                       # not re-DMA'd per
                                                                       # batch step
            ],
            out_specs=pl.BlockSpec((1, b_block, 1), lambda i, j: (j, i, 0)),
        ),
        compiler_params=pltpu.CompilerParams(
            dimension_semantics=("parallel", "parallel"),
            vmem_limit_bytes=vmem_limit,
        ),
        cost_estimate=pl.CostEstimate(
            flops=2 * B_pad * F,
            transcendentals=0,
            bytes_accessed=(B_pad * F + num_b * F + B_pad * num_f) * 4,
        ),
    )(x_flat, weff)

    # Tiny epilogue: sum the F-split partials, add bias, sigmoid.  Under jit this is a
    # single fused XLA op on a (B, num_fcs) array.
    dot = jnp.sum(partials, axis=0)[:B, 0]                              # (B,)
    num_fcs = linear_1_bias.shape[0]
    logits = dot[:, None] + linear_1_bias.reshape(1, num_fcs).astype(jnp.float32)
    probas = jax.nn.sigmoid(logits)
    return logits, probas


if __name__ == "__main__":
    key = jax.random.PRNGKey(0)
    kx, kw, kb = jax.random.split(key, 3)

    num_classes = 5                      # -> num_fcs = 4 (CORAL binary tasks)
    B, C, H, W = 2, 512, 14, 14          # VGG feature map: 512 channels -> 512*7*7 head

    x = jax.random.normal(kx, (B, C, H, W), dtype=jnp.float32)
    # new_linear: nn.Linear(512*7*7, 1, bias=False), weight ~ Normal(0, 0.01)
    weight = 0.01 * jax.random.normal(kw, (C * 7 * 7,), dtype=jnp.float32)
    # linear_1_bias: trainable Parameter (init zeros); small random values to exercise
    # the broadcast-add path.
    bias = 0.1 * jax.random.normal(kb, (num_classes - 1,), dtype=jnp.float32)

    # Fold the avgpool into the classifier weight ONCE (parameter-setup time).
    weff = fold_pool_into_classifier_weight(weight, C, H, W)

    forward = jax.jit(net_tail_forward)
    logits, probas = forward(x, weff, bias)
    jax.block_until_ready((logits, probas))

    # Pure-numpy float64 reference using the ORIGINAL (pool -> flatten -> linear) order.
    P_np = _adaptive_avgpool_matrix(H, W)                               # (HW, 49) f64
    x_np = np.asarray(x, dtype=np.float64).reshape(B, C, H * W)
    pooled_ref = np.einsum("bcs,sp->bcp", x_np, P_np)                   # (B, C, 49)
    flat_ref = pooled_ref.reshape(B, C * 49)
    ref_logits = flat_ref @ np.asarray(weight, dtype=np.float64).reshape(C * 49, 1)
    ref_logits = ref_logits + np.asarray(bias, dtype=np.float64)[None, :]
    ref_probas = 1.0 / (1.0 + np.exp(-ref_logits))

    assert np.allclose(np.asarray(logits), ref_logits, atol=2e-3, rtol=1e-3), "logits mismatch"
    assert np.allclose(np.asarray(probas), ref_probas, atol=2e-3, rtol=1e-3), "probas mismatch"
    print("KERNEL_OK")
</pallas_src>

<mosaic_0001>
module attributes {stable_mosaic.version = 11 : i64} {
  func.func @_dot_kernel(%arg0: i32, %arg1: i32, %arg2: memref<2x50176xf32, #tpu.memory_space<vmem>>, %arg3: memref<1x50176xf32, #tpu.memory_space<vmem>>, %arg4: memref<1x2x1xf32, #tpu.memory_space<vmem>>) attributes {dimension_semantics = [#tpu.dimension_semantics<parallel>, #tpu.dimension_semantics<parallel>], iteration_bounds = array<i64: 1, 2>, scalar_prefetch = 0 : i64, scratch_operands = 0 : i64, tpu.core_type = #tpu.core_type<tc>, window_params = [{transform_indices = @transform_0, window_bounds = array<i64: 2, 50176>}, {transform_indices = @transform_1, window_bounds = array<i64: 1, 50176>}, {transform_indices = @transform_2, window_bounds = array<i64: 1, 2, 1>}]} {
    %cst = arith.constant 0.000000e+00 : f32
    %0 = vector.broadcast %cst : f32 to vector<2x1xf32>
    %c0 = arith.constant 0 : index
    %c0_0 = arith.constant 0 : index
    %1 = vector.load %arg2[%c0, %c0_0] : memref<2x50176xf32, #tpu.memory_space<vmem>>, vector<2x6272xf32>
    %c0_1 = arith.constant 0 : index
    %c0_2 = arith.constant 0 : index
    %2 = vector.load %arg3[%c0_1, %c0_2] : memref<1x50176xf32, #tpu.memory_space<vmem>>, vector<1x6272xf32>
    %3 = vector.broadcast %2 : vector<1x6272xf32> to vector<2x6272xf32>
    %4 = arith.mulf %1, %3 : vector<2x6272xf32>
    %cst_3 = arith.constant dense<0.000000e+00> : vector<2xf32>
    %5 = vector.multi_reduction <add>, %4, %cst_3 [1] : vector<2x6272xf32> to vector<2xf32>
    %6 = vector.shape_cast %5 : vector<2xf32> to vector<2x1xf32>
    %7 = arith.addf %0, %6 : vector<2x1xf32>
    %c0_4 = arith.constant 0 : index
    %c6272 = arith.constant 6272 : index
    %8 = vector.load %arg2[%c0_4, %c6272] : memref<2x50176xf32, #tpu.memory_space<vmem>>, vector<2x6272xf32>
    %c0_5 = arith.constant 0 : index
    %c6272_6 = arith.constant 6272 : index
    %9 = vector.load %arg3[%c0_5, %c6272_6] : memref<1x50176xf32, #tpu.memory_space<vmem>>, vector<1x6272xf32>
    %10 = vector.broadcast %9 : vector<1x6272xf32> to vector<2x6272xf32>
    %11 = arith.mulf %8, %10 : vector<2x6272xf32>
    %cst_7 = arith.constant dense<0.000000e+00> : vector<2xf32>
    %12 = vector.multi_reduction <add>, %11, %cst_7 [1] : vector<2x6272xf32> to vector<2xf32>
    %13 = vector.shape_cast %12 : vector<2xf32> to vector<2x1xf32>
    %14 = arith.addf %7, %13 : vector<2x1xf32>
    %c0_8 = arith.constant 0 : index
    %c12544 = arith.constant 12544 : index
    %15 = vector.load %arg2[%c0_8, %c12544] : memref<2x50176xf32, #tpu.memory_space<vmem>>, vector<2x6272xf32>
    %c0_9 = arith.constant 0 : index
    %c12544_10 = arith.constant 12544 : index
    %16 = vector.load %arg3[%c0_9, %c12544_10] : memref<1x50176xf32, #tpu.memory_space<vmem>>, vector<1x6272xf32>
    %17 = vector.broadcast %16 : vector<1x6272xf32> to vector<2x6272xf32>
    %18 = arith.mulf %15, %17 : vector<2x6272xf32>
    %cst_11 = arith.constant dense<0.000000e+00> : vector<2xf32>
    %19 = vector.multi_reduction <add>, %18, %cst_11 [1] : vector<2x6272xf32> to vector<2xf32>
    %20 = vector.shape_cast %19 : vector<2xf32> to vector<2x1xf32>
    %21 = arith.addf %14, %20 : vector<2x1xf32>
    %c0_12 = arith.constant 0 : index
    %c18816 = arith.constant 18816 : index
    %22 = vector.load %arg2[%c0_12, %c18816] : memref<2x50176xf32, #tpu.memory_space<vmem>>, vector<2x6272xf32>
    %c0_13 = arith.constant 0 : index
    %c18816_14 = arith.constant 18816 : index
    %23 = vector.load %arg3[%c0_13, %c18816_14] : memref<1x50176xf32, #tpu.memory_space<vmem>>, vector<1x6272xf32>
    %24 = vector.broadcast %23 : vector<1x6272xf32> to vector<2x6272xf32>
    %25 = arith.mulf %22, %24 : vector<2x6272xf32>
    %cst_15 = arith.constant dense<0.000000e+00> : vector<2xf32>
    %26 = vector.multi_reduction <add>, %25, %cst_15 [1] : vector<2x6272xf32> to vector<2xf32>
    %27 = vector.shape_cast %26 : vector<2xf32> to vector<2x1xf32>
    %28 = arith.addf %21, %27 : vector<2x1xf32>
    %c0_16 = arith.constant 0 : index
    %c25088 = arith.constant 25088 : index
    %29 = vector.load %arg2[%c0_16, %c25088] : memref<2x50176xf32, #tpu.memory_space<vmem>>, vector<2x6272xf32>
    %c0_17 = arith.constant 0 : index
    %c25088_18 = arith.constant 25088 : index
    %30 = vector.load %arg3[%c0_17, %c25088_18] : memref<1x50176xf32, #tpu.memory_space<vmem>>, vector<1x6272xf32>
    %31 = vector.broadcast %30 : vector<1x6272xf32> to vector<2x6272xf32>
    %32 = arith.mulf %29, %31 : vector<2x6272xf32>
    %cst_19 = arith.constant dense<0.000000e+00> : vector<2xf32>
    %33 = vector.multi_reduction <add>, %32, %cst_19 [1] : vector<2x6272xf32> to vector<2xf32>
    %34 = vector.shape_cast %33 : vector<2xf32> to vector<2x1xf32>
    %35 = arith.addf %28, %34 : vector<2x1xf32>
    %c0_20 = arith.constant 0 : index
    %c31360 = arith.constant 31360 : index
    %36 = vector.load %arg2[%c0_20, %c31360] : memref<2x50176xf32, #tpu.memory_space<vmem>>, vector<2x6272xf32>
    %c0_21 = arith.constant 0 : index
    %c31360_22 = arith.constant 31360 : index
    %37 = vector.load %arg3[%c0_21, %c31360_22] : memref<1x50176xf32, #tpu.memory_space<vmem>>, vector<1x6272xf32>
    %38 = vector.broadcast %37 : vector<1x6272xf32> to vector<2x6272xf32>
    %39 = arith.mulf %36, %38 : vector<2x6272xf32>
    %cst_23 = arith.constant dense<0.000000e+00> : vector<2xf32>
    %40 = vector.multi_reduction <add>, %39, %cst_23 [1] : vector<2x6272xf32> to vector<2xf32>
    %41 = vector.shape_cast %40 : vector<2xf32> to vector<2x1xf32>
    %42 = arith.addf %35, %41 : vector<2x1xf32>
    %c0_24 = arith.constant 0 : index
    %c37632 = arith.constant 37632 : index
    %43 = vector.load %arg2[%c0_24, %c37632] : memref<2x50176xf32, #tpu.memory_space<vmem>>, vector<2x6272xf32>
    %c0_25 = arith.constant 0 : index
    %c37632_26 = arith.constant 37632 : index
    %44 = vector.load %arg3[%c0_25, %c37632_26] : memref<1x50176xf32, #tpu.memory_space<vmem>>, vector<1x6272xf32>
    %45 = vector.broadcast %44 : vector<1x6272xf32> to vector<2x6272xf32>
    %46 = arith.mulf %43, %45 : vector<2x6272xf32>
    %cst_27 = arith.constant dense<0.000000e+00> : vector<2xf32>
    %47 = vector.multi_reduction <add>, %46, %cst_27 [1] : vector<2x6272xf32> to vector<2xf32>
    %48 = vector.shape_cast %47 : vector<2xf32> to vector<2x1xf32>
    %49 = arith.addf %42, %48 : vector<2x1xf32>
    %c0_28 = arith.constant 0 : index
    %c43904 = arith.constant 43904 : index
    %50 = vector.load %arg2[%c0_28, %c43904] : memref<2x50176xf32, #tpu.memory_space<vmem>>, vector<2x6272xf32>
    %c0_29 = arith.constant 0 : index
    %c43904_30 = arith.constant 43904 : index
    %51 = vector.load %arg3[%c0_29, %c43904_30] : memref<1x50176xf32, #tpu.memory_space<vmem>>, vector<1x6272xf32>
    %52 = vector.broadcast %51 : vector<1x6272xf32> to vector<2x6272xf32>
    %53 = arith.mulf %50, %52 : vector<2x6272xf32>
    %cst_31 = arith.constant dense<0.000000e+00> : vector<2xf32>
    %54 = vector.multi_reduction <add>, %53, %cst_31 [1] : vector<2x6272xf32> to vector<2xf32>
    %55 = vector.shape_cast %54 : vector<2xf32> to vector<2x1xf32>
    %56 = arith.addf %49, %55 : vector<2x1xf32>
    %57 = vector.shape_cast %56 : vector<2x1xf32> to vector<1x2x1xf32>
    %c0_32 = arith.constant 0 : index
    %c0_33 = arith.constant 0 : index
    %c0_34 = arith.constant 0 : index
    %58 = vector.load %arg4[%c0_32, %c0_33, %c0_34] : memref<1x2x1xf32, #tpu.memory_space<vmem>>, vector<1x2x1xf32>
    tpu.vector_store %arg4[%c0_32, %c0_33, %c0_34], %57 {strides = array<i32>} : memref<1x2x1xf32, #tpu.memory_space<vmem>>, vector<1x2x1xf32>,
    return
  }
  func.func @transform_0(%arg0: i32, %arg1: i32) -> (i32, i32) {
    %c0_i32 = arith.constant 0 : i32
    return %arg0, %arg1 : i32, i32
  }
  func.func @transform_1(%arg0: i32, %arg1: i32) -> (i32, i32) {
    %c0_i32 = arith.constant 0 : i32
    %c0_i32_0 = arith.constant 0 : i32
    return %c0_i32, %arg1 : i32, i32
  }
  func.func @transform_2(%arg0: i32, %arg1: i32) -> (i32, i32, i32) {
    %c0_i32 = arith.constant 0 : i32
    %c0_i32_0 = arith.constant 0 : i32
    return %arg1, %arg0, %c0_i32 : i32, i32, i32
  }
}

</mosaic_0001>

<bundles_post_ra>
// kernel: net_tail_forward.1
= control target key start
LH: loop header
LB: loop body
LE: loop exit
PB: predicated region body
PF: predicated region fallthrough
CT: control target
= control target key end

     0   :  { %s7032_s9 = smov 0   ;;  %s7034_s10 = smov 0   ;;  %s9212_s0 = inlined_call_operand.vmem [shape: f32[2,100352], index: 0, kind: input, shape index: {}]   ;;  %s9213_s1 = inlined_call_operand.vmem [shape: f32[1,100352], index: 1, kind: input, shape index: {}]   ;;  %s9214_s2 = inlined_call_operand.vmem [shape: f32[2,2,1], index: 2, kind: output, shape index: {}]  }
   0x1   :  { %s7036_s11 = smov 0  }
   0x2 LB: > { %s21_s12 = sadd.s32 1, %s7010_s10  ;;  %p6954_p0 = scmp.ge.s32.totalorder %s7014_s11, 1  ;;  %s7014_s11 = sphi %s7036_s11, %s12_s11   ;;  %s7010_s10 = sphi %s7034_s10, %s9220_s10   ;;  %s7006_s9 = sphi %s7032_s9, %s9219_s9  }
   0x3   : > { %p22_p1 = scmp.ge.s32.totalorder %s21_s12, 2  ;;  %p143_p2 = scmp.lt.s32.totalorder %s7014_s11, 3 }
   0x5   : > { %s9222_s12 = smov (%p22_p1, %s21_s12), 0  ;;  %p144_p3 = pnand %p6954_p0, %p143_p2 }
   0x6   : > { %s175_s13 = smul.u32 (!%p144_p3), 392, %s7006_s9  ;;  %v224_v0 = vlaneseq (!%p144_p3)  ;;  %v7016_v2 = vmov (!%p144_p3), 1983009808   ;;  %vm930_vm0 = vcmask (!%p144_p3), 1041408   ;;  %p190_p5 = scmp.lt.s32.totalorder (!%p144_p3), %s7006_s9, 1  ;;  %vm6862_vm1 = vcmask (!%p144_p3), 1024  }
   0x7   : > { %147 = sbr.rel (%p144_p3) target bundleno = 754 (0x2f2), region = 28  ;;  %v423_v3 = vunpack.c.l.s4 (!%p144_p3), %v7016_v2 }
   0x8   : > { %p178_p4 = scmp.lt.s32.totalorder (!%p144_p3), %s175_s13, 783  ;;  %v225_v1 = vshrl.u32 (!%p144_p3), %v224_v0, 7 }
   0x9   : > { %v424_v9 = vunpack.c.0.s8 (!%p144_p3), %v423_v3 }
   0xa   : > { %v7061_v4 = vsub.s32 (!%p144_p3), 0, %v225_v1  ;;  %v7063_v5 = vsub.s32 (!%p144_p3), 1, %v225_v1  ;;  %v7065_v6 = vsub.s32 (!%p144_p3), 2, %v225_v1  ;;  %v7067_v7 = vsub.s32 (!%p144_p3), 3, %v225_v1 }
   0xb   : > { %v7074_v14 = vsub.s32 (!%p144_p3), 4, %v225_v1  ;;  %v7076_v15 = vsub.s32 (!%p144_p3), 5, %v225_v1  ;;  %v7078_v16 = vsub.s32 (!%p144_p3), 6, %v225_v1  ;;  %v7080_v17 = vsub.s32 (!%p144_p3), 7, %v225_v1 }
   0xc   : > { %v7082_v20 = vsub.s32 (!%p144_p3), %v424_v9, %v225_v1 }
   0xe   : > { %s9224_s13 = smov (!%p178_p4, %s175_s13), 783  ;;  %s9226_s9 = smov (!%p190_p5, %s7006_s9), 1 }
   0xf   : > { %s7059_s16 = scalar_lea.vmem %s9213_s1, %s9224_s13  ;;  %s6955_s17 = sshll.u32 %s9224_s13, 1 }
  0x10   : > { %v210_v8 = vld [vmem:[%s7059_s16] sm:$0xff]  ;;  %s7094_s20 = scalar_lea.vmem %s9212_s0, %s6955_s17  ;;  %v211_v27 = vld [vmem:[%s7059_s16 + $0x8] sm:$0xff]  ;;  %v7105_v39 = vld [vmem:[%s7059_s16 + $0x10] sm:$0xff]  ;;  %s6956_s21 = sshll.u32 %s9226_s9, 1 }
  0x11   : > { %v227_v10 = vrot.slane %v210_v8, %v7061_v4  ;;  %v231_v11 = vrot.slane %v210_v8, %v7063_v5  ;;  %v235_v12 = vrot.slane %v210_v8, %v7065_v6  ;;  %v239_v13 = vrot.slane %v210_v8, %v7067_v7  ;;  %v197_v31 = vld [vmem:[%s7094_s20] sm:$0xff]  ;;  %v198_v44 = vld [vmem:[%s7094_s20 + $0x8] sm:$0xff]  ;;  %v7114_v50 = vld [vmem:[%s7059_s16 + $0x18] sm:$0xff]  ;;  %s196_s24 = scalar_lea.vmem %s9214_s2, %s6956_s21 }
  0x12   : > { %v243_v21 = vrot.slane %v210_v8, %v7074_v14  ;;  %v247_v22 = vrot.slane %v210_v8, %v7076_v15  ;;  %v251_v23 = vrot.slane %v210_v8, %v7078_v16  ;;  %v255_v24 = vrot.slane %v210_v8, %v7080_v17  ;;  %v7136_v63 = vld [vmem:[%s7059_s16 + $0x20] sm:$0xff] }
  0x13   : > { %v420_v18 = vcombine.low %v227_v10, %v231_v11  ;;  %v421_v19 = vcombine.low %v235_v12, %v239_v13  ;;  %v259_v32 = vrot.slane %v211_v27, %v7061_v4  ;;  %v263_v33 = vrot.slane %v211_v27, %v7063_v5 }
  0x14   : > { %v437_v28 = vcombine.low %v243_v21, %v247_v22  ;;  %v438_v29 = vcombine.low %v251_v23, %v255_v24  ;;  %v267_v34 = vrot.slane %v211_v27, %v7065_v6  ;;  %v271_v35 = vrot.slane %v211_v27, %v7067_v7  ;;  %v199_v21 = vld [vmem:[%s7094_s20 + $0x10] sm:$0xff] }
  0x15   : > { %v428_v25 = vrot.slane %v420_v18, %v7082_v20  ;;  %v435_v26 = vrot.slane %v421_v19, %v7082_v20  ;;  %v454_v41 = vcombine.low %v259_v32, %v263_v33  ;;  %v275_v45 = vrot.slane %v211_v27, %v7074_v14 }
  0x16   : > { %v445_v36 = vrot.slane %v437_v28, %v7082_v20  ;;  %v452_v37 = vrot.slane %v438_v29, %v7082_v20  ;;  %v455_v42 = vcombine.low %v267_v34, %v271_v35  ;;  %v279_v46 = vrot.slane %v211_v27, %v7076_v15 }
  0x17   : > { %v436_v30 = vcombine.low %v428_v25, %v435_v26  ;;  %v283_v47 = vrot.slane %v211_v27, %v7078_v16  ;;  %v287_v48 = vrot.slane %v211_v27, %v7080_v17  ;;  %v291_v51 = vrot.slane %v7105_v39, %v7061_v4 }
  0x18   : > { %v453_v40 = vcombine.low %v445_v36, %v452_v37  ;;  %v295_v52 = vrot.slane %v7105_v39, %v7063_v5  ;;  %v299_v53 = vrot.slane %v7105_v39, %v7065_v6  ;;  %v303_v54 = vrot.slane %v7105_v39, %v7067_v7 }
  0x19   : > { %v644_v38 = vmul.f32 %v436_v30, %v197_v31  ;;  %v462_v55 = vrot.slane %v454_v41, %v7082_v20  ;;  %v469_v56 = vrot.slane %v455_v42, %v7082_v20  ;;  %v307_v59 = vrot.slane %v7105_v39, %v7074_v14  ;;  %v7165_v30 = vld [vmem:[%s7059_s16 + $0x28] sm:$0xff] }
  0x1a   : > { %v645_v57 = vmul.f32 %v453_v40, %v198_v44  ;;  %v311_v60 = vrot.slane %v7105_v39, %v7076_v15  ;;  %v315_v61 = vrot.slane %v7105_v39, %v7078_v16  ;;  %v319_v62 = vrot.slane %v7105_v39, %v7080_v17 }
  0x1b   : > { %v670_v43 = vcombine.high %v644_v38, %v644_v38  ;;  %v677_v49 = vrot.slane %v644_v38, %v7082_v20  ;;  %v323_v0 = vrot.slane %v7114_v50, %v7061_v4  ;;  %v327_v1 = vrot.slane %v7114_v50, %v7063_v5 }
  0x1c   : > { %v331_v2 = vrot.slane %v7114_v50, %v7065_v6  ;;  %v335_v8 = vrot.slane %v7114_v50, %v7067_v7  ;;  %v339_v9 = vrot.slane %v7114_v50, %v7074_v14  ;;  %v471_v10 = vcombine.low %v275_v45, %v279_v46 }
  0x1d   : > { %v684_v58 = vrot.slane %v670_v43, %v7082_v20  ;;  %v685_v3 = vcombine.high %v677_v49, %v677_v49  ;;  %v472_v11 = vcombine.low %v283_v47, %v287_v48  ;;  %v470_v12 = vcombine.low %v462_v55, %v469_v56 }
  0x1e   : > { %v687_v18 = vcombine.high %v645_v57, %v645_v57  ;;  %v694_v19 = vrot.slane %v645_v57, %v7082_v20  ;;  %v343_v22 = vrot.slane %v7114_v50, %v7076_v15  ;;  %v347_v23 = vrot.slane %v7114_v50, %v7078_v16 }
  0x1f   : > { %v686_v13 = vcombine.high %v684_v58, %v684_v58  ;;  %v351_v24 = vrot.slane %v7114_v50, %v7080_v17  ;;  %v355_v25 = vrot.slane %v7136_v63, %v7061_v4  ;;  %v359_v26 = vrot.slane %v7136_v63, %v7063_v5 }
  0x20   : > { %v363_v27 = vrot.slane %v7136_v63, %v7065_v6  ;;  %v931_v28 = vsel %vm930_vm0, %v677_v49, 0.0  ;;  %v932_v29 = vsel %vm930_vm0, %v685_v3, 0.0  ;;  %v479_v31 = vrot.slane %v471_v10, %v7082_v20  ;;  %v200_v10 = vld [vmem:[%s7094_s20 + $0x18] sm:$0xff] }
  0x21   : > { %v486_v32 = vrot.slane %v472_v11, %v7082_v20  ;;  %v933_v33 = vadd.f32 %v932_v29, %v931_v28  ;;  %v934_v34 = vsel %vm930_vm0, %v684_v58, 0.0  ;;  %v646_v35 = vmul.f32 %v470_v12, %v199_v21 }
  0x22   : > { %v701_v36 = vrot.slane %v687_v18, %v7082_v20  ;;  %v702_v37 = vcombine.high %v694_v19, %v694_v19  ;;  %v936_v38 = vsel %vm930_vm0, %v686_v13, 0.0  ;;  %v367_v39 = vrot.slane %v7136_v63, %v7067_v7 }
  0x23   : > { %v371_v40 = vrot.slane %v7136_v63, %v7074_v14  ;;  %v375_v41 = vrot.slane %v7136_v63, %v7076_v15  ;;  %v935_v42 = vadd.f32 %v934_v34, %v933_v33  ;;  %v379_v43 = vrot.slane %v7136_v63, %v7078_v16 }
  0x24   : > { %v383_v44 = vrot.slane %v7136_v63, %v7080_v17  ;;  %v387_v45 = vrot.slane %v7165_v30, %v7061_v4  ;;  %v938_v46 = vsel %vm930_vm0, %v694_v19, 0.0  ;;  %v487_v47 = vcombine.low %v479_v31, %v486_v32 }
  0x25   : > { %v488_v48 = vcombine.low %v291_v51, %v295_v52  ;;  %v489_v49 = vcombine.low %v299_v53, %v303_v54  ;;  %v937_v55 = vadd.f32 %v936_v38, %v935_v42  ;;  %v703_v56 = vcombine.high %v701_v36, %v701_v36 }
  0x26   : > { %v704_v57 = vcombine.high %v646_v35, %v646_v35  ;;  %v711_v58 = vrot.slane %v646_v35, %v7082_v20  ;;  %v940_v3 = vsel %vm930_vm0, %v702_v37, 0.0  ;;  %v391_v11 = vrot.slane %v7165_v30, %v7063_v5 }
  0x27   : > { %v395_v12 = vrot.slane %v7165_v30, %v7065_v6  ;;  %v399_v13 = vrot.slane %v7165_v30, %v7067_v7  ;;  %v939_v18 = vadd.f32 %v938_v46, %v937_v55  ;;  %v403_v51 = vrot.slane %v7165_v30, %v7074_v14  ;;  %v201_v55 = vld [vmem:[%s7094_s20 + $0x20] sm:$0xff] }
  0x28   : > { %v505_v52 = vcombine.low %v307_v59, %v311_v60  ;;  %v506_v53 = vcombine.low %v315_v61, %v319_v62  ;;  %v942_v54 = vsel %vm930_vm0, %v701_v36, 0.0  ;;  %v407_v19 = vrot.slane %v7165_v30, %v7076_v15 }
  0x29   : > { %v496_v21 = vrot.slane %v488_v48, %v7082_v20  ;;  %v503_v28 = vrot.slane %v489_v49, %v7082_v20  ;;  %v941_v29 = vadd.f32 %v940_v3, %v939_v18  ;;  %v647_v31 = vmul.f32 %v487_v47, %v200_v10 }
  0x2a   : > { %v718_v32 = vrot.slane %v704_v57, %v7082_v20  ;;  %v719_v33 = vcombine.high %v711_v58, %v711_v58  ;;  %v944_v34 = vsel %vm930_vm0, %v703_v56, 0.0  ;;  %v411_v59 = vrot.slane %v7165_v30, %v7078_v16 }
  0x2b   : > { %v415_v60 = vrot.slane %v7165_v30, %v7080_v17  ;;  %v522_v61 = vcombine.low %v323_v0, %v327_v1  ;;  %v943_v62 = vadd.f32 %v942_v54, %v941_v29  ;;  %v513_v35 = vrot.slane %v505_v52, %v7082_v20  ;;  %v202_v54 = vld [vmem:[%s7094_s20 + $0x28] sm:$0xff] }
  0x2c   : > { %v520_v36 = vrot.slane %v506_v53, %v7082_v20  ;;  %v523_v37 = vcombine.low %v331_v2, %v335_v8  ;;  %v946_v30 = vsel %vm930_vm0, %v711_v58, 0.0  ;;  %v504_v38 = vcombine.low %v496_v21, %v503_v28 }
  0x2d   : > { %v539_v42 = vcombine.low %v339_v9, %v343_v22  ;;  %v540_v0 = vcombine.low %v347_v23, %v351_v24  ;;  %v945_v1 = vadd.f32 %v944_v34, %v943_v62  ;;  %v720_v46 = vcombine.high %v718_v32, %v718_v32 }
  0x2e   : > { %v721_v47 = vcombine.high %v647_v31, %v647_v31  ;;  %v728_v48 = vrot.slane %v647_v31, %v7082_v20  ;;  %v948_v49 = vsel %vm930_vm0, %v719_v33, 0.0  ;;  %v530_v56 = vrot.slane %v522_v61, %v7082_v20 }
  0x2f   : > { %v556_v2 = vcombine.low %v355_v25, %v359_v26  ;;  %v557_v50 = vcombine.low %v363_v27, %v367_v39  ;;  %v947_v8 = vadd.f32 %v946_v30, %v945_v1  ;;  %v537_v9 = vrot.slane %v523_v37, %v7082_v20  ;;  %v206_v1 = vld [vmem:[%s7094_s20 + $0x48] sm:$0xff] }
  0x30   : > { %v573_v22 = vcombine.low %v371_v40, %v375_v41  ;;  %v574_v23 = vcombine.low %v379_v43, %v383_v44  ;;  %v950_v24 = vsel %vm930_vm0, %v718_v32, 0.0  ;;  %v521_v57 = vcombine.low %v513_v35, %v520_v36  ;;  %v203_v32 = vld [vmem:[%s7094_s20 + $0x30] sm:$0xff] }
  0x31   : > { %v547_v58 = vrot.slane %v539_v42, %v7082_v20  ;;  %v554_v3 = vrot.slane %v540_v0, %v7082_v20  ;;  %v949_v10 = vadd.f32 %v948_v49, %v947_v8  ;;  %v648_v18 = vmul.f32 %v504_v38, %v201_v55  ;;  %v6957_v36 = vld [vmem:[%s7059_s16 + $0x30] ss:$0 sm:$0xff]  ;;  %v205_v0 = vld [vmem:[%s7094_s20 + $0x40] sm:$0xff] }
  0x32   : > { %v735_v25 = vrot.slane %v721_v47, %v7082_v20  ;;  %v736_v63 = vcombine.high %v728_v48, %v728_v48  ;;  %v952_v26 = vsel %vm930_vm0, %v720_v46, 0.0  ;;  %v564_v27 = vrot.slane %v556_v2, %v7082_v20 }
  0x33   : > { %v571_v39 = vrot.slane %v557_v50, %v7082_v20  ;;  %v590_v40 = vcombine.low %v387_v45, %v391_v11  ;;  %v951_v41 = vadd.f32 %v950_v24, %v949_v10  ;;  %v581_v43 = vrot.slane %v573_v22, %v7082_v20  ;;  %v207_v22 = vld [vmem:[%s7094_s20 + $0x50] sm:$0xff] }
  0x34   : > { %v588_v44 = vrot.slane %v574_v23, %v7082_v20  ;;  %v591_v52 = vcombine.low %v395_v12, %v399_v13  ;;  %v954_v53 = vsel %vm930_vm0, %v728_v48, 0.0  ;;  %v538_v21 = vcombine.low %v530_v56, %v537_v9 }
  0x35   : > { %v607_v28 = vcombine.low %v403_v51, %v407_v19  ;;  %v608_v29 = vcombine.low %v411_v59, %v415_v60  ;;  %v953_v31 = vadd.f32 %v952_v26, %v951_v41  ;;  %v737_v33 = vcombine.high %v735_v25, %v735_v25  ;;  %v204_v60 = vld [vmem:[%s7094_s20 + $0x38] sm:$0xff]  ;;  %v209_v26 = vld [vmem:[%s7094_s20 + $0x60] sm:$0x3] }
  0x36   : > { %v738_v34 = vcombine.high %v648_v18, %v648_v18  ;;  %v745_v45 = vrot.slane %v648_v18, %v7082_v20  ;;  %v956_v11 = vsel %vm930_vm0, %v736_v63, 0.0  ;;  %v555_v61 = vcombine.low %v547_v58, %v554_v3  ;;  %v208_v3 = vld [vmem:[%s7094_s20 + $0x58] sm:$0xff] }
  0x37   : > { %v572_v12 = vcombine.low %v564_v27, %v571_v39  ;;  %v598_v13 = vrot.slane %v590_v40, %v7082_v20  ;;  %v955_v62 = vadd.f32 %v954_v53, %v953_v31  ;;  %v589_v35 = vcombine.low %v581_v43, %v588_v44 }
  0x38   : > { %v605_v51 = vrot.slane %v591_v52, %v7082_v20  ;;  %v649_v19 = vmul.f32 %v521_v57, %v202_v54  ;;  %v958_v59 = vsel %vm930_vm0, %v735_v25, 0.0  ;;  %v615_v37 = vrot.slane %v607_v28, %v7082_v20 }
  0x39   : > { %v622_v30 = vrot.slane %v608_v29, %v7082_v20  ;;  %v650_v38 = vmul.f32 %v538_v21, %v203_v32  ;;  %v957_v42 = vadd.f32 %v956_v11, %v955_v62  ;;  %v752_v46 = vrot.slane %v738_v34, %v7082_v20 }
  0x3a   : > { %v753_v47 = vcombine.high %v745_v45, %v745_v45  ;;  %v755_v48 = vcombine.high %v649_v19, %v649_v19  ;;  %v960_v49 = vsel %vm930_vm0, %v737_v33, 0.0  ;;  %v606_v2 = vcombine.low %v598_v13, %v605_v51 }
  0x3b   : > { %v772_v55 = vcombine.high %v650_v38, %v650_v38  ;;  %v959_v56 = vadd.f32 %v958_v59, %v957_v42  ;;  %v630_v50 = vrot.slane %v6957_v36, %v7082_v20  ;;  %v651_v8 = vmul.f32 %v555_v61, %v204_v60 }
  0x3c   : > { %v962_v9 = vsel %vm930_vm0, %v745_v45, 0.0  ;;  %v623_v23 = vcombine.low %v615_v37, %v622_v30  ;;  %v652_v24 = vmul.f32 %v572_v12, %v205_v0  ;;  %v653_v57 = vmul.f32 %v589_v35, %v206_v1  ;;  %v1877_v12 = vld [vmem:[%s7059_s16 + $0x62] sm:$0xff] }
  0x3d   : > { %v961_v58 = vadd.f32 %v960_v49, %v959_v56  ;;  %v754_v10 = vcombine.high %v752_v46, %v752_v46  ;;  %v762_v18 = vrot.slane %v649_v19, %v7082_v20  ;;  %v769_v25 = vrot.slane %v755_v48, %v7082_v20 }
  0x3e   : > { %v964_v63 = vsel %vm930_vm0, %v753_v47, 0.0  ;;  %v779_v27 = vrot.slane %v650_v38, %v7082_v20  ;;  %v7274_v39 = vrot.slane %v772_v55, %v7082_v20  ;;  %v789_v40 = vcombine.high %v651_v8, %v651_v8 }
  0x3f   : > { %v963_v41 = vadd.f32 %v962_v9, %v961_v58  ;;  %v654_v43 = vmul.f32 %v606_v2, %v207_v22  ;;  %v7277_v44 = vrot.slane %v651_v8, %v7082_v20  ;;  %v966_v52 = vsel %vm930_vm0, %v752_v46, 0.0 }
  0x40   : > { %v655_v53 = vmul.f32 %v623_v23, %v208_v3  ;;  %v806_v54 = vcombine.high %v652_v24, %v652_v24  ;;  %v823_v21 = vcombine.high %v653_v57, %v653_v57  ;;  %v7280_v29 = vmul.f32 %v630_v50, %v209_v26 }
  0x41   : > { %v965_v28 = vadd.f32 %v964_v63, %v963_v41  ;;  %v770_v31 = vcombine.high %v762_v18, %v762_v18  ;;  %v771_v32 = vcombine.high %v769_v25, %v769_v25  ;;  %v968_v33 = vsel %vm930_vm0, %v754_v10, 0.0 }
  0x42   : > { %v787_v34 = vcombine.high %v779_v27, %v779_v27  ;;  %v788_v45 = vcombine.high %v7274_v39, %v7274_v39  ;;  %v803_v11 = vrot.slane %v789_v40, %v7082_v20  ;;  %v804_v13 = vcombine.high %v7277_v44, %v7277_v44 }
  0x43   : > { %v967_v61 = vadd.f32 %v966_v52, %v965_v28  ;;  %v813_v62 = vrot.slane %v652_v24, %v7082_v20  ;;  %v840_v35 = vcombine.high %v654_v43, %v654_v43  ;;  %v970_v51 = vsel %vm930_vm0, %v762_v18, 0.0 }
  0x44   : > { %v820_v19 = vrot.slane %v806_v54, %v7082_v20  ;;  %v830_v59 = vrot.slane %v653_v57, %v7082_v20  ;;  %v837_v60 = vrot.slane %v823_v21, %v7082_v20  ;;  %v7295_v37 = vrot.slane %v654_v43, %v7082_v20 }
  0x45   : > { %v969_v36 = vadd.f32 %v968_v33, %v967_v61  ;;  %v857_v30 = vcombine.high %v655_v53, %v655_v53  ;;  %v972_v38 = vsel %vm930_vm0, %v770_v31, 0.0  ;;  %v1894_v42 = vrot.slane %v1877_v12, %v7061_v4 }
  0x46   : > { %v1898_v1 = vrot.slane %v1877_v12, %v7063_v5  ;;  %v1902_v46 = vrot.slane %v1877_v12, %v7065_v6  ;;  %v1906_v47 = vrot.slane %v1877_v12, %v7067_v7  ;;  %v805_v48 = vcombine.high %v803_v11, %v803_v11 }
  0x47   : > { %v971_v0 = vadd.f32 %v970_v51, %v969_v36  ;;  %v854_v49 = vrot.slane %v840_v35, %v7082_v20  ;;  %v864_v55 = vrot.slane %v655_v53, %v7082_v20  ;;  %v974_v56 = vsel %vm930_vm0, %v769_v25, 0.0  ;;  %v7332_v51 = vld [vmem:[%s7059_s16 + $0x6a] sm:$0xff] }
  0x48   : > { %v821_v2 = vcombine.high %v813_v62, %v813_v62  ;;  %v822_v50 = vcombine.high %v820_v19, %v820_v19  ;;  %v838_v8 = vcombine.high %v830_v59, %v830_v59  ;;  %v839_v22 = vcombine.high %v837_v60, %v837_v60 }
  0x49   : > { %v973_v9 = vadd.f32 %v972_v38, %v971_v0  ;;  %v855_v23 = vcombine.high %v7295_v37, %v7295_v37  ;;  %v871_v24 = vrot.slane %v857_v30, %v7082_v20  ;;  %v976_v57 = vsel %vm930_vm0, %v771_v32, 0.0 }
  0x4a   : > { %v880_v58 = vrot.slane %v7280_v29, %v7082_v20  ;;  %v2087_v10 = vcombine.low %v1894_v42, %v1898_v1  ;;  %v2088_v18 = vcombine.low %v1902_v46, %v1906_v47  ;;  %v856_v63 = vcombine.high %v854_v49, %v854_v49  ;;  %v1864_v46 = vld [vmem:[%s7094_s20 + $0xc4] sm:$0xff] }
  0x4b   : > { %v975_v3 = vadd.f32 %v974_v56, %v973_v9  ;;  %v872_v25 = vcombine.high %v864_v55, %v864_v55  ;;  %v978_v26 = vsel %vm930_vm0, %v779_v27, 0.0  ;;  %v1910_v40 = vrot.slane %v1877_v12, %v7074_v14 }
  0x4c   : > { %v1914_v43 = vrot.slane %v1877_v12, %v7076_v15  ;;  %v1918_v52 = vrot.slane %v1877_v12, %v7078_v16  ;;  %v1922_v53 = vrot.slane %v1877_v12, %v7080_v17  ;;  %v873_v54 = vcombine.high %v871_v24, %v871_v24 }
  0x4d   : > { %v977_v41 = vadd.f32 %v976_v57, %v975_v3  ;;  %v980_v21 = vsel %vm930_vm0, %v787_v34, 0.0  ;;  %v982_v28 = vsel %vm930_vm0, %v7274_v39, 0.0  ;;  %v984_v29 = vsel %vm930_vm0, %v788_v45, 0.0 }
  0x4e   : > { %v986_v27 = vsel %vm930_vm0, %v7277_v44, 0.0  ;;  %v2095_v32 = vrot.slane %v2087_v10, %v7082_v20  ;;  %v2102_v33 = vrot.slane %v2088_v18, %v7082_v20  ;;  %v988_v61 = vsel %vm930_vm0, %v804_v13, 0.0  ;;  %v7386_v18 = vld [vmem:[%s7059_s16 + $0x72] sm:$0xff] }
  0x4f   : > { %v979_v31 = vadd.f32 %v978_v26, %v977_v41  ;;  %v990_v12 = vsel %vm930_vm0, %v803_v11, 0.0  ;;  %v992_v34 = vsel %vm930_vm0, %v805_v48, 0.0  ;;  %v994_v35 = vsel %vm930_vm0, %v813_v62, 0.0 }
  0x50   : > { %v7329_v45 = vsel %vm930_vm0, %v821_v2, 0.0  ;;  %v2104_v44 = vcombine.low %v1910_v40, %v1914_v43  ;;  %v2105_v36 = vcombine.low %v1918_v52, %v1922_v53  ;;  %v7335_v30 = vsel %vm930_vm0, %v820_v19, 0.0 }
  0x51   : > { %v981_v39 = vadd.f32 %v980_v21, %v979_v31  ;;  %v7338_v13 = vsel %vm930_vm0, %v822_v50, 0.0  ;;  %v7341_v11 = vsel %vm930_vm0, %v830_v59, 0.0  ;;  %v7344_v38 = vsel %vm930_vm0, %v838_v8, 0.0 }
  0x52   : > { %v7347_v42 = vsel %vm930_vm0, %v837_v60, 0.0  ;;  %v7350_v0 = vsel %vm930_vm0, %v839_v22, 0.0  ;;  %v2103_v1 = vcombine.low %v2095_v32, %v2102_v33  ;;  %v1926_v19 = vrot.slane %v7332_v51, %v7061_v4 }
  0x53   : > { %v983_v62 = vadd.f32 %v982_v28, %v981_v39  ;;  %v1930_v59 = vrot.slane %v7332_v51, %v7063_v5  ;;  %v1934_v47 = vrot.slane %v7332_v51, %v7065_v6  ;;  %v1938_v48 = vrot.slane %v7332_v51, %v7067_v7  ;;  %v7406_v28 = vld [vmem:[%s7059_s16 + $0x7a] sm:$0xff] }
  0x54   : > { %v7363_v56 = vsel %vm930_vm0, %v7295_v37, 0.0  ;;  %v2112_v2 = vrot.slane %v2104_v44, %v7082_v20  ;;  %v2119_v50 = vrot.slane %v2105_v36, %v7082_v20  ;;  %v7368_v8 = vsel %vm930_vm0, %v855_v23, 0.0 }
  0x55   : > { %v985_v60 = vadd.f32 %v984_v29, %v983_v62  ;;  %v7371_v9 = vsel %vm930_vm0, %v854_v49, 0.0  ;;  %v7374_v22 = vsel %vm930_vm0, %v856_v63, 0.0  ;;  %v7377_v57 = vsel %vm930_vm0, %v864_v55, 0.0 }
  0x56   : > { %v7380_v37 = vsel %vm930_vm0, %v872_v25, 0.0  ;;  %v7383_v10 = vsel %vm930_vm0, %v871_v24, 0.0  ;;  %v2311_v23 = vmul.f32 %v2103_v1, %v1864_v46  ;;  %v7389_v49 = vsel %vm930_vm0, %v873_v54, 0.0  ;;  %v1865_v24 = vld [vmem:[%s7094_s20 + $0xcc] sm:$0xff] }
  0x57   : > { %v987_v3 = vadd.f32 %v986_v27, %v985_v60  ;;  %v7392_v63 = vsel %vm930_vm0, %v880_v58, 0.0  ;;  %v2121_v26 = vcombine.low %v1926_v19, %v1930_v59  ;;  %v2122_v55 = vcombine.low %v1934_v47, %v1938_v48  ;;  %v7435_v60 = vld [vmem:[%s7059_s16 + $0x82] sm:$0xff] }
  0x58   : > { %v1942_v25 = vrot.slane %v7332_v51, %v7074_v14  ;;  %v2120_v41 = vcombine.low %v2112_v2, %v2119_v50  ;;  %v2337_v43 = vcombine.high %v2311_v23, %v2311_v23  ;;  %v1946_v52 = vrot.slane %v7332_v51, %v7076_v15 }
  0x59   : > { %v989_v40 = vadd.f32 %v988_v61, %v987_v3  ;;  %v1950_v53 = vrot.slane %v7332_v51, %v7078_v16  ;;  %v1954_v54 = vrot.slane %v7332_v51, %v7080_v17  ;;  %v1958_v58 = vrot.slane %v7386_v18, %v7061_v4 }
  0x5a   : > { %v1962_v29 = vrot.slane %v7386_v18, %v7063_v5  ;;  %v1966_v31 = vrot.slane %v7386_v18, %v7065_v6  ;;  %v2344_v27 = vrot.slane %v2311_v23, %v7082_v20  ;;  %v1970_v32 = vrot.slane %v7386_v18, %v7067_v7 }
  0x5b   : > { %v991_v21 = vadd.f32 %v990_v12, %v989_v40  ;;  %v1974_v33 = vrot.slane %v7386_v18, %v7074_v14  ;;  %v2129_v61 = vrot.slane %v2121_v26, %v7082_v20  ;;  %v2136_v12 = vrot.slane %v2122_v55, %v7082_v20  ;;  %v1866_v55 = vld [vmem:[%s7094_s20 + $0xd4] sm:$0xff] }
  0x5c   : > { %v1978_v51 = vrot.slane %v7386_v18, %v7076_v15  ;;  %v2312_v44 = vmul.f32 %v2120_v41, %v1865_v24  ;;  %v2351_v36 = vrot.slane %v2337_v43, %v7082_v20  ;;  %v1982_v62 = vrot.slane %v7386_v18, %v7078_v16 }
  0x5d   : > { %v993_v39 = vadd.f32 %v992_v34, %v991_v21  ;;  %v1986_v1 = vrot.slane %v7386_v18, %v7080_v17  ;;  %v1990_v46 = vrot.slane %v7406_v28, %v7061_v4  ;;  %v1994_v19 = vrot.slane %v7406_v28, %v7063_v5 }
  0x5e   : > { %v1998_v59 = vrot.slane %v7406_v28, %v7065_v6  ;;  %v2002_v47 = vrot.slane %v7406_v28, %v7067_v7  ;;  %v2352_v48 = vcombine.high %v2344_v27, %v2344_v27  ;;  %v2006_v2 = vrot.slane %v7406_v28, %v7074_v14 }
  0x5f   : > { %v995_v34 = vadd.f32 %v994_v35, %v993_v39  ;;  %v2137_v50 = vcombine.low %v2129_v61, %v2136_v12  ;;  %v2138_v3 = vcombine.low %v1942_v25, %v1946_v52  ;;  %v2139_v23 = vcombine.low %v1950_v53, %v1954_v54 }
  0x60   : > { %v2353_v40 = vcombine.high %v2351_v36, %v2351_v36  ;;  %v2354_v35 = vcombine.high %v2312_v44, %v2312_v44  ;;  %v2361_v41 = vrot.slane %v2312_v44, %v7082_v20  ;;  %v2010_v43 = vrot.slane %v7406_v28, %v7076_v15 }
  0x61   : > { %v997_v26 = vadd.f32 %v7329_v45, %v995_v34  ;;  %v2018_v21 = vrot.slane %v7406_v28, %v7080_v17  ;;  %v2597_v61 = vsel %vm930_vm0, %v2344_v27, 0.0  ;;  %v2598_v52 = vsel %vm930_vm0, %v2352_v48, 0.0  ;;  %v1867_v45 = vld [vmem:[%s7094_s20 + $0xdc] sm:$0xff] }
  0x62   : > { %v2600_v53 = vsel %vm930_vm0, %v2351_v36, 0.0  ;;  %v2146_v54 = vrot.slane %v2138_v3, %v7082_v20  ;;  %v2153_v12 = vrot.slane %v2139_v23, %v7082_v20  ;;  %v2313_v39 = vmul.f32 %v2137_v50, %v1866_v55 }
  0x63   : > { %v999_v25 = vadd.f32 %v7335_v30, %v997_v26  ;;  %v2599_v44 = vadd.f32 %v2598_v52, %v2597_v61  ;;  %v2368_v27 = vrot.slane %v2354_v35, %v7082_v20  ;;  %v2369_v24 = vcombine.high %v2361_v41, %v2361_v41  ;;  %v7470_v35 = vld [vmem:[%s7059_s16 + $0x8a] sm:$0xff] }
  0x64   : > { %v2602_v30 = vsel %vm930_vm0, %v2353_v40, 0.0  ;;  %v2034_v3 = vrot.slane %v7435_v60, %v7067_v7  ;;  %v2155_v26 = vcombine.low %v1958_v58, %v1962_v29  ;;  %v2604_v55 = vsel %vm930_vm0, %v2361_v41, 0.0 }
  0x65   : > { %v1001_v34 = vadd.f32 %v7338_v13, %v999_v25  ;;  %v2601_v23 = vadd.f32 %v2600_v53, %v2599_v44  ;;  %v2038_v13 = vrot.slane %v7435_v60, %v7074_v14  ;;  %v2154_v40 = vcombine.low %v2146_v54, %v2153_v12 }
  0x66   : > { %v2156_v61 = vcombine.low %v1966_v31, %v1970_v32  ;;  %v2371_v25 = vcombine.high %v2313_v39, %v2313_v39  ;;  %v2370_v48 = vcombine.high %v2368_v27, %v2368_v27  ;;  %v2378_v53 = vrot.slane %v2313_v39, %v7082_v20 }
  0x67   : > { %v1003_v50 = vadd.f32 %v7341_v11, %v1001_v34  ;;  %v2603_v52 = vadd.f32 %v2602_v30, %v2601_v23  ;;  %v2606_v11 = vsel %vm930_vm0, %v2369_v24, 0.0  ;;  %v2042_v44 = vrot.slane %v7435_v60, %v7076_v15 }
  0x68   : > { %v2046_v58 = vrot.slane %v7435_v60, %v7078_v16  ;;  %v2050_v29 = vrot.slane %v7435_v60, %v7080_v17  ;;  %v2058_v41 = vrot.slane %v7470_v35, %v7063_v5  ;;  %v2608_v24 = vsel %vm930_vm0, %v2368_v27, 0.0 }
  0x69   : > { %v1005_v36 = vadd.f32 %v7344_v38, %v1003_v50  ;;  %v2605_v31 = vadd.f32 %v2604_v55, %v2603_v52  ;;  %v2054_v38 = vrot.slane %v7470_v35, %v7061_v4  ;;  %v2163_v54 = vrot.slane %v2155_v26, %v7082_v20 }
  0x6a   : > { %v2170_v12 = vrot.slane %v2156_v61, %v7082_v20  ;;  %v2314_v39 = vmul.f32 %v2154_v40, %v1867_v45  ;;  %v2385_v23 = vrot.slane %v2371_v25, %v7082_v20  ;;  %v2062_v50 = vrot.slane %v7470_v35, %v7065_v6 }
  0x6b   : > { %v1007_v32 = vadd.f32 %v7347_v42, %v1005_v36  ;;  %v2607_v34 = vadd.f32 %v2606_v11, %v2605_v31  ;;  %v2386_v42 = vcombine.high %v2378_v53, %v2378_v53  ;;  %v2610_v36 = vsel %vm930_vm0, %v2370_v48, 0.0  ;;  %v1868_v31 = vld [vmem:[%s7094_s20 + $0xe4] sm:$0xff] }
  0x6c   : > { %v2066_v27 = vrot.slane %v7470_v35, %v7067_v7  ;;  %v2070_v26 = vrot.slane %v7470_v35, %v7074_v14  ;;  %v2173_v48 = vcombine.low %v1982_v62, %v1986_v1  ;;  %v2612_v40 = vsel %vm930_vm0, %v2378_v53, 0.0 }
  0x6d   : > { %v1009_v30 = vadd.f32 %v7350_v0, %v1007_v32  ;;  %v2609_v55 = vadd.f32 %v2608_v24, %v2607_v34  ;;  %v2172_v0 = vcombine.low %v1974_v33, %v1978_v51  ;;  %v2074_v61 = vrot.slane %v7470_v35, %v7076_v15 }
  0x6e   : > { %v2388_v25 = vcombine.high %v2314_v39, %v2314_v39  ;;  %v2387_v32 = vcombine.high %v2385_v23, %v2385_v23  ;;  %v2395_v33 = vrot.slane %v2314_v39, %v7082_v20  ;;  %v2614_v51 = vsel %vm930_vm0, %v2386_v42, 0.0 }
  0x6f   : > { %v1011_v45 = vadd.f32 %v7363_v56, %v1009_v30  ;;  %v2171_v56 = vcombine.low %v2163_v54, %v2170_v12  ;;  %v2611_v52 = vadd.f32 %v2610_v36, %v2609_v55  ;;  %v2078_v18 = vrot.slane %v7470_v35, %v7078_v16 }
  0x70   : > { %v2189_v62 = vcombine.low %v1990_v46, %v1994_v19  ;;  %v2180_v24 = vrot.slane %v2172_v0, %v7082_v20  ;;  %v2187_v54 = vrot.slane %v2173_v48, %v7082_v20  ;;  %v2616_v12 = vsel %vm930_vm0, %v2385_v23, 0.0 }
  0x71   : > { %v1013_v11 = vadd.f32 %v7368_v8, %v1011_v45  ;;  %v2190_v8 = vcombine.low %v1998_v59, %v2002_v47  ;;  %v2613_v1 = vadd.f32 %v2612_v40, %v2611_v52  ;;  %v2082_v39 = vrot.slane %v7470_v35, %v7080_v17 }
  0x72   : > { %v2206_v46 = vcombine.low %v2006_v2, %v2010_v43  ;;  %v2315_v19 = vmul.f32 %v2171_v56, %v1868_v31  ;;  %v2402_v47 = vrot.slane %v2388_v25, %v7082_v20  ;;  %v2403_v34 = vcombine.high %v2395_v33, %v2395_v33 }
  0x73   : > { %v1015_v53 = vadd.f32 %v7371_v9, %v1013_v11  ;;  %v2615_v59 = vadd.f32 %v2614_v51, %v2613_v1  ;;  %v2618_v30 = vsel %vm930_vm0, %v2387_v32, 0.0  ;;  %v2197_v23 = vrot.slane %v2189_v62, %v7082_v20  ;;  %v1869_v11 = vld [vmem:[%s7094_s20 + $0xec] sm:$0xff] }
  0x74   : > { %v2204_v42 = vrot.slane %v2190_v8, %v7082_v20  ;;  %v9215_v2 = vrot.slane %v7406_v28, %v7078_v16  ;;  %v2188_v55 = vcombine.low %v2180_v24, %v2187_v54  ;;  %v9216_v45 = vrot.slane %v7435_v60, %v7063_v5 }
  0x75   : > { %v1017_v9 = vadd.f32 %v7374_v22, %v1015_v53  ;;  %v2617_v36 = vadd.f32 %v2616_v12, %v2615_v59  ;;  %v9217_v0 = vrot.slane %v7435_v60, %v7061_v4  ;;  %v2620_v40 = vsel %vm930_vm0, %v2395_v33, 0.0 }
  0x76   : > { %v2207_v43 = vcombine.low %v9215_v2, %v2018_v21  ;;  %v2214_v56 = vrot.slane %v2206_v46, %v7082_v20  ;;  %v9218_v28 = vrot.slane %v7435_v60, %v7065_v6  ;;  %v2404_v31 = vcombine.high %v2402_v47, %v2402_v47 }
  0x77   : > { %v1019_v22 = vadd.f32 %v7377_v57, %v1017_v9  ;;  %v2223_v48 = vcombine.low %v9217_v0, %v9216_v45  ;;  %v2405_v57 = vcombine.high %v2315_v19, %v2315_v19  ;;  %v2619_v25 = vadd.f32 %v2618_v30, %v2617_v36 }
  0x78   : > { %v2224_v21 = vcombine.low %v9218_v28, %v2034_v3  ;;  %v2412_v32 = vrot.slane %v2315_v19, %v7082_v20  ;;  %v2622_v51 = vsel %vm930_vm0, %v2403_v34, 0.0  ;;  %v2205_v33 = vcombine.low %v2197_v23, %v2204_v42 }
  0x79   : > { %v1021_v52 = vadd.f32 %v7380_v37, %v1019_v22  ;;  %v2221_v62 = vrot.slane %v2207_v43, %v7082_v20  ;;  %v2240_v3 = vcombine.low %v2038_v13, %v2042_v44  ;;  %v2621_v8 = vadd.f32 %v2620_v40, %v2619_v25  ;;  %v1874_v25 = vld [vmem:[%s7094_s20 + $0x114] sm:$0xff] }
  0x7a   : > { %v2231_v37 = vrot.slane %v2223_v48, %v7082_v20  ;;  %v2241_v53 = vcombine.low %v2046_v58, %v2050_v29  ;;  %v2624_v24 = vsel %vm930_vm0, %v2402_v47, 0.0  ;;  %v2257_v13 = vcombine.low %v2054_v38, %v2058_v41  ;;  %v1870_v41 = vld [vmem:[%s7094_s20 + $0xf4] sm:$0xff]  ;;  %v1872_v48 = vld [vmem:[%s7094_s20 + $0x104] sm:$0xff] }
  0x7b   : > { %v1023_v1 = vadd.f32 %v7383_v10, %v1021_v52  ;;  %v2258_v10 = vcombine.low %v2062_v50, %v2066_v27  ;;  %v2316_v44 = vmul.f32 %v2188_v55, %v1869_v11  ;;  %v2623_v54 = vadd.f32 %v2622_v51, %v2621_v8  ;;  %v6959_v52 = vld [vmem:[%s7059_s16 + $0x92] ss:$0 sm:$0xff] }
  0x7c   : > { %v2419_v46 = vrot.slane %v2405_v57, %v7082_v20  ;;  %v2420_v19 = vcombine.high %v2412_v32, %v2412_v32  ;;  %v2626_v60 = vsel %vm930_vm0, %v2404_v31, 0.0  ;;  %v2238_v58 = vrot.slane %v2224_v21, %v7082_v20  ;;  %v1873_v57 = vld [vmem:[%s7094_s20 + $0x10c] sm:$0xff] }
  0x7d   : > { %v1025_v12 = vadd.f32 %v7389_v49, %v1023_v1  ;;  %v2274_v29 = vcombine.low %v2070_v26, %v2074_v61  ;;  %v2275_v59 = vcombine.low %v2078_v18, %v2082_v39  ;;  %v2625_v9 = vadd.f32 %v2624_v24, %v2623_v54  ;;  %v1871_v18 = vld [vmem:[%s7094_s20 + $0xfc] sm:$0xff] }
  0x7e   : > { %v2222_v50 = vcombine.low %v2214_v56, %v2221_v62  ;;  %v2248_v49 = vrot.slane %v2240_v3, %v7082_v20  ;;  %v2628_v27 = vsel %vm930_vm0, %v2412_v32, 0.0  ;;  %v2255_v47 = vrot.slane %v2241_v53, %v7082_v20 }
  0x7f   : > { %v1027_v38 = vadd.f32 %v7392_v63, %v1025_v12  ;;  %v2265_v34 = vrot.slane %v2257_v13, %v7082_v20  ;;  %v2422_v30 = vcombine.high %v2316_v44, %v2316_v44  ;;  %v2627_v23 = vadd.f32 %v2626_v60, %v2625_v9  ;;  %v1876_v60 = vld [vmem:[%s7094_s20 + $0x124] sm:$0x3] }
  0x80   : > { %v2272_v35 = vrot.slane %v2258_v10, %v7082_v20  ;;  %v2421_v26 = vcombine.high %v2419_v46, %v2419_v46  ;;  %v2429_v61 = vrot.slane %v2316_v44, %v7082_v20  ;;  %v2630_v63 = vsel %vm930_vm0, %v2420_v19, 0.0  ;;  %v1044_v19 = vld [vmem:[%s7059_s16 + $0x31] sm:$0xff] }
  0x81   : > { %1028 = vadd.xlane.f32.xlu0 %v1027_v38  ;;  %v2282_v39 = vrot.slane %v2274_v29, %v7082_v20  ;;  %v2289_v42 = vrot.slane %v2275_v59, %v7082_v20  ;;  %v2317_v2 = vmul.f32 %v2205_v33, %v1870_v41  ;;  %v2629_v43 = vadd.f32 %v2628_v27, %v2627_v23  ;;  %v1875_v33 = vld [vmem:[%s7094_s20 + $0x11c] sm:$0xff] }
  0x82   : > { %v2632_v36 = vsel %vm930_vm0, %v2419_v46, 0.0  ;;  %v2239_v22 = vcombine.low %v2231_v37, %v2238_v58  ;;  %v2256_v55 = vcombine.low %v2248_v49, %v2255_v47  ;;  %v2436_v45 = vrot.slane %v2422_v30, %v7082_v20 }
  0x83   : > { %v2631_v0 = vadd.f32 %v2630_v63, %v2629_v43  ;;  %v2273_v40 = vcombine.low %v2265_v34, %v2272_v35  ;;  %v2318_v56 = vmul.f32 %v2222_v50, %v1871_v18  ;;  %v2437_v28 = vcombine.high %v2429_v61, %v2429_v61 }
  0x84   : > { %v2634_v21 = vsel %vm930_vm0, %v2421_v26, 0.0  ;;  %v2290_v11 = vcombine.low %v2282_v39, %v2289_v42  ;;  %v2439_v31 = vcombine.high %v2317_v2, %v2317_v2  ;;  %v2446_v32 = vrot.slane %v2317_v2, %v7082_v20 }
  0x85   : > { %v2633_v51 = vadd.f32 %v2632_v36, %v2631_v0  ;;  %v2456_v62 = vcombine.high %v2318_v56, %v2318_v56  ;;  %v2636_v3 = vsel %vm930_vm0, %v2429_v61, 0.0  ;;  %v2319_v8 = vmul.f32 %v2239_v22, %v1872_v48 }
  0x86   : > { %v2438_v1 = vcombine.high %v2436_v45, %v2436_v45  ;;  %v2297_v53 = vrot.slane %v6959_v52, %v7082_v20  ;;  %v2320_v24 = vmul.f32 %v2256_v55, %v1873_v57  ;;  %v2321_v13 = vmul.f32 %v2273_v40, %v1874_v25 }
  0x87   : > { %v2635_v37 = vadd.f32 %v2634_v21, %v2633_v51  ;;  %v2638_v10 = vsel %vm930_vm0, %v2437_v28, 0.0  ;;  %v2322_v44 = vmul.f32 %v2290_v11, %v1875_v33  ;;  %v2453_v54 = vrot.slane %v2439_v31, %v7082_v20 }
  0x88   : > { %v2454_v12 = vcombine.high %v2446_v32, %v2446_v32  ;;  %v2463_v58 = vrot.slane %v2318_v56, %v7082_v20  ;;  %v2470_v29 = vrot.slane %v2456_v62, %v7082_v20  ;;  %v2473_v59 = vcombine.high %v2319_v8, %v2319_v8 }
  0x89   : > { %v2637_v46 = vadd.f32 %v2636_v3, %v2635_v37  ;;  %v2640_v9 = vsel %vm930_vm0, %v2436_v45, 0.0  ;;  %v2480_v38 = vrot.slane %v2319_v8, %v7082_v20  ;;  %v2490_v41 = vcombine.high %v2320_v24, %v2320_v24 }
  0x8a   : > { %v2642_v49 = vsel %vm930_vm0, %v2438_v1, 0.0  ;;  %v1061_v27 = vrot.slane %v1044_v19, %v7061_v4  ;;  %v1065_v47 = vrot.slane %v1044_v19, %v7063_v5  ;;  %v1069_v34 = vrot.slane %v1044_v19, %v7065_v6 }
  0x8b   : > { %v2639_v50 = vadd.f32 %v2638_v10, %v2637_v46  ;;  %v1073_v30 = vrot.slane %v1044_v19, %v7067_v7  ;;  %v7640_v23 = vmul.f32 %v2297_v53, %v1876_v60  ;;  %v2455_v35 = vcombine.high %v2453_v54, %v2453_v54 }
  0x8c   : > { %v2507_v26 = vcombine.high %v2321_v13, %v2321_v13  ;;  %v2471_v63 = vcombine.high %v2463_v58, %v2463_v58  ;;  %v2472_v18 = vcombine.high %v2470_v29, %v2470_v29  ;;  %v2497_v39 = vrot.slane %v2320_v24, %v7082_v20 }
  0x8d   : > { %v2641_v61 = vadd.f32 %v2640_v9, %v2639_v50  ;;  %v2644_v42 = vsel %vm930_vm0, %v2446_v32, 0.0  ;;  %v2487_v2 = vrot.slane %v2473_v59, %v7082_v20  ;;  %v2488_v43 = vcombine.high %v2480_v38, %v2480_v38 }
  0x8e   : > { %v2524_v36 = vcombine.high %v2322_v44, %v2322_v44  ;;  %v2504_v55 = vrot.slane %v2490_v41, %v7082_v20  ;;  %v2646_v45 = vsel %vm930_vm0, %v2454_v12, 0.0  ;;  %v1254_v0 = vcombine.low %v1061_v27, %v1065_v47 }
  0x8f   : > { %v2643_v22 = vadd.f32 %v2642_v49, %v2641_v61  ;;  %v1255_v48 = vcombine.low %v1069_v34, %v1073_v30  ;;  %v2514_v40 = vrot.slane %v2321_v13, %v7082_v20  ;;  %v2521_v56 = vrot.slane %v2507_v26, %v7082_v20 }
  0x90   : > { %v2648_v21 = vsel %vm930_vm0, %v2453_v54, 0.0  ;;  %v1077_v57 = vrot.slane %v1044_v19, %v7074_v14  ;;  %v1081_v25 = vrot.slane %v1044_v19, %v7076_v15  ;;  %v1085_v52 = vrot.slane %v1044_v19, %v7078_v16  ;;  %v7663_v54 = vld [vmem:[%s7059_s16 + $0x39] sm:$0xff] }
  0x91   : > { %v2645_v28 = vadd.f32 %v2644_v42, %v2643_v22  ;;  %v1089_v11 = vrot.slane %v1044_v19, %v7080_v17  ;;  %v2505_v31 = vcombine.high %v2497_v39, %v2497_v39  ;;  %v2531_v32 = vrot.slane %v2322_v44, %v7082_v20 }
  0x92   : > { %v2538_v51 = vrot.slane %v2524_v36, %v7082_v20  ;;  %v2489_v62 = vcombine.high %v2487_v2, %v2487_v2  ;;  %v2650_v3 = vsel %vm930_vm0, %v2455_v35, 0.0  ;;  %v1262_v8 = vrot.slane %v1254_v0, %v7082_v20 }
  0x93   : > { %v2647_v33 = vadd.f32 %v2646_v45, %v2645_v28  ;;  %v1269_v1 = vrot.slane %v1255_v48, %v7082_v20  ;;  %v2506_v37 = vcombine.high %v2504_v55, %v2504_v55  ;;  %v2522_v53 = vcombine.high %v2514_v40, %v2514_v40 }
  0x94   : > { %v2547_v24 = vrot.slane %v7640_v23, %v7082_v20  ;;  %v2523_v10 = vcombine.high %v2521_v56, %v2521_v56  ;;  %v2652_v44 = vsel %vm930_vm0, %v2463_v58, 0.0  ;;  %v1271_v12 = vcombine.low %v1077_v57, %v1081_v25  ;;  %v1031_v58 = vld [vmem:[%s7094_s20 + $0x62] sm:$0xff] }
  0x95   : > { %v2649_v13 = vadd.f32 %v2648_v21, %v2647_v33  ;;  %v1272_v46 = vcombine.low %v1085_v52, %v1089_v11  ;;  %v2539_v19 = vcombine.high %v2531_v32, %v2531_v32  ;;  %v2540_v60 = vcombine.high %v2538_v51, %v2538_v51 }
  0x96   : > { %v2654_v9 = vsel %vm930_vm0, %v2471_v63, 0.0  ;;  %v2656_v41 = vsel %vm930_vm0, %v2470_v29, 0.0  ;;  %v2658_v50 = vsel %vm930_vm0, %v2472_v18, 0.0  ;;  %v2660_v49 = vsel %vm930_vm0, %v2480_v38, 0.0 }
  0x97   : > { %v2651_v59 = vadd.f32 %v2650_v3, %v2649_v13  ;;  %v1270_v27 = vcombine.low %v1262_v8, %v1269_v1  ;;  %v2662_v34 = vsel %vm930_vm0, %v2488_v43, 0.0  ;;  %v1093_v30 = vrot.slane %v7663_v54, %v7061_v4 }
  0x98   : > { %v1097_v23 = vrot.slane %v7663_v54, %v7063_v5  ;;  %v1101_v35 = vrot.slane %v7663_v54, %v7065_v6  ;;  %v1105_v29 = vrot.slane %v7663_v54, %v7067_v7  ;;  %v1279_v26 = vrot.slane %v1271_v12, %v7082_v20 }
  0x99   : > { %v2653_v47 = vadd.f32 %v2652_v44, %v2651_v59  ;;  %v1286_v38 = vrot.slane %v1272_v46, %v7082_v20  ;;  %v2664_v63 = vsel %vm930_vm0, %v2487_v2, 0.0  ;;  %v2666_v18 = vsel %vm930_vm0, %v2489_v62, 0.0  ;;  %v7719_v62 = vld [vmem:[%s7059_s16 + $0x41] sm:$0xff] }
  0x9a   : > { %v2668_v42 = vsel %vm930_vm0, %v2497_v39, 0.0  ;;  %v7685_v43 = vsel %vm930_vm0, %v2505_v31, 0.0  ;;  %v7688_v36 = vsel %vm930_vm0, %v2504_v55, 0.0  ;;  %v7691_v22 = vsel %vm930_vm0, %v2506_v37, 0.0  ;;  %v1032_v31 = vld [vmem:[%s7094_s20 + $0x6a] sm:$0xff] }
  0x9b   : > { %v2655_v61 = vadd.f32 %v2654_v9, %v2653_v47  ;;  %v1478_v45 = vmul.f32 %v1270_v27, %v1031_v58  ;;  %v7694_v48 = vsel %vm930_vm0, %v2514_v40, 0.0  ;;  %v7697_v2 = vsel %vm930_vm0, %v2522_v53, 0.0 }
  0x9c   : > { %v7700_v39 = vsel %vm930_vm0, %v2521_v56, 0.0  ;;  %v1287_v28 = vcombine.low %v1279_v26, %v1286_v38  ;;  %v1288_v21 = vcombine.low %v1093_v30, %v1097_v23  ;;  %v1289_v57 = vcombine.low %v1101_v35, %v1105_v29  ;;  %v1033_v29 = vld [vmem:[%s7094_s20 + $0x72] sm:$0xff] }
  0x9d   : > { %v2657_v0 = vadd.f32 %v2656_v41, %v2655_v61  ;;  %v1504_v55 = vcombine.high %v1478_v45, %v1478_v45  ;;  %v7703_v52 = vsel %vm930_vm0, %v2523_v10, 0.0  ;;  %v7706_v11 = vsel %vm930_vm0, %v2531_v32, 0.0 }
  0x9e   : > { %v7709_v40 = vsel %vm930_vm0, %v2539_v19, 0.0  ;;  %v7713_v33 = vsel %vm930_vm0, %v2538_v51, 0.0  ;;  %v7716_v56 = vsel %vm930_vm0, %v2540_v60, 0.0  ;;  %v1109_v3 = vrot.slane %v7663_v54, %v7074_v14 }
  0x9f   : > { %v2659_v25 = vadd.f32 %v2658_v50, %v2657_v0  ;;  %v1511_v8 = vrot.slane %v1478_v45, %v7082_v20  ;;  %v1113_v32 = vrot.slane %v7663_v54, %v7076_v15  ;;  %v1117_v37 = vrot.slane %v7663_v54, %v7078_v16 }
  0xa0   : > { %v1121_v51 = vrot.slane %v7663_v54, %v7080_v17  ;;  %v1296_v53 = vrot.slane %v1288_v21, %v7082_v20  ;;  %v1303_v13 = vrot.slane %v1289_v57, %v7082_v20  ;;  %v1479_v10 = vmul.f32 %v1287_v28, %v1032_v31 }
  0xa1   : > { %v2661_v1 = vadd.f32 %v2660_v49, %v2659_v25  ;;  %v1518_v44 = vrot.slane %v1504_v55, %v7082_v20  ;;  %v7734_v46 = vsel %vm930_vm0, %v2547_v24, 0.0  ;;  %v1125_v19 = vrot.slane %v7719_v62, %v7061_v4  ;;  %v7747_v24 = vld [vmem:[%s7059_s16 + $0x49] sm:$0xff] }
  0xa2   : > { %v1129_v60 = vrot.slane %v7719_v62, %v7063_v5  ;;  %v1133_v54 = vrot.slane %v7719_v62, %v7065_v6  ;;  %v1137_v59 = vrot.slane %v7719_v62, %v7067_v7  ;;  %v1141_v9 = vrot.slane %v7719_v62, %v7074_v14 }
  0xa3   : > { %v2663_v12 = vadd.f32 %v2662_v34, %v2661_v1  ;;  %v1519_v41 = vcombine.high %v1511_v8, %v1511_v8  ;;  %v1145_v49 = vrot.slane %v7719_v62, %v7076_v15  ;;  %v1305_v27 = vcombine.low %v1109_v3, %v1113_v32 }
  0xa4   : > { %v1306_v47 = vcombine.low %v1117_v37, %v1121_v51  ;;  %v1304_v34 = vcombine.low %v1296_v53, %v1303_v13  ;;  %v1520_v58 = vcombine.high %v1518_v44, %v1518_v44  ;;  %v1521_v30 = vcombine.high %v1479_v10, %v1479_v10 }
  0xa5   : > { %v2665_v50 = vadd.f32 %v2664_v63, %v2663_v12  ;;  %v1528_v23 = vrot.slane %v1479_v10, %v7082_v20  ;;  %v1149_v26 = vrot.slane %v7719_v62, %v7078_v16  ;;  %v1153_v38 = vrot.slane %v7719_v62, %v7080_v17 }
  0xa6   : > { %v1764_v61 = vsel %vm930_vm0, %v1511_v8, 0.0  ;;  %v1157_v63 = vrot.slane %v7747_v24, %v7061_v4  ;;  %v1161_v45 = vrot.slane %v7747_v24, %v7063_v5  ;;  %v1765_v0 = vsel %vm930_vm0, %v1519_v41, 0.0 }
  0xa7   : > { %v2667_v35 = vadd.f32 %v2666_v18, %v2665_v50  ;;  %v1767_v28 = vsel %vm930_vm0, %v1518_v44, 0.0  ;;  %v1313_v21 = vrot.slane %v1305_v27, %v7082_v20  ;;  %v1320_v57 = vrot.slane %v1306_v47, %v7082_v20 }
  0xa8   : > { %v1766_v55 = vadd.f32 %v1765_v0, %v1764_v61  ;;  %v1480_v25 = vmul.f32 %v1304_v34, %v1033_v29  ;;  %v1535_v31 = vrot.slane %v1521_v30, %v7082_v20  ;;  %v1536_v3 = vcombine.high %v1528_v23, %v1528_v23 }
  0xa9   : > { %v2669_v18 = vadd.f32 %v2668_v42, %v2667_v35  ;;  %v1769_v8 = vsel %vm930_vm0, %v1520_v58, 0.0  ;;  %v1165_v32 = vrot.slane %v7747_v24, %v7065_v6  ;;  %v1169_v42 = vrot.slane %v7747_v24, %v7067_v7  ;;  %v1034_v35 = vld [vmem:[%s7094_s20 + $0x7a] sm:$0xff] }
  0xaa   : > { %v1768_v37 = vadd.f32 %v1767_v28, %v1766_v55  ;;  %v1173_v51 = vrot.slane %v7747_v24, %v7074_v14  ;;  %v1177_v53 = vrot.slane %v7747_v24, %v7076_v15  ;;  %v1322_v13 = vcombine.low %v1125_v19, %v1129_v60 }
  0xab   : > { %v2671_v1 = vadd.f32 %v7685_v43, %v2669_v18  ;;  %v1771_v10 = vsel %vm930_vm0, %v1528_v23, 0.0  ;;  %v7780_v43 = vld [vmem:[%s7059_s16 + $0x51] sm:$0xff]  ;;  %v1321_v12 = vcombine.low %v1313_v21, %v1320_v57  ;;  %v1323_v41 = vcombine.low %v1133_v54, %v1137_v59 }
  0xac   : > { %v1770_v50 = vadd.f32 %v1769_v8, %v1768_v37  ;;  %v1537_v27 = vcombine.high %v1535_v31, %v1535_v31  ;;  %v1538_v47 = vcombine.high %v1480_v25, %v1480_v25  ;;  %v1545_v34 = vrot.slane %v1480_v25, %v7082_v20  ;;  %v7808_v8 = vld [vmem:[%s7059_s16 + $0x59] sm:$0xff] }
  0xad   : > { %v2673_v44 = vadd.f32 %v7688_v36, %v2671_v1  ;;  %v1773_v58 = vsel %vm930_vm0, %v1536_v3, 0.0  ;;  %v1181_v19 = vrot.slane %v7747_v24, %v7078_v16  ;;  %v1185_v36 = vrot.slane %v7747_v24, %v7080_v17 }
  0xae   : > { %v1772_v60 = vadd.f32 %v1771_v10, %v1770_v50  ;;  %v1189_v54 = vrot.slane %v7780_v43, %v7061_v4  ;;  %v1193_v59 = vrot.slane %v7780_v43, %v7063_v5  ;;  %v1197_v23 = vrot.slane %v7780_v43, %v7065_v6 }
  0xaf   : > { %v2675_v30 = vadd.f32 %v7691_v22, %v2673_v44  ;;  %v1775_v22 = vsel %vm930_vm0, %v1535_v31, 0.0  ;;  %v1330_v61 = vrot.slane %v1322_v13, %v7082_v20  ;;  %v1337_v0 = vrot.slane %v1323_v41, %v7082_v20 }
  0xb0   : > { %v1774_v28 = vadd.f32 %v1773_v58, %v1772_v60  ;;  %v1481_v18 = vmul.f32 %v1321_v12, %v1034_v35  ;;  %v1552_v21 = vrot.slane %v1538_v47, %v7082_v20  ;;  %v1553_v57 = vcombine.high %v1545_v34, %v1545_v34  ;;  %v1035_v35 = vld [vmem:[%s7094_s20 + $0x82] sm:$0xff] }
  0xb1   : > { %v2677_v29 = vadd.f32 %v7694_v48, %v2675_v30  ;;  %v1777_v55 = vsel %vm930_vm0, %v1537_v27, 0.0  ;;  %v1201_v3 = vrot.slane %v7780_v43, %v7067_v7  ;;  %v1205_v31 = vrot.slane %v7780_v43, %v7074_v14 }
  0xb2   : > { %v1776_v48 = vadd.f32 %v1775_v22, %v1774_v28  ;;  %v1209_v1 = vrot.slane %v7780_v43, %v7076_v15  ;;  %v1213_v37 = vrot.slane %v7780_v43, %v7078_v16  ;;  %v1779_v13 = vsel %vm930_vm0, %v1545_v34, 0.0 }
  0xb3   : > { %v2679_v25 = vadd.f32 %v7697_v2, %v2677_v29  ;;  %v1339_v2 = vcombine.low %v1141_v9, %v1145_v49  ;;  %v1338_v44 = vcombine.low %v1330_v61, %v1337_v0  ;;  %v1340_v12 = vcombine.low %v1149_v26, %v1153_v38 }
  0xb4   : > { %v1778_v41 = vadd.f32 %v1777_v55, %v1776_v48  ;;  %v1554_v50 = vcombine.high %v1552_v21, %v1552_v21  ;;  %v1555_v27 = vcombine.high %v1481_v18, %v1481_v18  ;;  %v1562_v47 = vrot.slane %v1481_v18, %v7082_v20 }
  0xb5   : > { %v2681_v10 = vadd.f32 %v7700_v39, %v2679_v25  ;;  %v1781_v58 = vsel %vm930_vm0, %v1553_v57, 0.0  ;;  %v1217_v62 = vrot.slane %v7780_v43, %v7080_v17  ;;  %v1221_v9 = vrot.slane %v7808_v8, %v7061_v4 }
  0xb6   : > { %v1780_v49 = vadd.f32 %v1779_v13, %v1778_v41  ;;  %v1225_v39 = vrot.slane %v7808_v8, %v7063_v5  ;;  %v1229_v26 = vrot.slane %v7808_v8, %v7065_v6  ;;  %v1783_v38 = vsel %vm930_vm0, %v1552_v21, 0.0 }
  0xb7   : > { %v2683_v30 = vadd.f32 %v7703_v52, %v2681_v10  ;;  %v1356_v52 = vcombine.low %v1157_v63, %v1161_v45  ;;  %v1347_v60 = vrot.slane %v1339_v2, %v7082_v20  ;;  %v1354_v22 = vrot.slane %v1340_v12, %v7082_v20 }
  0xb8   : > { %v1782_v29 = vadd.f32 %v1781_v58, %v1780_v49  ;;  %v1482_v61 = vmul.f32 %v1338_v44, %v1035_v35  ;;  %v1569_v0 = vrot.slane %v1555_v27, %v7082_v20  ;;  %v1570_v28 = vcombine.high %v1562_v47, %v1562_v47 }
  0xb9   : > { %v2685_v34 = vadd.f32 %v7706_v11, %v2683_v30  ;;  %v1785_v18 = vsel %vm930_vm0, %v1554_v50, 0.0  ;;  %v1233_v63 = vrot.slane %v7808_v8, %v7067_v7  ;;  %v1357_v11 = vcombine.low %v1165_v32, %v1169_v42  ;;  %v1036_v50 = vld [vmem:[%s7094_s20 + $0x8a] sm:$0xff] }
  0xba   : > { %v1784_v45 = vadd.f32 %v1783_v38, %v1782_v29  ;;  %v1237_v21 = vrot.slane %v7808_v8, %v7074_v14  ;;  %v1241_v55 = vrot.slane %v7808_v8, %v7076_v15  ;;  %v1787_v25 = vsel %vm930_vm0, %v1562_v47, 0.0 }
  0xbb   : > { %v2687_v57 = vadd.f32 %v7709_v40, %v2685_v34  ;;  %v1245_v40 = vrot.slane %v7808_v8, %v7078_v16  ;;  %v1355_v2 = vcombine.low %v1347_v60, %v1354_v22  ;;  %v1364_v13 = vrot.slane %v1356_v52, %v7082_v20 }
  0xbc   : > { %v1786_v10 = vadd.f32 %v1785_v18, %v1784_v45  ;;  %v1571_v44 = vcombine.high %v1569_v0, %v1569_v0  ;;  %v1572_v32 = vcombine.high %v1482_v61, %v1482_v61  ;;  %v1579_v42 = vrot.slane %v1482_v61, %v7082_v20  ;;  %v1037_v61 = vld [vmem:[%s7094_s20 + $0x92] sm:$0xff] }
  0xbd   : > { %v2689_v48 = vadd.f32 %v7713_v33, %v2687_v57  ;;  %v1789_v12 = vsel %vm930_vm0, %v1570_v28, 0.0  ;;  %v1371_v27 = vrot.slane %v1357_v11, %v7082_v20  ;;  %v1373_v33 = vcombine.low %v1173_v51, %v1177_v53 }
  0xbe   : > { %v1788_v47 = vadd.f32 %v1787_v25, %v1786_v10  ;;  %v1374_v58 = vcombine.low %v1181_v19, %v1185_v36  ;;  %v1391_v30 = vcombine.low %v1197_v23, %v1201_v3  ;;  %v1791_v51 = vsel %vm930_vm0, %v1569_v0, 0.0 }
  0xbf   : > { %v2691_v41 = vadd.f32 %v7716_v56, %v2689_v48  ;;  %v1390_v56 = vcombine.low %v1189_v54, %v1193_v59  ;;  %v1249_v35 = vrot.slane %v7808_v8, %v7080_v17  ;;  %v1407_v24 = vcombine.low %v1205_v31, %v1209_v1 }
  0xc0   : > { %v1790_v19 = vadd.f32 %v1789_v12, %v1788_v47  ;;  %v1483_v36 = vmul.f32 %v1355_v2, %v1036_v50  ;;  %v1586_v49 = vrot.slane %v1572_v32, %v7082_v20  ;;  %v1587_v52 = vcombine.high %v1579_v42, %v1579_v42  ;;  %v1039_v12 = vld [vmem:[%s7094_s20 + $0xa2] sm:$0xff] }
  0xc1   : > { %v2693_v53 = vadd.f32 %v7734_v46, %v2691_v41  ;;  %v1793_v54 = vsel %vm930_vm0, %v1571_v44, 0.0  ;;  %v1372_v59 = vcombine.low %v1364_v13, %v1371_v27  ;;  %v1381_v23 = vrot.slane %v1373_v33, %v7082_v20  ;;  %v1040_v41 = vld [vmem:[%s7094_s20 + $0xaa] sm:$0xff] }
  0xc2   : > { %v1408_v46 = vcombine.low %v1213_v37, %v1217_v62  ;;  %v1792_v3 = vadd.f32 %v1791_v51, %v1790_v19  ;;  %v1388_v8 = vrot.slane %v1374_v58, %v7082_v20  ;;  %v1398_v31 = vrot.slane %v1390_v56, %v7082_v20 }
  0xc3   : > { %2694 = vadd.xlane.f32.xlu1 %v2693_v53  ;;  %v1405_v1 = vrot.slane %v1391_v30, %v7082_v20  ;;  %v1795_v38 = vsel %vm930_vm0, %v1579_v42, 0.0  ;;  %v1415_v34 = vrot.slane %v1407_v24, %v7082_v20  ;;  %v1424_v60 = vcombine.low %v1221_v9, %v1225_v39  ;;  %v1038_v9 = vld [vmem:[%s7094_s20 + $0x9a] sm:$0xff] }
  0xc4   : > { %v1589_v22 = vcombine.high %v1483_v36, %v1483_v36  ;;  %v1794_v29 = vadd.f32 %v1793_v54, %v1792_v3  ;;  %v1425_v0 = vcombine.low %v1229_v26, %v1233_v63  ;;  %v1588_v28 = vcombine.high %v1586_v49, %v1586_v49  ;;  %v1042_v3 = vld [vmem:[%s7094_s20 + $0xba] sm:$0xff] }
  0xc5   : > { %v1596_v43 = vrot.slane %v1483_v36, %v7082_v20  ;;  %v1797_v37 = vsel %vm930_vm0, %v1587_v52, 0.0  ;;  %v1422_v62 = vrot.slane %v1408_v46, %v7082_v20  ;;  %v1441_v18 = vcombine.low %v1237_v21, %v1241_v55  ;;  %v6958_v55 = vld [vmem:[%s7059_s16 + $0x61] ss:$0 sm:$0xff]  ;;  %v1041_v52 = vld [vmem:[%s7094_s20 + $0xb2] sm:$0xff] }
  0xc6   : > { %v1442_v57 = vcombine.low %v1245_v40, %v1249_v35  ;;  %v1796_v11 = vadd.f32 %v1795_v38, %v1794_v29  ;;  %v1389_v45 = vcombine.low %v1381_v23, %v1388_v8  ;;  %v1799_v25 = vsel %vm930_vm0, %v1586_v49, 0.0  ;;  %v2710_v49 = vld [vmem:[%s7059_s16 + $0x93] sm:$0xff]  ;;  %v1043_v8 = vld [vmem:[%s7094_s20 + $0xc2] sm:$0x3] }
  0xc7   : > { %v1406_v39 = vcombine.low %v1398_v31, %v1405_v1  ;;  %v1484_v48 = vmul.f32 %v1372_v59, %v1037_v61  ;;  %v1603_v26 = vrot.slane %v1589_v22, %v7082_v20  ;;  %v1432_v2 = vrot.slane %v1424_v60, %v7082_v20 }
  0xc8   : > { %v1798_v63 = vadd.f32 %v1797_v37, %v1796_v11  ;;  %v1439_v13 = vrot.slane %v1425_v0, %v7082_v20  ;;  %v1604_v10 = vcombine.high %v1596_v43, %v1596_v43  ;;  %v1801_v21 = vsel %vm930_vm0, %v1588_v28, 0.0 }
  0xc9   : > { %v1423_v40 = vcombine.low %v1415_v34, %v1422_v62  ;;  %v1449_v44 = vrot.slane %v1441_v18, %v7082_v20  ;;  %v1456_v32 = vrot.slane %v1442_v57, %v7082_v20  ;;  %v1485_v50 = vmul.f32 %v1389_v45, %v1038_v9 }
  0xca   : > { %v1800_v42 = vadd.f32 %v1799_v25, %v1798_v63  ;;  %v1606_v27 = vcombine.high %v1484_v48, %v1484_v48  ;;  %v1803_v33 = vsel %vm930_vm0, %v1596_v43, 0.0  ;;  %v1605_v47 = vcombine.high %v1603_v26, %v1603_v26 }
  0xcb   : > { %v1613_v58 = vrot.slane %v1484_v48, %v7082_v20  ;;  %v1440_v30 = vcombine.low %v1432_v2, %v1439_v13  ;;  %v1464_v51 = vrot.slane %v6958_v55, %v7082_v20  ;;  %v1805_v53 = vsel %vm930_vm0, %v1604_v10, 0.0 }
  0xcc   : > { %v1802_v56 = vadd.f32 %v1801_v21, %v1800_v42  ;;  %v1457_v35 = vcombine.low %v1449_v44, %v1456_v32  ;;  %v1486_v24 = vmul.f32 %v1406_v39, %v1039_v12  ;;  %v1487_v19 = vmul.f32 %v1423_v40, %v1040_v41 }
  0xcd   : > { %v1620_v54 = vrot.slane %v1606_v27, %v7082_v20  ;;  %v1623_v59 = vcombine.high %v1485_v50, %v1485_v50  ;;  %v1630_v23 = vrot.slane %v1485_v50, %v7082_v20  ;;  %v1807_v46 = vsel %vm930_vm0, %v1603_v26, 0.0 }
  0xce   : > { %v1804_v36 = vadd.f32 %v1803_v33, %v1802_v56  ;;  %v1621_v31 = vcombine.high %v1613_v58, %v1613_v58  ;;  %v1640_v1 = vcombine.high %v1486_v24, %v1486_v24  ;;  %v1809_v34 = vsel %vm930_vm0, %v1605_v47, 0.0 }
  0xcf   : > { %v2727_v60 = vrot.slane %v2710_v49, %v7061_v4  ;;  %v2731_v22 = vrot.slane %v2710_v49, %v7063_v5  ;;  %v2735_v29 = vrot.slane %v2710_v49, %v7065_v6  ;;  %v2739_v61 = vrot.slane %v2710_v49, %v7067_v7 }
  0xd0   : > { %v1806_v38 = vadd.f32 %v1805_v53, %v1804_v36  ;;  %v1488_v0 = vmul.f32 %v1440_v30, %v1041_v52  ;;  %v1657_v28 = vcombine.high %v1487_v19, %v1487_v19  ;;  %v1489_v37 = vmul.f32 %v1457_v35, %v1042_v3 }
  0xd1   : > { %v7936_v62 = vmul.f32 %v1464_v51, %v1043_v8  ;;  %v1637_v18 = vrot.slane %v1623_v59, %v7082_v20  ;;  %v1811_v57 = vsel %vm930_vm0, %v1613_v58, 0.0  ;;  %v1622_v11 = vcombine.high %v1620_v54, %v1620_v54 }
  0xd2   : > { %v1808_v43 = vadd.f32 %v1807_v46, %v1806_v38  ;;  %v1638_v45 = vcombine.high %v1630_v23, %v1630_v23  ;;  %v1647_v25 = vrot.slane %v1486_v24, %v7082_v20  ;;  %v1654_v39 = vrot.slane %v1640_v1, %v7082_v20 }
  0xd3   : > { %v1813_v48 = vsel %vm930_vm0, %v1621_v31, 0.0  ;;  %v2920_v26 = vcombine.low %v2727_v60, %v2731_v22  ;;  %v2921_v63 = vcombine.low %v2735_v29, %v2739_v61  ;;  %v1664_v2 = vrot.slane %v1487_v19, %v7082_v20  ;;  %v7956_v19 = vld [vmem:[%s7059_s16 + $0x9b] sm:$0xff] }
  0xd4   : > { %v1810_v9 = vadd.f32 %v1809_v34, %v1808_v43  ;;  %v1671_v13 = vrot.slane %v1657_v28, %v7082_v20  ;;  %v1815_v21 = vsel %vm930_vm0, %v1620_v54, 0.0  ;;  %v2743_v55 = vrot.slane %v2710_v49, %v7074_v14  ;;  %v2697_v34 = vld [vmem:[%s7094_s20 + $0x126] sm:$0xff] }
  0xd5   : > { %v2747_v40 = vrot.slane %v2710_v49, %v7076_v15  ;;  %v2751_v44 = vrot.slane %v2710_v49, %v7078_v16  ;;  %v2755_v32 = vrot.slane %v2710_v49, %v7080_v17  ;;  %v1639_v42 = vcombine.high %v1637_v18, %v1637_v18 }
  0xd6   : > { %v1812_v10 = vadd.f32 %v1811_v57, %v1810_v9  ;;  %v1674_v12 = vcombine.high %v1488_v0, %v1488_v0  ;;  %v1691_v41 = vcombine.high %v1489_v37, %v1489_v37  ;;  %v1681_v27 = vrot.slane %v1488_v0, %v7082_v20 }
  0xd7   : > { %v1817_v33 = vsel %vm930_vm0, %v1622_v11, 0.0  ;;  %v2928_v47 = vrot.slane %v2920_v26, %v7082_v20  ;;  %v2935_v58 = vrot.slane %v2921_v63, %v7082_v20  ;;  %v1655_v56 = vcombine.high %v1647_v25, %v1647_v25 }
  0xd8   : > { %v1814_v50 = vadd.f32 %v1813_v48, %v1812_v10  ;;  %v1656_v30 = vcombine.high %v1654_v39, %v1654_v39  ;;  %v1672_v51 = vcombine.high %v1664_v2, %v1664_v2  ;;  %v1673_v35 = vcombine.high %v1671_v13, %v1671_v13 }
  0xd9   : > { %v1819_v24 = vsel %vm930_vm0, %v1630_v23, 0.0  ;;  %v2937_v36 = vcombine.low %v2743_v55, %v2747_v40  ;;  %v2938_v49 = vcombine.low %v2751_v44, %v2755_v32  ;;  %v1688_v52 = vrot.slane %v1674_v12, %v7082_v20 }
  0xda   : > { %v1816_v53 = vadd.f32 %v1815_v21, %v1814_v50  ;;  %v1698_v54 = vrot.slane %v1489_v37, %v7082_v20  ;;  %v1705_v59 = vrot.slane %v1691_v41, %v7082_v20  ;;  %v1689_v3 = vcombine.high %v1681_v27, %v1681_v27  ;;  %v2698_v41 = vld [vmem:[%s7094_s20 + $0x12e] sm:$0xff] }
  0xdb   : > { %v1714_v8 = vrot.slane %v7936_v62, %v7082_v20  ;;  %v1821_v31 = vsel %vm930_vm0, %v1638_v45, 0.0  ;;  %v2936_v1 = vcombine.low %v2928_v47, %v2935_v58  ;;  %v1823_v23 = vsel %vm930_vm0, %v1637_v18, 0.0 }
  0xdc   : > { %v1818_v46 = vadd.f32 %v1817_v33, %v1816_v53  ;;  %v2759_v60 = vrot.slane %v7956_v19, %v7061_v4  ;;  %v2763_v22 = vrot.slane %v7956_v19, %v7063_v5  ;;  %v2767_v29 = vrot.slane %v7956_v19, %v7065_v6 }
  0xdd   : > { %v2771_v61 = vrot.slane %v7956_v19, %v7067_v7  ;;  %v2945_v0 = vrot.slane %v2937_v36, %v7082_v20  ;;  %v2952_v28 = vrot.slane %v2938_v49, %v7082_v20  ;;  %v1690_v43 = vcombine.high %v1688_v52, %v1688_v52 }
  0xde   : > { %v1820_v38 = vadd.f32 %v1819_v24, %v1818_v46  ;;  %v1706_v37 = vcombine.high %v1698_v54, %v1698_v54  ;;  %v1707_v62 = vcombine.high %v1705_v59, %v1705_v59  ;;  %v1825_v57 = vsel %vm930_vm0, %v1639_v42, 0.0 }
  0xdf   : > { %v1827_v11 = vsel %vm930_vm0, %v1647_v25, 0.0  ;;  %v1829_v45 = vsel %vm930_vm0, %v1655_v56, 0.0  ;;  %v3144_v9 = vmul.f32 %v2936_v1, %v2697_v34  ;;  %v1831_v26 = vsel %vm930_vm0, %v1654_v39, 0.0 }
  0xe0   : > { %v1822_v18 = vadd.f32 %v1821_v31, %v1820_v38  ;;  %v1833_v63 = vsel %vm930_vm0, %v1656_v30, 0.0  ;;  %v1835_v10 = vsel %vm930_vm0, %v1664_v2, 0.0  ;;  %v2953_v21 = vcombine.low %v2945_v0, %v2952_v28  ;;  %v8025_v31 = vld [vmem:[%s7059_s16 + $0xa3] sm:$0xff] }
  0xe1   : > { %v2954_v55 = vcombine.low %v2759_v60, %v2763_v22  ;;  %v2955_v40 = vcombine.low %v2767_v29, %v2771_v61  ;;  %v3170_v44 = vcombine.high %v3144_v9, %v3144_v9  ;;  %v1837_v42 = vsel %vm930_vm0, %v1672_v51, 0.0 }
  0xe2   : > { %v1824_v48 = vadd.f32 %v1823_v23, %v1822_v18  ;;  %v1839_v12 = vsel %vm930_vm0, %v1671_v13, 0.0  ;;  %v7985_v25 = vsel %vm930_vm0, %v1673_v35, 0.0  ;;  %v7989_v50 = vsel %vm930_vm0, %v1681_v27, 0.0 }
  0xe3   : > { %v7992_v39 = vsel %vm930_vm0, %v1689_v3, 0.0  ;;  %v2775_v2 = vrot.slane %v7956_v19, %v7074_v14  ;;  %v3177_v33 = vrot.slane %v3144_v9, %v7082_v20  ;;  %v2779_v13 = vrot.slane %v7956_v19, %v7076_v15 }
  0xe4   : > { %v1826_v32 = vadd.f32 %v1825_v57, %v1824_v48  ;;  %v2783_v58 = vrot.slane %v7956_v19, %v7078_v16  ;;  %v2787_v27 = vrot.slane %v7956_v19, %v7080_v17  ;;  %v2962_v56 = vrot.slane %v2954_v55, %v7082_v20 }
  0xe5   : > { %v2969_v30 = vrot.slane %v2955_v40, %v7082_v20  ;;  %v3145_v51 = vmul.f32 %v2953_v21, %v2698_v41  ;;  %v3184_v53 = vrot.slane %v3170_v44, %v7082_v20  ;;  %v8007_v24 = vsel %vm930_vm0, %v1688_v52, 0.0 }
  0xe6   : > { %v1828_v47 = vadd.f32 %v1827_v11, %v1826_v32  ;;  %v8010_v36 = vsel %vm930_vm0, %v1690_v43, 0.0  ;;  %v8013_v49 = vsel %vm930_vm0, %v1698_v54, 0.0  ;;  %v8016_v19 = vsel %vm930_vm0, %v1706_v37, 0.0  ;;  %v8052_v32 = vld [vmem:[%s7059_s16 + $0xab] sm:$0xff] }
  0xe7   : > { %v8019_v46 = vsel %vm930_vm0, %v1705_v59, 0.0  ;;  %v8022_v3 = vsel %vm930_vm0, %v1707_v62, 0.0  ;;  %v3185_v52 = vcombine.high %v3177_v33, %v3177_v33  ;;  %v8028_v38 = vsel %vm930_vm0, %v1714_v8, 0.0  ;;  %v2699_v59 = vld [vmem:[%s7094_s20 + $0x136] sm:$0xff] }
  0xe8   : > { %v1830_v35 = vadd.f32 %v1829_v45, %v1828_v47  ;;  %v2971_v23 = vcombine.low %v2775_v2, %v2779_v13  ;;  %v2972_v34 = vcombine.low %v2783_v58, %v2787_v27  ;;  %v2970_v54 = vcombine.low %v2962_v56, %v2969_v30 }
  0xe9   : > { %v3186_v60 = vcombine.high %v3184_v53, %v3184_v53  ;;  %v3187_v22 = vcombine.high %v3145_v51, %v3145_v51  ;;  %v3194_v29 = vrot.slane %v3145_v51, %v7082_v20  ;;  %v2791_v0 = vrot.slane %v8025_v31, %v7061_v4 }
  0xea   : > { %v1832_v1 = vadd.f32 %v1831_v26, %v1830_v35  ;;  %v2795_v28 = vrot.slane %v8025_v31, %v7063_v5  ;;  %v3430_v43 = vsel %vm930_vm0, %v3177_v33, 0.0  ;;  %v2799_v8 = vrot.slane %v8025_v31, %v7065_v6 }
  0xeb   : > { %v2803_v37 = vrot.slane %v8025_v31, %v7067_v7  ;;  %v3431_v62 = vsel %vm930_vm0, %v3185_v52, 0.0  ;;  %v3433_v18 = vsel %vm930_vm0, %v3184_v53, 0.0  ;;  %v2979_v11 = vrot.slane %v2971_v23, %v7082_v20  ;;  %v2700_v52 = vld [vmem:[%s7094_s20 + $0x13e] sm:$0xff] }
  0xec   : > { %v1834_v61 = vadd.f32 %v1833_v63, %v1832_v1  ;;  %v2986_v45 = vrot.slane %v2972_v34, %v7082_v20  ;;  %v3432_v9 = vadd.f32 %v3431_v62, %v3430_v43  ;;  %v3146_v48 = vmul.f32 %v2970_v54, %v2699_v59 }
  0xed   : > { %v3201_v26 = vrot.slane %v3187_v22, %v7082_v20  ;;  %v3202_v63 = vcombine.high %v3194_v29, %v3194_v29  ;;  %v3435_v21 = vsel %vm930_vm0, %v3186_v60, 0.0  ;;  %v2807_v40 = vrot.slane %v8025_v31, %v7074_v14  ;;  %v8076_v22 = vld [vmem:[%s7059_s16 + $0xb3] sm:$0xff] }
  0xee   : > { %v1836_v57 = vadd.f32 %v1835_v10, %v1834_v61  ;;  %v2811_v44 = vrot.slane %v8025_v31, %v7076_v15  ;;  %v3434_v10 = vadd.f32 %v3433_v18, %v3432_v9  ;;  %v2815_v41 = vrot.slane %v8025_v31, %v7078_v16 }
  0xef   : > { %v2819_v2 = vrot.slane %v8025_v31, %v7080_v17  ;;  %v2988_v33 = vcombine.low %v2791_v0, %v2795_v28  ;;  %v3437_v47 = vsel %vm930_vm0, %v3194_v29, 0.0  ;;  %v2987_v13 = vcombine.low %v2979_v11, %v2986_v45 }
  0xf0   : > { %v1838_v55 = vadd.f32 %v1837_v42, %v1836_v57  ;;  %v2989_v58 = vcombine.low %v2799_v8, %v2803_v37  ;;  %v3436_v27 = vadd.f32 %v3435_v21, %v3434_v10  ;;  %v3203_v56 = vcombine.high %v3201_v26, %v3201_v26 }
  0xf1   : > { %v3204_v30 = vcombine.high %v3146_v48, %v3146_v48  ;;  %v3211_v51 = vrot.slane %v3146_v48, %v7082_v20  ;;  %v3439_v53 = vsel %vm930_vm0, %v3202_v63, 0.0  ;;  %v2823_v31 = vrot.slane %v8052_v32, %v7061_v4 }
  0xf2   : > { %v1840_v42 = vadd.f32 %v1839_v12, %v1838_v55  ;;  %v2827_v1 = vrot.slane %v8052_v32, %v7063_v5  ;;  %v3438_v12 = vadd.f32 %v3437_v47, %v3436_v27  ;;  %v2831_v23 = vrot.slane %v8052_v32, %v7065_v6  ;;  %v8110_v27 = vld [vmem:[%s7059_s16 + $0xbb] sm:$0xff] }
  0xf3   : > { %v2835_v34 = vrot.slane %v8052_v32, %v7067_v7  ;;  %v2839_v54 = vrot.slane %v8052_v32, %v7074_v14  ;;  %v3441_v60 = vsel %vm930_vm0, %v3201_v26, 0.0  ;;  %v2996_v29 = vrot.slane %v2988_v33, %v7082_v20 }
  0xf4   : > { %v1842_v35 = vadd.f32 %v7985_v25, %v1840_v42  ;;  %v3003_v61 = vrot.slane %v2989_v58, %v7082_v20  ;;  %v3440_v59 = vadd.f32 %v3439_v53, %v3438_v12  ;;  %v3147_v0 = vmul.f32 %v2987_v13, %v2700_v52  ;;  %v2701_v42 = vld [vmem:[%s7094_s20 + $0x146] sm:$0xff] }
  0xf5   : > { %v3218_v28 = vrot.slane %v3204_v30, %v7082_v20  ;;  %v3219_v43 = vcombine.high %v3211_v51, %v3211_v51  ;;  %v3443_v8 = vsel %vm930_vm0, %v3203_v56, 0.0  ;;  %v2843_v62 = vrot.slane %v8052_v32, %v7076_v15 }
  0xf6   : > { %v1844_v25 = vadd.f32 %v7989_v50, %v1842_v35  ;;  %v2847_v50 = vrot.slane %v8052_v32, %v7078_v16  ;;  %v3442_v18 = vadd.f32 %v3441_v60, %v3440_v59  ;;  %v2851_v57 = vrot.slane %v8052_v32, %v7080_v17 }
  0xf7   : > { %v2855_v11 = vrot.slane %v8076_v22, %v7061_v4  ;;  %v3005_v45 = vcombine.low %v2807_v40, %v2811_v44  ;;  %v3445_v9 = vsel %vm930_vm0, %v3211_v51, 0.0  ;;  %v3006_v26 = vcombine.low %v2815_v41, %v2819_v2 }
  0xf8   : > { %v1846_v37 = vadd.f32 %v7992_v39, %v1844_v25  ;;  %v3004_v39 = vcombine.low %v2996_v29, %v3003_v61  ;;  %v3444_v63 = vadd.f32 %v3443_v8, %v3442_v18  ;;  %v3220_v21 = vcombine.high %v3218_v28, %v3218_v28 }
  0xf9   : > { %v3221_v55 = vcombine.high %v3147_v0, %v3147_v0  ;;  %v3228_v10 = vrot.slane %v3147_v0, %v7082_v20  ;;  %v3447_v33 = vsel %vm930_vm0, %v3219_v43, 0.0  ;;  %v2859_v40 = vrot.slane %v8076_v22, %v7063_v5 }
  0xfa   : > { %v1848_v48 = vadd.f32 %v8007_v24, %v1846_v37  ;;  %v2863_v44 = vrot.slane %v8076_v22, %v7065_v6  ;;  %v3446_v24 = vadd.f32 %v3445_v9, %v3444_v63  ;;  %v2867_v41 = vrot.slane %v8076_v22, %v7067_v7 }
  0xfb   : > { %v2871_v2 = vrot.slane %v8076_v22, %v7074_v14  ;;  %v2875_v13 = vrot.slane %v8076_v22, %v7076_v15  ;;  %v3449_v58 = vsel %vm930_vm0, %v3218_v28, 0.0  ;;  %v3013_v56 = vrot.slane %v3005_v45, %v7082_v20 }
  0xfc   : > { %v1850_v47 = vadd.f32 %v8010_v36, %v1848_v48  ;;  %v3020_v30 = vrot.slane %v3006_v26, %v7082_v20  ;;  %v3448_v51 = vadd.f32 %v3447_v33, %v3446_v24  ;;  %v3148_v53 = vmul.f32 %v3004_v39, %v2701_v42  ;;  %v2702_v26 = vld [vmem:[%s7094_s20 + $0x14e] sm:$0xff] }
  0xfd   : > { %v3235_v35 = vrot.slane %v3221_v55, %v7082_v20  ;;  %v3236_v52 = vcombine.high %v3228_v10, %v3228_v10  ;;  %v3451_v12 = vsel %vm930_vm0, %v3220_v21, 0.0  ;;  %v2879_v25 = vrot.slane %v8076_v22, %v7078_v16 }
  0xfe   : > { %v1852_v36 = vadd.f32 %v8013_v49, %v1850_v47  ;;  %v2883_v49 = vrot.slane %v8076_v22, %v7080_v17  ;;  %v3450_v29 = vadd.f32 %v3449_v58, %v3448_v51  ;;  %v2887_v61 = vrot.slane %v8110_v27, %v7061_v4 }
  0xff   : > { %v2891_v59 = vrot.slane %v8110_v27, %v7063_v5  ;;  %v3022_v0 = vcombine.low %v2823_v31, %v2827_v1  ;;  %v3453_v28 = vsel %vm930_vm0, %v3228_v10, 0.0  ;;  %v3023_v8 = vcombine.low %v2831_v23, %v2835_v34 }
 0x100   : > { %v1854_v60 = vadd.f32 %v8016_v19, %v1852_v36  ;;  %v3021_v19 = vcombine.low %v3013_v56, %v3020_v30  ;;  %v3452_v37 = vadd.f32 %v3451_v12, %v3450_v29  ;;  %v3237_v18 = vcombine.high %v3235_v35, %v3235_v35 }
 0x101   : > { %v3238_v45 = vcombine.high %v3148_v53, %v3148_v53  ;;  %v3245_v9 = vrot.slane %v3148_v53, %v7082_v20  ;;  %v3455_v48 = vsel %vm930_vm0, %v3236_v52, 0.0  ;;  %v2895_v63 = vrot.slane %v8110_v27, %v7065_v6  ;;  %v2703_v52 = vld [vmem:[%s7094_s20 + $0x156] sm:$0xff] }
 0x102   : > { %v1856_v43 = vadd.f32 %v8019_v46, %v1854_v60  ;;  %v2899_v31 = vrot.slane %v8110_v27, %v7067_v7  ;;  %v3454_v1 = vadd.f32 %v3453_v28, %v3452_v37  ;;  %v2903_v46 = vrot.slane %v8110_v27, %v7074_v14  ;;  %v2704_v37 = vld [vmem:[%s7094_s20 + $0x15e] sm:$0xff] }
 0x103   : > { %v3030_v23 = vrot.slane %v3022_v0, %v7082_v20  ;;  %v3039_v34 = vcombine.low %v2839_v54, %v2843_v62  ;;  %v3457_v21 = vsel %vm930_vm0, %v3235_v35, 0.0  ;;  %v3037_v55 = vrot.slane %v3023_v8, %v7082_v20 }
 0x104   : > { %v1858_v39 = vadd.f32 %v8022_v3, %v1856_v43  ;;  %v3040_v10 = vcombine.low %v2847_v50, %v2851_v57  ;;  %v3456_v33 = vadd.f32 %v3455_v48, %v3454_v1  ;;  %v3149_v47 = vmul.f32 %v3021_v19, %v2702_v26 }
 0x105   : > { %v3252_v42 = vrot.slane %v3238_v45, %v7082_v20  ;;  %v3253_v24 = vcombine.high %v3245_v9, %v3245_v9  ;;  %v3459_v58 = vsel %vm930_vm0, %v3237_v18, 0.0  ;;  %v2907_v32 = vrot.slane %v8110_v27, %v7076_v15 }
 0x106   : > { %v1860_v3 = vadd.f32 %v8028_v38, %v1858_v39  ;;  %v2911_v54 = vrot.slane %v8110_v27, %v7078_v16  ;;  %v2915_v38 = vrot.slane %v8110_v27, %v7080_v17  ;;  %v3458_v62 = vadd.f32 %v3457_v21, %v3456_v33  ;;  %v6960_v39 = vld [vmem:[%s7059_s16 + $0xc3] ss:$0 sm:$0xff] }
 0x107   : > { %v3047_v50 = vrot.slane %v3039_v34, %v7082_v20  ;;  %v3056_v57 = vcombine.low %v2855_v11, %v2859_v40  ;;  %v3057_v36 = vcombine.low %v2863_v44, %v2867_v41  ;;  %v3461_v56 = vsel %vm930_vm0, %v3245_v9, 0.0 }
 0x108   : > { %1861 = vadd.xlane.f32.xlu0 %v1860_v3  ;;  %v3038_v30 = vcombine.low %v3030_v23, %v3037_v55  ;;  %v3054_v51 = vrot.slane %v3040_v10, %v7082_v20  ;;  %v3255_v53 = vcombine.high %v3149_v47, %v3149_v47  ;;  %v3460_v35 = vadd.f32 %v3459_v58, %v3458_v62  ;;  %v2705_v58 = vld [vmem:[%s7094_s20 + $0x166] sm:$0xff] }
 0x109   : > { %v3073_v12 = vcombine.low %v2871_v2, %v2875_v13  ;;  %v3254_v60 = vcombine.high %v3252_v42, %v3252_v42  ;;  %v3262_v27 = vrot.slane %v3149_v47, %v7082_v20  ;;  %v3463_v29 = vsel %vm930_vm0, %v3253_v24, 0.0  ;;  %v3543_v24 = vld [vmem:[%s7059_s16 + $0xc4] sm:$0xff] }
 0x10a   : > { %v3074_v0 = vcombine.low %v2879_v25, %v2883_v49  ;;  %v3090_v28 = vcombine.low %v2887_v61, %v2891_v59  ;;  %v3091_v22 = vcombine.low %v2895_v63, %v2899_v31  ;;  %v3462_v11 = vadd.f32 %v3461_v56, %v3460_v35  ;;  %v2709_v56 = vld [vmem:[%s7094_s20 + $0x186] sm:$0x3] }
 0x10b   : > { %v3064_v40 = vrot.slane %v3056_v57, %v7082_v20  ;;  %v3107_v44 = vcombine.low %v2903_v46, %v2907_v32  ;;  %v3108_v41 = vcombine.low %v2911_v54, %v2915_v38  ;;  %v3465_v43 = vsel %vm930_vm0, %v3252_v42, 0.0  ;;  %v2706_v32 = vld [vmem:[%s7094_s20 + $0x16e] sm:$0xff]  ;;  %v2707_v57 = vld [vmem:[%s7094_s20 + $0x176] sm:$0xff] }
 0x10c   : > { %v3055_v19 = vcombine.low %v3047_v50, %v3054_v51  ;;  %v3150_v8 = vmul.f32 %v3038_v30, %v2703_v52  ;;  %v3269_v2 = vrot.slane %v3255_v53, %v7082_v20  ;;  %v3464_v13 = vadd.f32 %v3463_v29, %v3462_v11 }
 0x10d   : > { %v3071_v18 = vrot.slane %v3057_v36, %v7082_v20  ;;  %v3081_v25 = vrot.slane %v3073_v12, %v7082_v20  ;;  %v3270_v49 = vcombine.high %v3262_v27, %v3262_v27  ;;  %v3467_v61 = vsel %vm930_vm0, %v3254_v60, 0.0  ;;  %v2708_v36 = vld [vmem:[%s7094_s20 + $0x17e] sm:$0xff] }
 0x10e   : > { %v3088_v59 = vrot.slane %v3074_v0, %v7082_v20  ;;  %v3098_v45 = vrot.slane %v3090_v28, %v7082_v20  ;;  %v3105_v9 = vrot.slane %v3091_v22, %v7082_v20  ;;  %v3466_v48 = vadd.f32 %v3465_v43, %v3464_v13 }
 0x10f   : > { %v3115_v26 = vrot.slane %v3107_v44, %v7082_v20  ;;  %v3122_v63 = vrot.slane %v3108_v41, %v7082_v20  ;;  %v3272_v31 = vcombine.high %v3150_v8, %v3150_v8  ;;  %v3469_v1 = vsel %vm930_vm0, %v3262_v27, 0.0 }
 0x110   : > { %v3151_v46 = vmul.f32 %v3055_v19, %v2704_v37  ;;  %v3271_v23 = vcombine.high %v3269_v2, %v3269_v2  ;;  %v3279_v34 = vrot.slane %v3150_v8, %v7082_v20  ;;  %v3468_v21 = vadd.f32 %v3467_v61, %v3466_v48 }
 0x111   : > { %v3072_v3 = vcombine.low %v3064_v40, %v3071_v18  ;;  %v3471_v55 = vsel %vm930_vm0, %v3270_v49, 0.0  ;;  %v3089_v10 = vcombine.low %v3081_v25, %v3088_v59  ;;  %v3106_v33 = vcombine.low %v3098_v45, %v3105_v9 }
 0x112   : > { %v3130_v47 = vrot.slane %v6960_v39, %v7082_v20  ;;  %v3470_v42 = vadd.f32 %v3469_v1, %v3468_v21  ;;  %v3123_v54 = vcombine.low %v3115_v26, %v3122_v63  ;;  %v3286_v38 = vrot.slane %v3272_v31, %v7082_v20 }
 0x113   : > { %v3289_v62 = vcombine.high %v3151_v46, %v3151_v46  ;;  %v3473_v50 = vsel %vm930_vm0, %v3269_v2, 0.0  ;;  %v3287_v30 = vcombine.high %v3279_v34, %v3279_v34  ;;  %v3296_v51 = vrot.slane %v3151_v46, %v7082_v20 }
 0x114   : > { %v3472_v53 = vadd.f32 %v3471_v55, %v3470_v42  ;;  %v3475_v35 = vsel %vm930_vm0, %v3271_v23, 0.0  ;;  %v3560_v52 = vrot.slane %v3543_v24, %v7061_v4  ;;  %v3564_v12 = vrot.slane %v3543_v24, %v7063_v5 }
 0x115   : > { %v3568_v60 = vrot.slane %v3543_v24, %v7065_v6  ;;  %v3572_v27 = vrot.slane %v3543_v24, %v7067_v7  ;;  %v3152_v29 = vmul.f32 %v3072_v3, %v2705_v58  ;;  %v3153_v0 = vmul.f32 %v3089_v10, %v2706_v32 }
 0x116   : > { %v3474_v28 = vadd.f32 %v3473_v50, %v3472_v53  ;;  %v3154_v22 = vmul.f32 %v3106_v33, %v2707_v57  ;;  %v3155_v11 = vmul.f32 %v3123_v54, %v2708_v36  ;;  %v8192_v40 = vmul.f32 %v3130_v47, %v2709_v56 }
 0x117   : > { %v3477_v44 = vsel %vm930_vm0, %v3279_v34, 0.0  ;;  %v3288_v41 = vcombine.high %v3286_v38, %v3286_v38  ;;  %v3303_v43 = vrot.slane %v3289_v62, %v7082_v20  ;;  %v3306_v19 = vcombine.high %v3152_v29, %v3152_v29 }
 0x118   : > { %v3476_v8 = vadd.f32 %v3475_v35, %v3474_v28  ;;  %v3304_v2 = vcombine.high %v3296_v51, %v3296_v51  ;;  %v3479_v13 = vsel %vm930_vm0, %v3287_v30, 0.0  ;;  %v3753_v37 = vcombine.low %v3560_v52, %v3564_v12  ;;  %v3530_v35 = vld [vmem:[%s7094_s20 + $0x188] sm:$0xff] }
 0x119   : > { %v3754_v18 = vcombine.low %v3568_v60, %v3572_v27  ;;  %v3313_v25 = vrot.slane %v3152_v29, %v7082_v20  ;;  %v3323_v49 = vcombine.high %v3153_v0, %v3153_v0  ;;  %v3481_v59 = vsel %vm930_vm0, %v3286_v38, 0.0 }
 0x11a   : > { %v3478_v61 = vadd.f32 %v3477_v44, %v3476_v8  ;;  %v3576_v45 = vrot.slane %v3543_v24, %v7074_v14  ;;  %v3580_v9 = vrot.slane %v3543_v24, %v7076_v15  ;;  %v3584_v48 = vrot.slane %v3543_v24, %v7078_v16 }
 0x11b   : > { %v3588_v39 = vrot.slane %v3543_v24, %v7080_v17  ;;  %v3320_v26 = vrot.slane %v3306_v19, %v7082_v20  ;;  %v3330_v63 = vrot.slane %v3153_v0, %v7082_v20  ;;  %v3340_v31 = vcombine.high %v3154_v22, %v3154_v22  ;;  %v8212_v24 = vld [vmem:[%s7059_s16 + $0xcc] sm:$0xff] }
 0x11c   : > { %v3480_v1 = vadd.f32 %v3479_v13, %v3478_v61  ;;  %v3357_v46 = vcombine.high %v3155_v11, %v3155_v11  ;;  %v3483_v23 = vsel %vm930_vm0, %v3288_v41, 0.0  ;;  %v3761_v34 = vrot.slane %v3753_v37, %v7082_v20 }
 0x11d   : > { %v3768_v21 = vrot.slane %v3754_v18, %v7082_v20  ;;  %v3305_v3 = vcombine.high %v3303_v43, %v3303_v43  ;;  %v3321_v55 = vcombine.high %v3313_v25, %v3313_v25  ;;  %v3337_v10 = vrot.slane %v3323_v49, %v7082_v20 }
 0x11e   : > { %v3482_v33 = vadd.f32 %v3481_v59, %v3480_v1  ;;  %v3347_v47 = vrot.slane %v3154_v22, %v7082_v20  ;;  %v3485_v42 = vsel %vm930_vm0, %v3296_v51, 0.0  ;;  %v3770_v58 = vcombine.low %v3576_v45, %v3580_v9  ;;  %v3531_v1 = vld [vmem:[%s7094_s20 + $0x190] sm:$0xff] }
 0x11f   : > { %v3771_v32 = vcombine.low %v3584_v48, %v3588_v39  ;;  %v3322_v54 = vcombine.high %v3320_v26, %v3320_v26  ;;  %v3338_v38 = vcombine.high %v3330_v63, %v3330_v63  ;;  %v3354_v62 = vrot.slane %v3340_v31, %v7082_v20 }
 0x120   : > { %v3484_v50 = vadd.f32 %v3483_v23, %v3482_v33  ;;  %v3364_v57 = vrot.slane %v3155_v11, %v7082_v20  ;;  %v8217_v36 = vrot.slane %v3357_v46, %v7082_v20  ;;  %v3487_v56 = vsel %vm930_vm0, %v3304_v2, 0.0 }
 0x121   : > { %v3769_v30 = vcombine.low %v3761_v34, %v3768_v21  ;;  %v3489_v51 = vsel %vm930_vm0, %v3303_v43, 0.0  ;;  %v3592_v52 = vrot.slane %v8212_v24, %v7061_v4  ;;  %v3596_v12 = vrot.slane %v8212_v24, %v7063_v5 }
 0x122   : > { %v3486_v53 = vadd.f32 %v3485_v42, %v3484_v50  ;;  %v3600_v60 = vrot.slane %v8212_v24, %v7065_v6  ;;  %v3604_v27 = vrot.slane %v8212_v24, %v7067_v7  ;;  %v3778_v29 = vrot.slane %v3770_v58, %v7082_v20 }
 0x123   : > { %v3785_v0 = vrot.slane %v3771_v32, %v7082_v20  ;;  %v3339_v28 = vcombine.high %v3337_v10, %v3337_v10  ;;  %v3355_v22 = vcombine.high %v3347_v47, %v3347_v47  ;;  %v3380_v11 = vrot.slane %v8192_v40, %v7082_v20 }
 0x124   : > { %v3488_v44 = vadd.f32 %v3487_v56, %v3486_v53  ;;  %v3356_v41 = vcombine.high %v3354_v62, %v3354_v62  ;;  %v3372_v43 = vcombine.high %v3364_v57, %v3364_v57  ;;  %v3491_v19 = vsel %vm930_vm0, %v3305_v3, 0.0 }
 0x125   : > { %v3977_v8 = vmul.f32 %v3769_v30, %v3530_v35  ;;  %v3373_v2 = vcombine.high %v8217_v36, %v8217_v36  ;;  %v3493_v37 = vsel %vm930_vm0, %v3313_v25, 0.0  ;;  %v3495_v18 = vsel %vm930_vm0, %v3321_v55, 0.0  ;;  %v8272_v30 = vld [vmem:[%s7059_s16 + $0xd4] sm:$0xff] }
 0x126   : > { %v3490_v13 = vadd.f32 %v3489_v51, %v3488_v44  ;;  %v3786_v49 = vcombine.low %v3778_v29, %v3785_v0  ;;  %v3787_v61 = vcombine.low %v3592_v52, %v3596_v12  ;;  %v3788_v59 = vcombine.low %v3600_v60, %v3604_v27  ;;  %v3532_v0 = vld [vmem:[%s7094_s20 + $0x198] sm:$0xff] }
 0x127   : > { %v4003_v45 = vcombine.high %v3977_v8, %v3977_v8  ;;  %v3497_v48 = vsel %vm930_vm0, %v3320_v26, 0.0  ;;  %v3499_v39 = vsel %vm930_vm0, %v3322_v54, 0.0  ;;  %v3501_v31 = vsel %vm930_vm0, %v3330_v63, 0.0 }
 0x128   : > { %v3492_v9 = vadd.f32 %v3491_v19, %v3490_v13  ;;  %v3503_v46 = vsel %vm930_vm0, %v3338_v38, 0.0  ;;  %v3505_v23 = vsel %vm930_vm0, %v3337_v10, 0.0  ;;  %v3608_v25 = vrot.slane %v8212_v24, %v7074_v14 }
 0x129   : > { %v4010_v34 = vrot.slane %v3977_v8, %v7082_v20  ;;  %v3612_v3 = vrot.slane %v8212_v24, %v7076_v15  ;;  %v3616_v26 = vrot.slane %v8212_v24, %v7078_v16  ;;  %v3620_v63 = vrot.slane %v8212_v24, %v7080_v17 }
 0x12a   : > { %v3494_v21 = vadd.f32 %v3493_v37, %v3492_v9  ;;  %v3795_v55 = vrot.slane %v3787_v61, %v7082_v20  ;;  %v3802_v10 = vrot.slane %v3788_v59, %v7082_v20  ;;  %v3978_v33 = vmul.f32 %v3786_v49, %v3531_v1 }
 0x12b   : > { %v4017_v42 = vrot.slane %v4003_v45, %v7082_v20  ;;  %v3507_v32 = vsel %vm930_vm0, %v3339_v28, 0.0  ;;  %v3509_v54 = vsel %vm930_vm0, %v3347_v47, 0.0  ;;  %v8260_v38 = vsel %vm930_vm0, %v3355_v22, 0.0 }
 0x12c   : > { %v3496_v58 = vadd.f32 %v3495_v18, %v3494_v21  ;;  %v8263_v50 = vsel %vm930_vm0, %v3354_v62, 0.0  ;;  %v8266_v24 = vsel %vm930_vm0, %v3356_v41, 0.0  ;;  %v8269_v56 = vsel %vm930_vm0, %v3364_v57, 0.0 }
 0x12d   : > { %v4018_v53 = vcombine.high %v4010_v34, %v4010_v34  ;;  %v8275_v35 = vsel %vm930_vm0, %v3372_v43, 0.0  ;;  %v3804_v47 = vcombine.low %v3608_v25, %v3612_v3  ;;  %v3805_v52 = vcombine.low %v3616_v26, %v3620_v63 }
 0x12e   : > { %v3498_v51 = vadd.f32 %v3497_v48, %v3496_v58  ;;  %v3803_v12 = vcombine.low %v3795_v55, %v3802_v10  ;;  %v4019_v60 = vcombine.high %v4017_v42, %v4017_v42  ;;  %v4020_v27 = vcombine.high %v3978_v33, %v3978_v33 }
 0x12f   : > { %v4027_v62 = vrot.slane %v3978_v33, %v7082_v20  ;;  %v3624_v57 = vrot.slane %v8272_v30, %v7061_v4  ;;  %v3628_v28 = vrot.slane %v8272_v30, %v7063_v5  ;;  %v4263_v22 = vsel %vm930_vm0, %v4010_v34, 0.0  ;;  %v3533_v33 = vld [vmem:[%s7094_s20 + $0x1a0] sm:$0xff] }
 0x130   : > { %v3500_v29 = vadd.f32 %v3499_v39, %v3498_v51  ;;  %v3632_v44 = vrot.slane %v8272_v30, %v7065_v6  ;;  %v3636_v41 = vrot.slane %v8272_v30, %v7067_v7  ;;  %v4264_v43 = vsel %vm930_vm0, %v4018_v53, 0.0 }
 0x131   : > { %v4266_v19 = vsel %vm930_vm0, %v4017_v42, 0.0  ;;  %v3812_v13 = vrot.slane %v3804_v47, %v7082_v20  ;;  %v3819_v37 = vrot.slane %v3805_v52, %v7082_v20  ;;  %v4265_v18 = vadd.f32 %v4264_v43, %v4263_v22 }
 0x132   : > { %v3502_v8 = vadd.f32 %v3501_v31, %v3500_v29  ;;  %v3979_v49 = vmul.f32 %v3803_v12, %v3532_v0  ;;  %v4034_v61 = vrot.slane %v4020_v27, %v7082_v20  ;;  %v4035_v59 = vcombine.high %v4027_v62, %v4027_v62 }
 0x133   : > { %v4268_v45 = vsel %vm930_vm0, %v4019_v60, 0.0  ;;  %v8296_v48 = vsel %vm930_vm0, %v8217_v36, 0.0  ;;  %v8299_v39 = vsel %vm930_vm0, %v3373_v2, 0.0  ;;  %v4267_v31 = vadd.f32 %v4266_v19, %v4265_v18  ;;  %v8311_v36 = vld [vmem:[%s7059_s16 + $0xdc] sm:$0xff] }
 0x134   : > { %v3504_v9 = vadd.f32 %v3503_v46, %v3502_v8  ;;  %v8305_v1 = vsel %vm930_vm0, %v3380_v11, 0.0  ;;  %v3640_v25 = vrot.slane %v8272_v30, %v7074_v14  ;;  %v3821_v34 = vcombine.low %v3624_v57, %v3628_v28 }
 0x135   : > { %v4270_v46 = vsel %vm930_vm0, %v4027_v62, 0.0  ;;  %v3820_v3 = vcombine.low %v3812_v13, %v3819_v37  ;;  %v3822_v2 = vcombine.low %v3632_v44, %v3636_v41  ;;  %v4269_v26 = vadd.f32 %v4268_v45, %v4267_v31  ;;  %v3534_v31 = vld [vmem:[%s7094_s20 + $0x1a8] sm:$0xff] }
 0x136   : > { %v3506_v21 = vadd.f32 %v3505_v23, %v3504_v9  ;;  %v4036_v63 = vcombine.high %v4034_v61, %v4034_v61  ;;  %v4037_v55 = vcombine.high %v3979_v49, %v3979_v49  ;;  %v4044_v10 = vrot.slane %v3979_v49, %v7082_v20 }
 0x137   : > { %v4272_v40 = vsel %vm930_vm0, %v4035_v59, 0.0  ;;  %v3644_v42 = vrot.slane %v8272_v30, %v7076_v15  ;;  %v3648_v58 = vrot.slane %v8272_v30, %v7078_v16  ;;  %v4271_v23 = vadd.f32 %v4270_v46, %v4269_v26 }
 0x138   : > { %v3508_v11 = vadd.f32 %v3507_v32, %v3506_v21  ;;  %v3652_v53 = vrot.slane %v8272_v30, %v7080_v17  ;;  %v3656_v51 = vrot.slane %v8311_v36, %v7061_v4  ;;  %v3660_v47 = vrot.slane %v8311_v36, %v7063_v5 }
 0x139   : > { %v4274_v52 = vsel %vm930_vm0, %v4034_v61, 0.0  ;;  %v3829_v12 = vrot.slane %v3821_v34, %v7082_v20  ;;  %v3836_v60 = vrot.slane %v3822_v2, %v7082_v20  ;;  %v4273_v27 = vadd.f32 %v4272_v40, %v4271_v23  ;;  %v8371_v23 = vld [vmem:[%s7059_s16 + $0xec] sm:$0xff] }
 0x13a   : > { %v3510_v32 = vadd.f32 %v3509_v54, %v3508_v11  ;;  %v3980_v62 = vmul.f32 %v3820_v3, %v3533_v33  ;;  %v4051_v29 = vrot.slane %v4037_v55, %v7082_v20  ;;  %v4052_v0 = vcombine.high %v4044_v10, %v4044_v10 }
 0x13b   : > { %v4276_v30 = vsel %vm930_vm0, %v4036_v63, 0.0  ;;  %v3664_v28 = vrot.slane %v8311_v36, %v7065_v6  ;;  %v3668_v54 = vrot.slane %v8311_v36, %v7067_v7  ;;  %v4275_v22 = vadd.f32 %v4274_v52, %v4273_v27 }
 0x13c   : > { %v3512_v57 = vadd.f32 %v8260_v38, %v3510_v32  ;;  %v3672_v44 = vrot.slane %v8311_v36, %v7074_v14  ;;  %v3676_v41 = vrot.slane %v8311_v36, %v7076_v15  ;;  %v3838_v43 = vcombine.low %v3640_v25, %v3644_v42  ;;  %v8343_v38 = vld [vmem:[%s7059_s16 + $0xe4] sm:$0xff] }
 0x13d   : > { %v4278_v19 = vsel %vm930_vm0, %v4044_v10, 0.0  ;;  %v3837_v13 = vcombine.low %v3829_v12, %v3836_v60  ;;  %v3839_v37 = vcombine.low %v3648_v58, %v3652_v53  ;;  %v4277_v18 = vadd.f32 %v4276_v30, %v4275_v22 }
 0x13e   : > { %v3514_v8 = vadd.f32 %v8263_v50, %v3512_v57  ;;  %v4053_v49 = vcombine.high %v4051_v29, %v4051_v29  ;;  %v4054_v61 = vcombine.high %v3980_v62, %v3980_v62  ;;  %v4061_v59 = vrot.slane %v3980_v62, %v7082_v20 }
 0x13f   : > { %v4280_v45 = vsel %vm930_vm0, %v4052_v0, 0.0  ;;  %v3680_v25 = vrot.slane %v8311_v36, %v7078_v16  ;;  %v3684_v50 = vrot.slane %v8311_v36, %v7080_v17  ;;  %v4279_v34 = vadd.f32 %v4278_v19, %v4277_v18 }
 0x140   : > { %v3516_v9 = vadd.f32 %v8266_v24, %v3514_v8  ;;  %v3688_v46 = vrot.slane %v8343_v38, %v7061_v4  ;;  %v3692_v21 = vrot.slane %v8343_v38, %v7063_v5  ;;  %v3696_v3 = vrot.slane %v8343_v38, %v7065_v6 }
 0x141   : > { %v4282_v24 = vsel %vm930_vm0, %v4051_v29, 0.0  ;;  %v3846_v26 = vrot.slane %v3838_v43, %v7082_v20  ;;  %v3853_v63 = vrot.slane %v3839_v37, %v7082_v20  ;;  %v4281_v36 = vadd.f32 %v4280_v45, %v4279_v34  ;;  %v3535_v43 = vld [vmem:[%s7094_s20 + $0x1b0] sm:$0xff] }
 0x142   : > { %v3518_v2 = vadd.f32 %v8269_v56, %v3516_v9  ;;  %v3981_v55 = vmul.f32 %v3837_v13, %v3534_v31  ;;  %v4068_v10 = vrot.slane %v4054_v61, %v7082_v20  ;;  %v4069_v40 = vcombine.high %v4061_v59, %v4061_v59 }
 0x143   : > { %v4284_v11 = vsel %vm930_vm0, %v4053_v49, 0.0  ;;  %v3700_v42 = vrot.slane %v8343_v38, %v7067_v7  ;;  %v3704_v58 = vrot.slane %v8343_v38, %v7074_v14  ;;  %v4283_v56 = vadd.f32 %v4282_v24, %v4281_v36 }
 0x144   : > { %v3520_v33 = vadd.f32 %v8275_v35, %v3518_v2  ;;  %v3708_v53 = vrot.slane %v8343_v38, %v7076_v15  ;;  %v3712_v52 = vrot.slane %v8343_v38, %v7078_v16  ;;  %v3855_v32 = vcombine.low %v3656_v51, %v3660_v47 }
 0x145   : > { %v4286_v12 = vsel %vm930_vm0, %v4061_v59, 0.0  ;;  %v3854_v60 = vcombine.low %v3846_v26, %v3853_v63  ;;  %v3856_v27 = vcombine.low %v3664_v28, %v3668_v54  ;;  %v4285_v62 = vadd.f32 %v4284_v11, %v4283_v56  ;;  %v3536_v63 = vld [vmem:[%s7094_s20 + $0x1b8] sm:$0xff] }
 0x146   : > { %v3522_v35 = vadd.f32 %v8296_v48, %v3520_v33  ;;  %v4070_v29 = vcombine.high %v4068_v10, %v4068_v10  ;;  %v4071_v0 = vcombine.high %v3981_v55, %v3981_v55  ;;  %v4078_v30 = vrot.slane %v3981_v55, %v7082_v20 }
 0x147   : > { %v4288_v57 = vsel %vm930_vm0, %v4069_v40, 0.0  ;;  %v3716_v19 = vrot.slane %v8343_v38, %v7080_v17  ;;  %v3720_v51 = vrot.slane %v8371_v23, %v7061_v4  ;;  %v4287_v47 = vadd.f32 %v4286_v12, %v4285_v62 }
 0x148   : > { %v3524_v22 = vadd.f32 %v8299_v39, %v3522_v35  ;;  %v3724_v48 = vrot.slane %v8371_v23, %v7063_v5  ;;  %v3863_v28 = vrot.slane %v3855_v32, %v7082_v20  ;;  %v3872_v54 = vcombine.low %v3672_v44, %v3676_v41 }
 0x149   : > { %v4290_v8 = vsel %vm930_vm0, %v4068_v10, 0.0  ;;  %v3870_v39 = vrot.slane %v3856_v27, %v7082_v20  ;;  %v3873_v37 = vcombine.low %v3680_v25, %v3684_v50  ;;  %v4289_v18 = vadd.f32 %v4288_v57, %v4287_v47 }
 0x14a   : > { %v3526_v13 = vadd.f32 %v8305_v1, %v3524_v22  ;;  %v3982_v49 = vmul.f32 %v3854_v60, %v3535_v43  ;;  %v4085_v38 = vrot.slane %v4071_v0, %v7082_v20  ;;  %v4086_v61 = vcombine.high %v4078_v30, %v4078_v30  ;;  %v6961_v22 = vld [vmem:[%s7059_s16 + $0xf4] ss:$0 sm:$0xff] }
 0x14b   : > { %v4292_v59 = vsel %vm930_vm0, %v4070_v29, 0.0  ;;  %v3728_v45 = vrot.slane %v8371_v23, %v7065_v6  ;;  %v3732_v44 = vrot.slane %v8371_v23, %v7067_v7  ;;  %v3736_v1 = vrot.slane %v8371_v23, %v7074_v14 }
 0x14c   : > { %3527 = vadd.xlane.f32.xlu1 %v3526_v13  ;;  %v4291_v41 = vadd.f32 %v4290_v8, %v4289_v18  ;;  %v3740_v9 = vrot.slane %v8371_v23, %v7076_v15  ;;  %v3880_v31 = vrot.slane %v3872_v54, %v7082_v20  ;;  %v3889_v25 = vcombine.low %v3688_v46, %v3692_v21 }
 0x14d   : > { %v4294_v50 = vsel %vm930_vm0, %v4078_v30, 0.0  ;;  %v3871_v34 = vcombine.low %v3863_v28, %v3870_v39  ;;  %v3890_v24 = vcombine.low %v3696_v3, %v3700_v42  ;;  %v4088_v2 = vcombine.high %v3982_v49, %v3982_v49 }
 0x14e   : > { %v4293_v26 = vadd.f32 %v4292_v59, %v4291_v41  ;;  %v3887_v36 = vrot.slane %v3873_v37, %v7082_v20  ;;  %v4087_v55 = vcombine.high %v4085_v38, %v4085_v38  ;;  %v4095_v10 = vrot.slane %v3982_v49, %v7082_v20  ;;  %v4376_v59 = vld [vmem:[%s7059_s16 + $0xf5] sm:$0xff] }
 0x14f   : > { %v4296_v40 = vsel %vm930_vm0, %v4086_v61, 0.0  ;;  %v3744_v11 = vrot.slane %v8371_v23, %v7078_v16  ;;  %v3748_v46 = vrot.slane %v8371_v23, %v7080_v17  ;;  %v3906_v21 = vcombine.low %v3704_v58, %v3708_v53  ;;  %v3537_v58 = vld [vmem:[%s7094_s20 + $0x1c0] sm:$0xff] }
 0x150   : > { %v4295_v33 = vadd.f32 %v4294_v50, %v4293_v26  ;;  %v3907_v3 = vcombine.low %v3712_v52, %v3716_v19  ;;  %v3923_v42 = vcombine.low %v3720_v51, %v3724_v48  ;;  %v3924_v56 = vcombine.low %v3728_v45, %v3732_v44  ;;  %v3538_v45 = vld [vmem:[%s7094_s20 + $0x1c8] sm:$0xff] }
 0x151   : > { %v4298_v32 = vsel %vm930_vm0, %v4085_v38, 0.0  ;;  %v3897_v12 = vrot.slane %v3889_v25, %v7082_v20  ;;  %v3983_v35 = vmul.f32 %v3871_v34, %v3536_v63  ;;  %v4102_v60 = vrot.slane %v4088_v2, %v7082_v20  ;;  %v3540_v25 = vld [vmem:[%s7094_s20 + $0x1d8] sm:$0xff]  ;;  %v3542_v50 = vld [vmem:[%s7094_s20 + $0x1e8] sm:$0x3] }
 0x152   : > { %v4297_v27 = vadd.f32 %v4296_v40, %v4295_v33  ;;  %v3888_v62 = vcombine.low %v3880_v31, %v3887_v36  ;;  %v3904_v29 = vrot.slane %v3890_v24, %v7082_v20  ;;  %v4103_v0 = vcombine.high %v4095_v10, %v4095_v10  ;;  %v3539_v31 = vld [vmem:[%s7094_s20 + $0x1d0] sm:$0xff] }
 0x153   : > { %v4300_v23 = vsel %vm930_vm0, %v4087_v55, 0.0  ;;  %v3914_v53 = vrot.slane %v3906_v21, %v7082_v20  ;;  %v3940_v52 = vcombine.low %v3736_v1, %v3740_v9  ;;  %v3941_v30 = vcombine.low %v3744_v11, %v3748_v46 }
 0x154   : > { %v4299_v57 = vadd.f32 %v4298_v32, %v4297_v27  ;;  %v3921_v43 = vrot.slane %v3907_v3, %v7082_v20  ;;  %v3931_v19 = vrot.slane %v3923_v42, %v7082_v20  ;;  %v3938_v51 = vrot.slane %v3924_v56, %v7082_v20 }
 0x155   : > { %v4302_v47 = vsel %vm930_vm0, %v4095_v10, 0.0  ;;  %v4104_v48 = vcombine.high %v4102_v60, %v4102_v60  ;;  %v4105_v28 = vcombine.high %v3983_v35, %v3983_v35  ;;  %v4112_v54 = vrot.slane %v3983_v35, %v7082_v20 }
 0x156   : > { %v4301_v8 = vadd.f32 %v4300_v23, %v4299_v57  ;;  %v3905_v13 = vcombine.low %v3897_v12, %v3904_v29  ;;  %v3984_v39 = vmul.f32 %v3888_v62, %v3537_v58  ;;  %v4304_v37 = vsel %vm930_vm0, %v4103_v0, 0.0 }
 0x157   : > { %v3948_v18 = vrot.slane %v3940_v52, %v7082_v20  ;;  %v3955_v49 = vrot.slane %v3941_v30, %v7082_v20  ;;  %v3963_v38 = vrot.slane %v6961_v22, %v7082_v20  ;;  %v3922_v44 = vcombine.low %v3914_v53, %v3921_v43 }
 0x158   : > { %v4303_v61 = vadd.f32 %v4302_v47, %v4301_v8  ;;  %v3939_v1 = vcombine.low %v3931_v19, %v3938_v51  ;;  %v4122_v41 = vcombine.high %v3984_v39, %v3984_v39  ;;  %v4306_v9 = vsel %vm930_vm0, %v4102_v60, 0.0  ;;  %v3541_v60 = vld [vmem:[%s7094_s20 + $0x1e0] sm:$0xff] }
 0x159   : > { %v4119_v34 = vrot.slane %v4105_v28, %v7082_v20  ;;  %v4120_v24 = vcombine.high %v4112_v54, %v4112_v54  ;;  %v4308_v26 = vsel %vm930_vm0, %v4104_v48, 0.0  ;;  %v4393_v63 = vrot.slane %v4376_v59, %v7061_v4 }
 0x15a   : > { %v4305_v2 = vadd.f32 %v4304_v37, %v4303_v61  ;;  %v4397_v36 = vrot.slane %v4376_v59, %v7063_v5  ;;  %v4401_v55 = vrot.slane %v4376_v59, %v7065_v6  ;;  %v4405_v10 = vrot.slane %v4376_v59, %v7067_v7 }
 0x15b   : > { %v3956_v40 = vcombine.low %v3948_v18, %v3955_v49  ;;  %v3985_v11 = vmul.f32 %v3905_v13, %v3538_v45  ;;  %v3986_v21 = vmul.f32 %v3922_v44, %v3539_v31  ;;  %v3987_v33 = vmul.f32 %v3939_v1, %v3540_v25 }
 0x15c   : > { %v4307_v46 = vadd.f32 %v4306_v9, %v4305_v2  ;;  %v8442_v3 = vmul.f32 %v3963_v38, %v3542_v50  ;;  %v4310_v42 = vsel %vm930_vm0, %v4112_v54, 0.0  ;;  %v4129_v56 = vrot.slane %v3984_v39, %v7082_v20 }
 0x15d   : > { %v4136_v32 = vrot.slane %v4122_v41, %v7082_v20  ;;  %v4139_v12 = vcombine.high %v3985_v11, %v3985_v11  ;;  %v4121_v27 = vcombine.high %v4119_v34, %v4119_v34  ;;  %v4312_v62 = vsel %vm930_vm0, %v4120_v24, 0.0 }
 0x15e   : > { %v4309_v35 = vadd.f32 %v4308_v26, %v4307_v46  ;;  %v4586_v29 = vcombine.low %v4393_v63, %v4397_v36  ;;  %v4587_v0 = vcombine.low %v4401_v55, %v4405_v10  ;;  %v4146_v23 = vrot.slane %v3985_v11, %v7082_v20  ;;  %v4363_v63 = vld [vmem:[%s7094_s20 + $0x1ea] sm:$0xff] }
 0x15f   : > { %v4156_v58 = vcombine.high %v3986_v21, %v3986_v21  ;;  %v4314_v52 = vsel %vm930_vm0, %v4119_v34, 0.0  ;;  %v4409_v30 = vrot.slane %v4376_v59, %v7074_v14  ;;  %v4413_v57 = vrot.slane %v4376_v59, %v7076_v15 }
 0x160   : > { %v4311_v53 = vadd.f32 %v4310_v42, %v4309_v35  ;;  %v4417_v22 = vrot.slane %v4376_v59, %v7078_v16  ;;  %v4421_v43 = vrot.slane %v4376_v59, %v7080_v17  ;;  %v3988_v19 = vmul.f32 %v3956_v40, %v3541_v60  ;;  %v8463_v59 = vld [vmem:[%s7059_s16 + $0xfd] sm:$0xff] }
 0x161   : > { %v4137_v51 = vcombine.high %v4129_v56, %v4129_v56  ;;  %v4153_v47 = vrot.slane %v4139_v12, %v7082_v20  ;;  %v4173_v28 = vcombine.high %v3987_v33, %v3987_v33  ;;  %v4316_v54 = vsel %vm930_vm0, %v4121_v27, 0.0 }
 0x162   : > { %v4313_v48 = vadd.f32 %v4312_v62, %v4311_v53  ;;  %v4594_v8 = vrot.slane %v4586_v29, %v7082_v20  ;;  %v4601_v13 = vrot.slane %v4587_v0, %v7082_v20  ;;  %v4138_v39 = vcombine.high %v4136_v32, %v4136_v32 }
 0x163   : > { %v4154_v37 = vcombine.high %v4146_v23, %v4146_v23  ;;  %v4163_v18 = vrot.slane %v3986_v21, %v7082_v20  ;;  %v4170_v38 = vrot.slane %v4156_v58, %v7082_v20  ;;  %v4318_v61 = vsel %vm930_vm0, %v4129_v56, 0.0 }
 0x164   : > { %v4315_v49 = vadd.f32 %v4314_v52, %v4313_v48  ;;  %v4603_v45 = vcombine.low %v4409_v30, %v4413_v57  ;;  %v4604_v44 = vcombine.low %v4417_v22, %v4421_v43  ;;  %v4155_v1 = vcombine.high %v4153_v47, %v4153_v47 }
 0x165   : > { %v4180_v41 = vrot.slane %v3987_v33, %v7082_v20  ;;  %v4190_v9 = vcombine.high %v3988_v19, %v3988_v19  ;;  %v4187_v25 = vrot.slane %v4173_v28, %v7082_v20  ;;  %v8468_v50 = vrot.slane %v3988_v19, %v7082_v20 }
 0x166   : > { %v4317_v31 = vadd.f32 %v4316_v54, %v4315_v49  ;;  %v4320_v34 = vsel %vm930_vm0, %v4137_v51, 0.0  ;;  %v4602_v24 = vcombine.low %v4594_v8, %v4601_v13  ;;  %v4322_v26 = vsel %vm930_vm0, %v4136_v32, 0.0  ;;  %v4364_v51 = vld [vmem:[%s7094_s20 + $0x1f2] sm:$0xff] }
 0x167   : > { %v4425_v36 = vrot.slane %v8463_v59, %v7061_v4  ;;  %v4429_v55 = vrot.slane %v8463_v59, %v7063_v5  ;;  %v4433_v10 = vrot.slane %v8463_v59, %v7065_v6  ;;  %v4437_v40 = vrot.slane %v8463_v59, %v7067_v7 }
 0x168   : > { %v4319_v2 = vadd.f32 %v4318_v61, %v4317_v31  ;;  %v4611_v11 = vrot.slane %v4603_v45, %v7082_v20  ;;  %v4618_v46 = vrot.slane %v4604_v44, %v7082_v20  ;;  %v4171_v21 = vcombine.high %v4163_v18, %v4163_v18 }
 0x169   : > { %v4172_v33 = vcombine.high %v4170_v38, %v4170_v38  ;;  %v8484_v42 = vrot.slane %v4190_v9, %v7082_v20  ;;  %v4188_v32 = vcombine.high %v4180_v41, %v4180_v41  ;;  %v4213_v12 = vrot.slane %v8442_v3, %v7082_v20 }
 0x16a   : > { %v4321_v56 = vadd.f32 %v4320_v34, %v4319_v2  ;;  %v4324_v35 = vsel %vm930_vm0, %v4138_v39, 0.0  ;;  %v4810_v60 = vmul.f32 %v4602_v24, %v4363_v63  ;;  %v4189_v27 = vcombine.high %v4187_v25, %v4187_v25  ;;  %v8522_v24 = vld [vmem:[%s7059_s16 + $0x105] sm:$0xff] }
 0x16b   : > { %v4205_v62 = vcombine.high %v8468_v50, %v8468_v50  ;;  %v4326_v0 = vsel %vm930_vm0, %v4146_v23, 0.0  ;;  %v4619_v58 = vcombine.low %v4611_v11, %v4618_v46  ;;  %v4620_v53 = vcombine.low %v4425_v36, %v4429_v55  ;;  %v4365_v46 = vld [vmem:[%s7094_s20 + $0x1fa] sm:$0xff] }
 0x16c   : > { %v4323_v29 = vadd.f32 %v4322_v26, %v4321_v56  ;;  %v4621_v52 = vcombine.low %v4433_v10, %v4437_v40  ;;  %v4836_v30 = vcombine.high %v4810_v60, %v4810_v60  ;;  %v4206_v57 = vcombine.high %v8484_v42, %v8484_v42 }
 0x16d   : > { %v4328_v43 = vsel %vm930_vm0, %v4154_v37, 0.0  ;;  %v4330_v19 = vsel %vm930_vm0, %v4153_v47, 0.0  ;;  %v4332_v48 = vsel %vm930_vm0, %v4155_v1, 0.0  ;;  %v4334_v28 = vsel %vm930_vm0, %v4163_v18, 0.0 }
 0x16e   : > { %v4325_v22 = vadd.f32 %v4324_v35, %v4323_v29  ;;  %v4441_v23 = vrot.slane %v8463_v59, %v7074_v14  ;;  %v4843_v54 = vrot.slane %v4810_v60, %v7082_v20  ;;  %v4445_v13 = vrot.slane %v8463_v59, %v7076_v15 }
 0x16f   : > { %v4449_v39 = vrot.slane %v8463_v59, %v7078_v16  ;;  %v4453_v47 = vrot.slane %v8463_v59, %v7080_v17  ;;  %v4628_v37 = vrot.slane %v4620_v53, %v7082_v20  ;;  %v4635_v18 = vrot.slane %v4621_v52, %v7082_v20 }
 0x170   : > { %v4327_v8 = vadd.f32 %v4326_v0, %v4325_v22  ;;  %v4811_v49 = vmul.f32 %v4619_v58, %v4364_v51  ;;  %v4850_v61 = vrot.slane %v4836_v30, %v7082_v20  ;;  %v4336_v44 = vsel %vm930_vm0, %v4171_v21, 0.0 }
 0x171   : > { %v4338_v1 = vsel %vm930_vm0, %v4170_v38, 0.0  ;;  %v4340_v9 = vsel %vm930_vm0, %v4172_v33, 0.0  ;;  %v4342_v31 = vsel %vm930_vm0, %v4180_v41, 0.0  ;;  %v8516_v34 = vsel %vm930_vm0, %v4188_v32, 0.0 }
 0x172   : > { %v4329_v45 = vadd.f32 %v4328_v43, %v4327_v8  ;;  %v8519_v59 = vsel %vm930_vm0, %v4187_v25, 0.0  ;;  %v4851_v2 = vcombine.high %v4843_v54, %v4843_v54  ;;  %v8525_v63 = vsel %vm930_vm0, %v4189_v27, 0.0 }
 0x173   : > { %v4637_v36 = vcombine.low %v4441_v23, %v4445_v13  ;;  %v4638_v38 = vcombine.low %v4449_v39, %v4453_v47  ;;  %v4636_v55 = vcombine.low %v4628_v37, %v4635_v18  ;;  %v4852_v10 = vcombine.high %v4850_v61, %v4850_v61 }
 0x174   : > { %v4331_v26 = vadd.f32 %v4330_v19, %v4329_v45  ;;  %v4853_v40 = vcombine.high %v4811_v49, %v4811_v49  ;;  %v4860_v41 = vrot.slane %v4811_v49, %v7082_v20  ;;  %v4457_v25 = vrot.slane %v8522_v24, %v7061_v4 }
 0x175   : > { %v4461_v21 = vrot.slane %v8522_v24, %v7063_v5  ;;  %v5096_v33 = vsel %vm930_vm0, %v4843_v54, 0.0  ;;  %v4465_v56 = vrot.slane %v8522_v24, %v7065_v6  ;;  %v4469_v32 = vrot.slane %v8522_v24, %v7067_v7 }
 0x176   : > { %v4333_v11 = vadd.f32 %v4332_v48, %v4331_v26  ;;  %v5097_v35 = vsel %vm930_vm0, %v4851_v2, 0.0  ;;  %v5099_v60 = vsel %vm930_vm0, %v4850_v61, 0.0  ;;  %v4645_v29 = vrot.slane %v4637_v36, %v7082_v20 }
 0x177   : > { %v4652_v0 = vrot.slane %v4638_v38, %v7082_v20  ;;  %v5098_v58 = vadd.f32 %v5097_v35, %v5096_v33  ;;  %v4812_v53 = vmul.f32 %v4636_v55, %v4365_v46  ;;  %v4867_v52 = vrot.slane %v4853_v40, %v7082_v20 }
 0x178   : > { %v4335_v27 = vadd.f32 %v4334_v28, %v4333_v11  ;;  %v4868_v30 = vcombine.high %v4860_v41, %v4860_v41  ;;  %v5101_v22 = vsel %vm930_vm0, %v4852_v10, 0.0  ;;  %v4350_v19 = vsel %vm930_vm0, %v8468_v50, 0.0 }
 0x179   : > { %v8547_v51 = vsel %vm930_vm0, %v4205_v62, 0.0  ;;  %v5100_v48 = vadd.f32 %v5099_v60, %v5098_v58  ;;  %v8551_v28 = vsel %vm930_vm0, %v8484_v42, 0.0  ;;  %v8554_v23 = vsel %vm930_vm0, %v4206_v57, 0.0  ;;  %v4366_v57 = vld [vmem:[%s7094_s20 + $0x202] sm:$0xff] }
 0x17a   : > { %v4337_v43 = vadd.f32 %v4336_v44, %v4335_v27  ;;  %v4654_v54 = vcombine.low %v4457_v25, %v4461_v21  ;;  %v5103_v8 = vsel %vm930_vm0, %v4860_v41, 0.0  ;;  %v4653_v39 = vcombine.low %v4645_v29, %v4652_v0 }
 0x17b   : > { %v4655_v47 = vcombine.low %v4465_v56, %v4469_v32  ;;  %v5102_v50 = vadd.f32 %v5101_v22, %v5100_v48  ;;  %v4869_v37 = vcombine.high %v4867_v52, %v4867_v52  ;;  %v4870_v62 = vcombine.high %v4812_v53, %v4812_v53  ;;  %v4367_v22 = vld [vmem:[%s7094_s20 + $0x20a] sm:$0xff] }
 0x17c   : > { %v4339_v13 = vadd.f32 %v4338_v1, %v4337_v43  ;;  %v4877_v18 = vrot.slane %v4812_v53, %v7082_v20  ;;  %v5105_v49 = vsel %vm930_vm0, %v4868_v30, 0.0  ;;  %v8563_v42 = vsel %vm930_vm0, %v4213_v12, 0.0  ;;  %v8569_v1 = vld [vmem:[%s7059_s16 + $0x10d] sm:$0xff] }
 0x17d   : > { %v4473_v45 = vrot.slane %v8522_v24, %v7074_v14  ;;  %v5104_v44 = vadd.f32 %v5103_v8, %v5102_v50  ;;  %v4477_v2 = vrot.slane %v8522_v24, %v7076_v15  ;;  %v4481_v26 = vrot.slane %v8522_v24, %v7078_v16 }
 0x17e   : > { %v4341_v61 = vadd.f32 %v4340_v9, %v4339_v13  ;;  %v4485_v9 = vrot.slane %v8522_v24, %v7080_v17  ;;  %v5107_v3 = vsel %vm930_vm0, %v4867_v52, 0.0  ;;  %v4662_v36 = vrot.slane %v4654_v54, %v7082_v20 }
 0x17f   : > { %v4669_v38 = vrot.slane %v4655_v47, %v7082_v20  ;;  %v5106_v55 = vadd.f32 %v5105_v49, %v5104_v44  ;;  %v4813_v10 = vmul.f32 %v4653_v39, %v4366_v57  ;;  %v4884_v40 = vrot.slane %v4870_v62, %v7082_v20 }
 0x180   : > { %v4343_v12 = vadd.f32 %v4342_v31, %v4341_v61  ;;  %v4885_v41 = vcombine.high %v4877_v18, %v4877_v18  ;;  %v5109_v11 = vsel %vm930_vm0, %v4869_v37, 0.0  ;;  %v4489_v24 = vrot.slane %v8569_v1, %v7061_v4 }
 0x181   : > { %v4493_v31 = vrot.slane %v8569_v1, %v7063_v5  ;;  %v5108_v25 = vadd.f32 %v5107_v3, %v5106_v55  ;;  %v4497_v21 = vrot.slane %v8569_v1, %v7065_v6  ;;  %v4501_v33 = vrot.slane %v8569_v1, %v7067_v7 }
 0x182   : > { %v4345_v46 = vadd.f32 %v8516_v34, %v4343_v12  ;;  %v4671_v56 = vcombine.low %v4473_v45, %v4477_v2  ;;  %v5111_v32 = vsel %vm930_vm0, %v4877_v18, 0.0  ;;  %v8594_v34 = vld [vmem:[%s7059_s16 + $0x115] sm:$0xff]  ;;  %v4670_v60 = vcombine.low %v4662_v36, %v4669_v38 }
 0x183   : > { %v4672_v27 = vcombine.low %v4481_v26, %v4485_v9  ;;  %v5110_v29 = vadd.f32 %v5109_v11, %v5108_v25  ;;  %v4886_v0 = vcombine.high %v4884_v40, %v4884_v40  ;;  %v4887_v58 = vcombine.high %v4813_v10, %v4813_v10 }
 0x184   : > { %v4347_v35 = vadd.f32 %v8519_v59, %v4345_v46  ;;  %v4894_v53 = vrot.slane %v4813_v10, %v7082_v20  ;;  %v5113_v52 = vsel %vm930_vm0, %v4885_v41, 0.0  ;;  %v4505_v43 = vrot.slane %v8569_v1, %v7074_v14  ;;  %v4368_v46 = vld [vmem:[%s7094_s20 + $0x212] sm:$0xff] }
 0x185   : > { %v4509_v59 = vrot.slane %v8569_v1, %v7076_v15  ;;  %v5112_v48 = vadd.f32 %v5111_v32, %v5110_v29  ;;  %v4513_v54 = vrot.slane %v8569_v1, %v7078_v16  ;;  %v4517_v8 = vrot.slane %v8569_v1, %v7080_v17 }
 0x186   : > { %v4349_v30 = vadd.f32 %v8525_v63, %v4347_v35  ;;  %v4521_v13 = vrot.slane %v8594_v34, %v7061_v4  ;;  %v5115_v39 = vsel %vm930_vm0, %v4884_v40, 0.0  ;;  %v4679_v47 = vrot.slane %v4671_v56, %v7082_v20 }
 0x187   : > { %v4686_v50 = vrot.slane %v4672_v27, %v7082_v20  ;;  %v5114_v37 = vadd.f32 %v5113_v52, %v5112_v48  ;;  %v4814_v62 = vmul.f32 %v4670_v60, %v4367_v22  ;;  %v4901_v18 = vrot.slane %v4887_v58, %v7082_v20 }
 0x188   : > { %v4351_v63 = vadd.f32 %v4350_v19, %v4349_v30  ;;  %v4902_v49 = vcombine.high %v4894_v53, %v4894_v53  ;;  %v5117_v61 = vsel %vm930_vm0, %v4886_v0, 0.0  ;;  %v4525_v45 = vrot.slane %v8594_v34, %v7063_v5 }
 0x189   : > { %v4529_v19 = vrot.slane %v8594_v34, %v7065_v6  ;;  %v5116_v44 = vadd.f32 %v5115_v39, %v5114_v37  ;;  %v4533_v1 = vrot.slane %v8594_v34, %v7067_v7  ;;  %v4537_v2 = vrot.slane %v8594_v34, %v7074_v14 }
 0x18a   : > { %v4353_v57 = vadd.f32 %v8547_v51, %v4351_v63  ;;  %v4688_v26 = vcombine.low %v4489_v24, %v4493_v31  ;;  %v5119_v9 = vsel %vm930_vm0, %v4894_v53, 0.0  ;;  %v8627_v51 = vld [vmem:[%s7059_s16 + $0x11d] sm:$0xff]  ;;  %v4687_v12 = vcombine.low %v4679_v47, %v4686_v50 }
 0x18b   : > { %v4689_v36 = vcombine.low %v4497_v21, %v4501_v33  ;;  %v5118_v38 = vadd.f32 %v5117_v61, %v5116_v44  ;;  %v4903_v55 = vcombine.high %v4901_v18, %v4901_v18  ;;  %v4904_v10 = vcombine.high %v4814_v62, %v4814_v62 }
 0x18c   : > { %v4355_v3 = vadd.f32 %v8551_v28, %v4353_v57  ;;  %v4911_v40 = vrot.slane %v4814_v62, %v7082_v20  ;;  %v5121_v41 = vsel %vm930_vm0, %v4902_v49, 0.0  ;;  %v4541_v24 = vrot.slane %v8594_v34, %v7076_v15  ;;  %v4369_v62 = vld [vmem:[%s7094_s20 + $0x21a] sm:$0xff] }
 0x18d   : > { %v4545_v28 = vrot.slane %v8594_v34, %v7078_v16  ;;  %v5120_v31 = vadd.f32 %v5119_v9, %v5118_v38  ;;  %v4549_v25 = vrot.slane %v8594_v34, %v7080_v17  ;;  %v4553_v21 = vrot.slane %v8627_v51, %v7061_v4 }
 0x18e   : > { %v4357_v11 = vadd.f32 %v8554_v23, %v4355_v3  ;;  %v4557_v33 = vrot.slane %v8627_v51, %v7063_v5  ;;  %v5123_v56 = vsel %vm930_vm0, %v4901_v18, 0.0  ;;  %v4696_v32 = vrot.slane %v4688_v26, %v7082_v20 }
 0x18f   : > { %v4703_v35 = vrot.slane %v4689_v36, %v7082_v20  ;;  %v5122_v60 = vadd.f32 %v5121_v41, %v5120_v31  ;;  %v4815_v27 = vmul.f32 %v4687_v12, %v4368_v46  ;;  %v4918_v29 = vrot.slane %v4904_v10, %v7082_v20 }
 0x190   : > { %v4359_v23 = vadd.f32 %v8563_v42, %v4357_v11  ;;  %v4919_v34 = vcombine.high %v4911_v40, %v4911_v40  ;;  %v5125_v0 = vsel %vm930_vm0, %v4903_v55, 0.0  ;;  %v4561_v58 = vrot.slane %v8627_v51, %v7065_v6 }
 0x191   : > { %v4565_v53 = vrot.slane %v8627_v51, %v7067_v7  ;;  %v4569_v42 = vrot.slane %v8627_v51, %v7074_v14  ;;  %v5124_v52 = vadd.f32 %v5123_v56, %v5122_v60  ;;  %v4573_v30 = vrot.slane %v8627_v51, %v7076_v15 }
 0x192   : > { %4360 = vadd.xlane.f32.xlu0 %v4359_v23  ;;  %v4705_v22 = vcombine.low %v4505_v43, %v4509_v59  ;;  %v4706_v48 = vcombine.low %v4513_v54, %v4517_v8  ;;  %v5127_v39 = vsel %vm930_vm0, %v4911_v40, 0.0  ;;  %v4704_v63 = vcombine.low %v4696_v32, %v4703_v35 }
 0x193   : > { %v4722_v47 = vcombine.low %v4521_v13, %v4525_v45  ;;  %v4921_v50 = vcombine.high %v4815_v27, %v4815_v27  ;;  %v5126_v37 = vadd.f32 %v5125_v0, %v5124_v52  ;;  %v4723_v18 = vcombine.low %v4529_v19, %v4533_v1 }
 0x194   : > { %v4920_v49 = vcombine.high %v4918_v29, %v4918_v29  ;;  %v4928_v61 = vrot.slane %v4815_v27, %v7082_v20  ;;  %v5129_v57 = vsel %vm930_vm0, %v4919_v34, 0.0  ;;  %v4577_v44 = vrot.slane %v8627_v51, %v7078_v16 }
 0x195   : > { %v4739_v26 = vcombine.low %v4537_v2, %v4541_v24  ;;  %v4740_v9 = vcombine.low %v4545_v28, %v4549_v25  ;;  %v5128_v43 = vadd.f32 %v5127_v39, %v5126_v37  ;;  %v4581_v59 = vrot.slane %v8627_v51, %v7080_v17  ;;  %v4370_v28 = vld [vmem:[%s7094_s20 + $0x222] sm:$0xff]  ;;  %v4371_v39 = vld [vmem:[%s7094_s20 + $0x22a] sm:$0xff] }
 0x196   : > { %v4713_v54 = vrot.slane %v4705_v22, %v7082_v20  ;;  %v4720_v8 = vrot.slane %v4706_v48, %v7082_v20  ;;  %v5131_v13 = vsel %vm930_vm0, %v4918_v29, 0.0  ;;  %v4730_v45 = vrot.slane %v4722_v47, %v7082_v20  ;;  %v5209_v29 = vld [vmem:[%s7059_s16 + $0x126] sm:$0xff] }
 0x197   : > { %v4816_v19 = vmul.f32 %v4704_v63, %v4369_v62  ;;  %v4935_v1 = vrot.slane %v4921_v50, %v7082_v20  ;;  %v5130_v3 = vadd.f32 %v5129_v57, %v5128_v43  ;;  %v4737_v2 = vrot.slane %v4723_v18, %v7082_v20  ;;  %v4372_v63 = vld [vmem:[%s7094_s20 + $0x232] sm:$0xff] }
 0x198   : > { %v4756_v12 = vcombine.low %v4553_v21, %v4557_v33  ;;  %v4936_v36 = vcombine.high %v4928_v61, %v4928_v61  ;;  %v5133_v38 = vsel %vm930_vm0, %v4920_v49, 0.0  ;;  %v4747_v51 = vrot.slane %v4739_v26, %v7082_v20 }
 0x199   : > { %v4754_v55 = vrot.slane %v4740_v9, %v7082_v20  ;;  %v4757_v10 = vcombine.low %v4561_v58, %v4565_v53  ;;  %v5132_v40 = vadd.f32 %v5131_v13, %v5130_v3  ;;  %v4721_v41 = vcombine.low %v4713_v54, %v4720_v8  ;;  %v4373_v8 = vld [vmem:[%s7094_s20 + $0x23a] sm:$0xff] }
 0x19a   : > { %v4773_v11 = vcombine.low %v4569_v42, %v4573_v30  ;;  %v4774_v46 = vcombine.low %v4577_v44, %v4581_v59  ;;  %v5135_v24 = vsel %vm930_vm0, %v4928_v61, 0.0  ;;  %v4937_v31 = vcombine.high %v4935_v1, %v4935_v1  ;;  %v6962_v42 = vld [vmem:[%s7059_s16 + $0x125] ss:$0 sm:$0xff] }
 0x19b   : > { %v4938_v25 = vcombine.high %v4816_v19, %v4816_v19  ;;  %v4945_v21 = vrot.slane %v4816_v19, %v7082_v20  ;;  %v5134_v33 = vadd.f32 %v5133_v38, %v5132_v40  ;;  %v4738_v56 = vcombine.low %v4730_v45, %v4737_v2  ;;  %v4374_v38 = vld [vmem:[%s7094_s20 + $0x242] sm:$0xff] }
 0x19c   : > { %v5137_v23 = vsel %vm930_vm0, %v4936_v36, 0.0  ;;  %v4755_v32 = vcombine.low %v4747_v51, %v4754_v55  ;;  %v4764_v35 = vrot.slane %v4756_v12, %v7082_v20  ;;  %v4771_v60 = vrot.slane %v4757_v10, %v7082_v20  ;;  %v4375_v51 = vld [vmem:[%s7094_s20 + $0x24a] sm:$0x3] }
 0x19d   : > { %v5136_v27 = vadd.f32 %v5135_v24, %v5134_v33  ;;  %v4781_v34 = vrot.slane %v4773_v11, %v7082_v20  ;;  %v4788_v0 = vrot.slane %v4774_v46, %v7082_v20  ;;  %v4817_v58 = vmul.f32 %v4721_v41, %v4370_v28 }
 0x19e   : > { %v5139_v53 = vsel %vm930_vm0, %v4935_v1, 0.0  ;;  %v4952_v52 = vrot.slane %v4938_v25, %v7082_v20  ;;  %v4953_v30 = vcombine.high %v4945_v21, %v4945_v21  ;;  %v5141_v48 = vsel %vm930_vm0, %v4937_v31, 0.0 }
 0x19f   : > { %v5138_v22 = vadd.f32 %v5137_v23, %v5136_v27  ;;  %v5226_v47 = vrot.slane %v5209_v29, %v7061_v4  ;;  %v5230_v50 = vrot.slane %v5209_v29, %v7063_v5  ;;  %v5234_v37 = vrot.slane %v5209_v29, %v7065_v6 }
 0x1a0   : > { %v5238_v62 = vrot.slane %v5209_v29, %v7067_v7  ;;  %v4955_v18 = vcombine.high %v4817_v58, %v4817_v58  ;;  %v4772_v61 = vcombine.low %v4764_v35, %v4771_v60  ;;  %v4789_v57 = vcombine.low %v4781_v34, %v4788_v0 }
 0x1a1   : > { %v5140_v49 = vadd.f32 %v5139_v53, %v5138_v22  ;;  %v4796_v44 = vrot.slane %v6962_v42, %v7082_v20  ;;  %v5143_v26 = vsel %vm930_vm0, %v4945_v21, 0.0  ;;  %v4818_v9 = vmul.f32 %v4738_v56, %v4371_v39 }
 0x1a2   : > { %v4819_v43 = vmul.f32 %v4755_v32, %v4372_v63  ;;  %v4962_v59 = vrot.slane %v4817_v58, %v7082_v20  ;;  %v4954_v13 = vcombine.high %v4952_v52, %v4952_v52  ;;  %v5145_v45 = vsel %vm930_vm0, %v4953_v30, 0.0 }
 0x1a3   : > { %v5142_v54 = vadd.f32 %v5141_v48, %v5140_v49  ;;  %v5419_v19 = vcombine.low %v5226_v47, %v5230_v50  ;;  %v5420_v1 = vcombine.low %v5234_v37, %v5238_v62  ;;  %v4969_v3 = vrot.slane %v4955_v18, %v7082_v20  ;;  %v5196_v50 = vld [vmem:[%s7094_s20 + $0x24c] sm:$0xff] }
 0x1a4   : > { %v4972_v2 = vcombine.high %v4818_v9, %v4818_v9  ;;  %v5147_v36 = vsel %vm930_vm0, %v4952_v52, 0.0  ;;  %v5242_v55 = vrot.slane %v5209_v29, %v7074_v14  ;;  %v5246_v10 = vrot.slane %v5209_v29, %v7076_v15 }
 0x1a5   : > { %v5144_v12 = vadd.f32 %v5143_v26, %v5142_v54  ;;  %v5250_v40 = vrot.slane %v5209_v29, %v7078_v16  ;;  %v5254_v41 = vrot.slane %v5209_v29, %v7080_v17  ;;  %v4820_v11 = vmul.f32 %v4772_v61, %v4373_v8  ;;  %v8715_v29 = vld [vmem:[%s7059_s16 + $0x12e] sm:$0xff] }
 0x1a6   : > { %v4970_v46 = vcombine.high %v4962_v59, %v4962_v59  ;;  %v4979_v24 = vrot.slane %v4818_v9, %v7082_v20  ;;  %v4989_v31 = vcombine.high %v4819_v43, %v4819_v43  ;;  %v5149_v25 = vsel %vm930_vm0, %v4954_v13, 0.0 }
 0x1a7   : > { %v5146_v28 = vadd.f32 %v5145_v45, %v5144_v12  ;;  %v5427_v21 = vrot.slane %v5419_v19, %v7082_v20  ;;  %v5434_v33 = vrot.slane %v5420_v1, %v7082_v20  ;;  %v4821_v56 = vmul.f32 %v4789_v57, %v4374_v38 }
 0x1a8   : > { %v8710_v23 = vmul.f32 %v4796_v44, %v4375_v51  ;;  %v4971_v32 = vcombine.high %v4969_v3, %v4969_v3  ;;  %v4986_v60 = vrot.slane %v4972_v2, %v7082_v20  ;;  %v5151_v27 = vsel %vm930_vm0, %v4962_v59, 0.0 }
 0x1a9   : > { %v5148_v35 = vadd.f32 %v5147_v36, %v5146_v28  ;;  %v5436_v34 = vcombine.low %v5242_v55, %v5246_v10  ;;  %v5437_v0 = vcombine.low %v5250_v40, %v5254_v41  ;;  %v4987_v58 = vcombine.high %v4979_v24, %v4979_v24  ;;  %v5197_v41 = vld [vmem:[%s7094_s20 + $0x254] sm:$0xff] }
 0x1aa   : > { %v4996_v53 = vrot.slane %v4819_v43, %v7082_v20  ;;  %v5006_v42 = vcombine.high %v4820_v11, %v4820_v11  ;;  %v5003_v30 = vrot.slane %v4989_v31, %v7082_v20  ;;  %v8720_v22 = vrot.slane %v4820_v11, %v7082_v20 }
 0x1ab   : > { %v5150_v52 = vadd.f32 %v5149_v25, %v5148_v35  ;;  %v5153_v48 = vsel %vm930_vm0, %v4970_v46, 0.0  ;;  %v5435_v39 = vcombine.low %v5427_v21, %v5434_v33  ;;  %v5155_v47 = vsel %vm930_vm0, %v4969_v3, 0.0 }
 0x1ac   : > { %v5258_v37 = vrot.slane %v8715_v29, %v7061_v4  ;;  %v5262_v62 = vrot.slane %v8715_v29, %v7063_v5  ;;  %v5266_v18 = vrot.slane %v8715_v29, %v7065_v6  ;;  %v5270_v49 = vrot.slane %v8715_v29, %v7067_v7 }
 0x1ad   : > { %v5152_v63 = vadd.f32 %v5151_v27, %v5150_v52  ;;  %v5444_v61 = vrot.slane %v5436_v34, %v7082_v20  ;;  %v5451_v57 = vrot.slane %v5437_v0, %v7082_v20  ;;  %v4988_v44 = vcombine.high %v4986_v60, %v4986_v60 }
 0x1ae   : > { %v8736_v26 = vrot.slane %v5006_v42, %v7082_v20  ;;  %v5023_v9 = vcombine.high %v4821_v56, %v4821_v56  ;;  %v5004_v59 = vcombine.high %v4996_v53, %v4996_v53  ;;  %v5005_v54 = vcombine.high %v5003_v30, %v5003_v30 }
 0x1af   : > { %v5154_v43 = vadd.f32 %v5153_v48, %v5152_v63  ;;  %v5157_v8 = vsel %vm930_vm0, %v4971_v32, 0.0  ;;  %v5643_v13 = vmul.f32 %v5435_v39, %v5196_v50  ;;  %v5021_v45 = vcombine.high %v8720_v22, %v8720_v22  ;;  %v8776_v48 = vld [vmem:[%s7059_s16 + $0x136] sm:$0xff] }
 0x1b0   : > { %v8742_v19 = vrot.slane %v4821_v56, %v7082_v20  ;;  %v5159_v3 = vsel %vm930_vm0, %v4979_v24, 0.0  ;;  %v5452_v2 = vcombine.low %v5444_v61, %v5451_v57  ;;  %v5453_v12 = vcombine.low %v5258_v37, %v5262_v62 }
 0x1b1   : > { %v5156_v1 = vadd.f32 %v5155_v47, %v5154_v43  ;;  %v5454_v36 = vcombine.low %v5266_v18, %v5270_v49  ;;  %v5669_v38 = vcombine.high %v5643_v13, %v5643_v13  ;;  %v5022_v51 = vcombine.high %v8736_v26, %v8736_v26 }
 0x1b2   : > { %v8748_v55 = vrot.slane %v5023_v9, %v7082_v20  ;;  %v5046_v10 = vrot.slane %v8710_v23, %v7082_v20  ;;  %v5161_v11 = vsel %vm930_vm0, %v4987_v58, 0.0  ;;  %v5163_v46 = vsel %vm930_vm0, %v4986_v60, 0.0  ;;  %v5200_v23 = vld [vmem:[%s7094_s20 + $0x26c] sm:$0xff] }
 0x1b3   : > { %v5158_v40 = vadd.f32 %v5157_v8, %v5156_v1  ;;  %v5274_v24 = vrot.slane %v8715_v29, %v7074_v14  ;;  %v5676_v28 = vrot.slane %v5643_v13, %v7082_v20  ;;  %v5278_v25 = vrot.slane %v8715_v29, %v7076_v15 }
 0x1b4   : > { %v5282_v21 = vrot.slane %v8715_v29, %v7078_v16  ;;  %v5286_v33 = vrot.slane %v8715_v29, %v7080_v17  ;;  %v5461_v56 = vrot.slane %v5453_v12, %v7082_v20  ;;  %v5468_v32 = vrot.slane %v5454_v36, %v7082_v20 }
 0x1b5   : > { %v5160_v31 = vadd.f32 %v5159_v3, %v5158_v40  ;;  %v5644_v35 = vmul.f32 %v5452_v2, %v5197_v41  ;;  %v5683_v60 = vrot.slane %v5669_v38, %v7082_v20  ;;  %v5038_v27 = vcombine.high %v8742_v19, %v8742_v19 }
 0x1b6   : > { %v5039_v34 = vcombine.high %v8748_v55, %v8748_v55  ;;  %v5165_v58 = vsel %vm930_vm0, %v4988_v44, 0.0  ;;  %v5167_v42 = vsel %vm930_vm0, %v4996_v53, 0.0  ;;  %v5169_v29 = vsel %vm930_vm0, %v5004_v59, 0.0  ;;  %v5198_v44 = vld [vmem:[%s7094_s20 + $0x25c] sm:$0xff] }
 0x1b7   : > { %v5162_v0 = vadd.f32 %v5161_v11, %v5160_v31  ;;  %v5171_v52 = vsel %vm930_vm0, %v5003_v30, 0.0  ;;  %v5684_v39 = vcombine.high %v5676_v28, %v5676_v28  ;;  %v5173_v47 = vsel %vm930_vm0, %v5005_v54, 0.0 }
 0x1b8   : > { %v5470_v50 = vcombine.low %v5274_v24, %v5278_v25  ;;  %v5471_v37 = vcombine.low %v5282_v21, %v5286_v33  ;;  %v5469_v62 = vcombine.low %v5461_v56, %v5468_v32  ;;  %v5685_v18 = vcombine.high %v5683_v60, %v5683_v60 }
 0x1b9   : > { %v5164_v63 = vadd.f32 %v5163_v46, %v5162_v0  ;;  %v5686_v49 = vcombine.high %v5644_v35, %v5644_v35  ;;  %v5693_v61 = vrot.slane %v5644_v35, %v7082_v20  ;;  %v5290_v53 = vrot.slane %v8776_v48, %v7061_v4 }
 0x1ba   : > { %v5294_v30 = vrot.slane %v8776_v48, %v7063_v5  ;;  %v5929_v9 = vsel %vm930_vm0, %v5676_v28, 0.0  ;;  %v5298_v43 = vrot.slane %v8776_v48, %v7065_v6  ;;  %v5302_v59 = vrot.slane %v8776_v48, %v7067_v7 }
 0x1bb   : > { %v5166_v57 = vadd.f32 %v5165_v58, %v5164_v63  ;;  %v5930_v54 = vsel %vm930_vm0, %v5684_v39, 0.0  ;;  %v5932_v8 = vsel %vm930_vm0, %v5683_v60, 0.0  ;;  %v5478_v1 = vrot.slane %v5470_v50, %v7082_v20 }
 0x1bc   : > { %v5485_v3 = vrot.slane %v5471_v37, %v7082_v20  ;;  %v5931_v2 = vadd.f32 %v5930_v54, %v5929_v9  ;;  %v5645_v12 = vmul.f32 %v5469_v62, %v5198_v44  ;;  %v5700_v36 = vrot.slane %v5686_v49, %v7082_v20  ;;  %v8836_v54 = vld [vmem:[%s7059_s16 + $0x13e] sm:$0xff] }
 0x1bd   : > { %v5168_v13 = vadd.f32 %v5167_v42, %v5166_v57  ;;  %v5701_v38 = vcombine.high %v5693_v61, %v5693_v61  ;;  %v5934_v40 = vsel %vm930_vm0, %v5685_v18, 0.0  ;;  %v5175_v11 = vsel %vm930_vm0, %v8720_v22, 0.0 }
 0x1be   : > { %v5177_v46 = vsel %vm930_vm0, %v5021_v45, 0.0  ;;  %v5933_v24 = vadd.f32 %v5932_v8, %v5931_v2  ;;  %v5179_v28 = vsel %vm930_vm0, %v8736_v26, 0.0  ;;  %v5181_v31 = vsel %vm930_vm0, %v5022_v51, 0.0  ;;  %v5199_v26 = vld [vmem:[%s7094_s20 + $0x264] sm:$0xff] }
 0x1bf   : > { %v5170_v41 = vadd.f32 %v5169_v29, %v5168_v13  ;;  %v5487_v25 = vcombine.low %v5290_v53, %v5294_v30  ;;  %v5936_v21 = vsel %vm930_vm0, %v5693_v61, 0.0  ;;  %v5486_v56 = vcombine.low %v5478_v1, %v5485_v3 }
 0x1c0   : > { %v5488_v32 = vcombine.low %v5298_v43, %v5302_v59  ;;  %v5935_v35 = vadd.f32 %v5934_v40, %v5933_v24  ;;  %v5702_v60 = vcombine.high %v5700_v36, %v5700_v36  ;;  %v5703_v0 = vcombine.high %v5645_v12, %v5645_v12 }
 0x1c1   : > { %v5172_v33 = vadd.f32 %v5171_v52, %v5170_v41  ;;  %v5710_v22 = vrot.slane %v5645_v12, %v7082_v20  ;;  %v5938_v45 = vsel %vm930_vm0, %v5701_v38, 0.0  ;;  %v5183_v42 = vsel %vm930_vm0, %v8742_v19, 0.0 }
 0x1c2   : > { %v5306_v51 = vrot.slane %v8776_v48, %v7074_v14  ;;  %v5937_v29 = vadd.f32 %v5936_v21, %v5935_v35  ;;  %v5310_v52 = vrot.slane %v8776_v48, %v7076_v15  ;;  %v5314_v39 = vrot.slane %v8776_v48, %v7078_v16 }
 0x1c3   : > { %v5174_v58 = vadd.f32 %v5173_v47, %v5172_v33  ;;  %v5318_v63 = vrot.slane %v8776_v48, %v7080_v17  ;;  %v5940_v47 = vsel %vm930_vm0, %v5700_v36, 0.0  ;;  %v5495_v37 = vrot.slane %v5487_v25, %v7082_v20 }
 0x1c4   : > { %v5502_v62 = vrot.slane %v5488_v32, %v7082_v20  ;;  %v5939_v18 = vadd.f32 %v5938_v45, %v5937_v29  ;;  %v5646_v49 = vmul.f32 %v5486_v56, %v5199_v26  ;;  %v5717_v61 = vrot.slane %v5703_v0, %v7082_v20 }
 0x1c5   : > { %v5176_v50 = vadd.f32 %v5175_v11, %v5174_v58  ;;  %v5718_v57 = vcombine.high %v5710_v22, %v5710_v22  ;;  %v5942_v44 = vsel %vm930_vm0, %v5702_v60, 0.0  ;;  %v5185_v48 = vsel %vm930_vm0, %v5038_v27, 0.0 }
 0x1c6   : > { %v5187_v30 = vsel %vm930_vm0, %v8748_v55, 0.0  ;;  %v5941_v9 = vadd.f32 %v5940_v47, %v5939_v18  ;;  %v5189_v43 = vsel %vm930_vm0, %v5039_v34, 0.0  ;;  %v5191_v59 = vsel %vm930_vm0, %v5046_v10, 0.0 }
 0x1c7   : > { %v5178_v53 = vadd.f32 %v5177_v46, %v5176_v50  ;;  %v5504_v19 = vcombine.low %v5306_v51, %v5310_v52  ;;  %v5944_v27 = vsel %vm930_vm0, %v5710_v22, 0.0  ;;  %v5503_v13 = vcombine.low %v5495_v37, %v5502_v62 }
 0x1c8   : > { %v5505_v1 = vcombine.low %v5314_v39, %v5318_v63  ;;  %v5943_v3 = vadd.f32 %v5942_v44, %v5941_v9  ;;  %v5719_v2 = vcombine.high %v5717_v61, %v5717_v61  ;;  %v5720_v12 = vcombine.high %v5646_v49, %v5646_v49 }
 0x1c9   : > { %v5180_v8 = vadd.f32 %v5179_v28, %v5178_v53  ;;  %v5727_v55 = vrot.slane %v5646_v49, %v7082_v20  ;;  %v5946_v34 = vsel %vm930_vm0, %v5718_v57, 0.0  ;;  %v5322_v10 = vrot.slane %v8836_v54, %v7061_v4 }
 0x1ca   : > { %v5326_v38 = vrot.slane %v8836_v54, %v7063_v5  ;;  %v5945_v40 = vadd.f32 %v5944_v27, %v5943_v3  ;;  %v5330_v41 = vrot.slane %v8836_v54, %v7065_v6  ;;  %v5334_v11 = vrot.slane %v8836_v54, %v7067_v7 }
 0x1cb   : > { %v5182_v36 = vadd.f32 %v5181_v31, %v5180_v8  ;;  %v5338_v46 = vrot.slane %v8836_v54, %v7074_v14  ;;  %v5948_v24 = vsel %vm930_vm0, %v5717_v61, 0.0  ;;  %v8854_v31 = vld [vmem:[%s7059_s16 + $0x146] sm:$0xff]  ;;  %v5512_v25 = vrot.slane %v5504_v19, %v7082_v20  ;;  %v5201_v61 = vld [vmem:[%s7094_s20 + $0x274] sm:$0xff] }
 0x1cc   : > { %v5519_v21 = vrot.slane %v5505_v1, %v7082_v20  ;;  %v5947_v33 = vadd.f32 %v5946_v34, %v5945_v40  ;;  %v5647_v56 = vmul.f32 %v5503_v13, %v5200_v23  ;;  %v5734_v32 = vrot.slane %v5720_v12, %v7082_v20 }
 0x1cd   : > { %v5184_v28 = vadd.f32 %v5183_v42, %v5182_v36  ;;  %v5735_v35 = vcombine.high %v5727_v55, %v5727_v55  ;;  %v5950_v60 = vsel %vm930_vm0, %v5719_v2, 0.0  ;;  %v5342_v22 = vrot.slane %v8836_v54, %v7076_v15 }
 0x1ce   : > { %v5346_v45 = vrot.slane %v8836_v54, %v7078_v16  ;;  %v5949_v58 = vadd.f32 %v5948_v24, %v5947_v33  ;;  %v5350_v42 = vrot.slane %v8836_v54, %v7080_v17  ;;  %v5354_v26 = vrot.slane %v8854_v31, %v7061_v4 }
 0x1cf   : > { %v5186_v0 = vadd.f32 %v5185_v48, %v5184_v28  ;;  %v5521_v51 = vcombine.low %v5322_v10, %v5326_v38  ;;  %v5952_v29 = vsel %vm930_vm0, %v5727_v55, 0.0  ;;  %v5520_v39 = vcombine.low %v5512_v25, %v5519_v21  ;;  %v5214_v48 = vld [vmem:[%s7059_s16 + $0x14e] sm:$0xff]  ;;  %v5202_v25 = vld [vmem:[%s7094_s20 + $0x27c] sm:$0xff] }
 0x1d0   : > { %v5522_v63 = vcombine.low %v5330_v41, %v5334_v11  ;;  %v5951_v47 = vadd.f32 %v5950_v60, %v5949_v58  ;;  %v5736_v50 = vcombine.high %v5734_v32, %v5734_v32  ;;  %v5737_v37 = vcombine.high %v5647_v56, %v5647_v56 }
 0x1d1   : > { %v5188_v52 = vadd.f32 %v5187_v30, %v5186_v0  ;;  %v5744_v62 = vrot.slane %v5647_v56, %v7082_v20  ;;  %v5954_v18 = vsel %vm930_vm0, %v5735_v35, 0.0  ;;  %v5358_v57 = vrot.slane %v8854_v31, %v7063_v5 }
 0x1d2   : > { %v5362_v44 = vrot.slane %v8854_v31, %v7065_v6  ;;  %v5953_v53 = vadd.f32 %v5952_v29, %v5951_v47  ;;  %v5366_v30 = vrot.slane %v8854_v31, %v7067_v7  ;;  %v5370_v9 = vrot.slane %v8854_v31, %v7074_v14 }
 0x1d3   : > { %v5190_v49 = vadd.f32 %v5189_v43, %v5188_v52  ;;  %v5374_v54 = vrot.slane %v8854_v31, %v7076_v15  ;;  %v5956_v43 = vsel %vm930_vm0, %v5734_v32, 0.0  ;;  %v5529_v27 = vrot.slane %v5521_v51, %v7082_v20 }
 0x1d4   : > { %v5536_v8 = vrot.slane %v5522_v63, %v7082_v20  ;;  %v5955_v13 = vadd.f32 %v5954_v18, %v5953_v53  ;;  %v5648_v1 = vmul.f32 %v5520_v39, %v5201_v61  ;;  %v5751_v3 = vrot.slane %v5737_v37, %v7082_v20 }
 0x1d5   : > { %v5192_v19 = vadd.f32 %v5191_v59, %v5190_v49  ;;  %v5752_v2 = vcombine.high %v5744_v62, %v5744_v62  ;;  %v5958_v12 = vsel %vm930_vm0, %v5736_v50, 0.0  ;;  %v5378_v55 = vrot.slane %v8854_v31, %v7078_v16 }
 0x1d6   : > { %v5382_v34 = vrot.slane %v8854_v31, %v7080_v17  ;;  %v5386_v59 = vrot.slane %v5214_v48, %v7061_v4  ;;  %v5957_v36 = vadd.f32 %v5956_v43, %v5955_v13  ;;  %v5390_v23 = vrot.slane %v5214_v48, %v7063_v5 }
 0x1d7   : > { %5193 = vadd.xlane.f32.xlu1 %v5192_v19  ;;  %v5538_v10 = vcombine.low %v5338_v46, %v5342_v22  ;;  %v5539_v38 = vcombine.low %v5346_v45, %v5350_v42  ;;  %v5960_v40 = vsel %vm930_vm0, %v5744_v62, 0.0  ;;  %v5394_v41 = vrot.slane %v5214_v48, %v7065_v6 }
 0x1d8   : > { %v5537_v11 = vcombine.low %v5529_v27, %v5536_v8  ;;  %v5754_v24 = vcombine.high %v5648_v1, %v5648_v1  ;;  %v5959_v28 = vadd.f32 %v5958_v12, %v5957_v36  ;;  %v5398_v21 = vrot.slane %v5214_v48, %v7067_v7  ;;  %v6042_v12 = vld [vmem:[%s7059_s16 + $0x157] sm:$0xff] }
 0x1d9   : > { %v5753_v33 = vcombine.high %v5751_v3, %v5751_v3  ;;  %v5761_v31 = vrot.slane %v5648_v1, %v7082_v20  ;;  %v5962_v56 = vsel %vm930_vm0, %v5752_v2, 0.0  ;;  %v5402_v32 = vrot.slane %v5214_v48, %v7074_v14 }
 0x1da   : > { %v5406_v46 = vrot.slane %v5214_v48, %v7076_v15  ;;  %v5410_v35 = vrot.slane %v5214_v48, %v7078_v16  ;;  %v5961_v60 = vadd.f32 %v5960_v40, %v5959_v28  ;;  %v5414_v0 = vrot.slane %v5214_v48, %v7080_v17 }
 0x1db   : > { %v5546_v22 = vrot.slane %v5538_v10, %v7082_v20  ;;  %v5553_v45 = vrot.slane %v5539_v38, %v7082_v20  ;;  %v5964_v58 = vsel %vm930_vm0, %v5751_v3, 0.0  ;;  %v5555_v42 = vcombine.low %v5354_v26, %v5358_v57  ;;  %v5203_v57 = vld [vmem:[%s7094_s20 + $0x284] sm:$0xff] }
 0x1dc   : > { %v5649_v51 = vmul.f32 %v5537_v11, %v5202_v25  ;;  %v5768_v29 = vrot.slane %v5754_v24, %v7082_v20  ;;  %v5963_v52 = vadd.f32 %v5962_v56, %v5961_v60  ;;  %v5556_v39 = vcombine.low %v5362_v44, %v5366_v30  ;;  %v5204_v56 = vld [vmem:[%s7094_s20 + $0x28c] sm:$0xff] }
 0x1dd   : > { %v5572_v63 = vcombine.low %v5370_v9, %v5374_v54  ;;  %v5769_v47 = vcombine.high %v5761_v31, %v5761_v31  ;;  %v5966_v50 = vsel %vm930_vm0, %v5753_v33, 0.0  ;;  %v5573_v37 = vcombine.low %v5378_v55, %v5382_v34 }
 0x1de   : > { %v5589_v62 = vcombine.low %v5386_v59, %v5390_v23  ;;  %v5590_v18 = vcombine.low %v5394_v41, %v5398_v21  ;;  %v5965_v49 = vadd.f32 %v5964_v58, %v5963_v52  ;;  %v5554_v61 = vcombine.low %v5546_v22, %v5553_v45  ;;  %v6963_v23 = vld [vmem:[%s7059_s16 + $0x156] ss:$0 sm:$0xff] }
 0x1df   : > { %v5606_v53 = vcombine.low %v5402_v32, %v5406_v46  ;;  %v5607_v48 = vcombine.low %v5410_v35, %v5414_v0  ;;  %v5968_v26 = vsel %vm930_vm0, %v5761_v31, 0.0  ;;  %v5770_v43 = vcombine.high %v5768_v29, %v5768_v29  ;;  %v5205_v32 = vld [vmem:[%s7094_s20 + $0x294] sm:$0xff] }
 0x1e0   : > { %v5771_v19 = vcombine.high %v5649_v51, %v5649_v51  ;;  %v5778_v44 = vrot.slane %v5649_v51, %v7082_v20  ;;  %v5967_v30 = vadd.f32 %v5966_v50, %v5965_v49  ;;  %v5563_v9 = vrot.slane %v5555_v42, %v7082_v20 }
 0x1e1   : > { %v5570_v54 = vrot.slane %v5556_v39, %v7082_v20  ;;  %v5580_v27 = vrot.slane %v5572_v63, %v7082_v20  ;;  %v5970_v8 = vsel %vm930_vm0, %v5769_v47, 0.0  ;;  %v5587_v13 = vrot.slane %v5573_v37, %v7082_v20  ;;  %v5206_v37 = vld [vmem:[%s7094_s20 + $0x29c] sm:$0xff] }
 0x1e2   : > { %v5597_v1 = vrot.slane %v5589_v62, %v7082_v20  ;;  %v5604_v3 = vrot.slane %v5590_v18, %v7082_v20  ;;  %v5969_v2 = vadd.f32 %v5968_v26, %v5967_v30  ;;  %v5614_v55 = vrot.slane %v5606_v53, %v7082_v20  ;;  %v5208_v62 = vld [vmem:[%s7094_s20 + $0x2ac] sm:$0x3] }
 0x1e3   : > { %v5621_v34 = vrot.slane %v5607_v48, %v7082_v20  ;;  %v5650_v59 = vmul.f32 %v5554_v61, %v5203_v57  ;;  %v5972_v36 = vsel %vm930_vm0, %v5768_v29, 0.0  ;;  %v5785_v10 = vrot.slane %v5771_v19, %v7082_v20  ;;  %v5207_v48 = vld [vmem:[%s7094_s20 + $0x2a4] sm:$0xff] }
 0x1e4   : > { %v5786_v38 = vcombine.high %v5778_v44, %v5778_v44  ;;  %v5971_v40 = vadd.f32 %v5970_v8, %v5969_v2  ;;  %v5974_v41 = vsel %vm930_vm0, %v5770_v43, 0.0  ;;  %v6059_v11 = vrot.slane %v6042_v12, %v7061_v4  ;;  %v8952_v2 = vld [vmem:[%s7059_s16 + $0x15f] sm:$0xff] }
 0x1e5   : > { %v6063_v24 = vrot.slane %v6042_v12, %v7063_v5  ;;  %v6067_v28 = vrot.slane %v6042_v12, %v7065_v6  ;;  %v6071_v25 = vrot.slane %v6042_v12, %v7067_v7  ;;  %v5571_v21 = vcombine.low %v5563_v9, %v5570_v54 }
 0x1e6   : > { %v5588_v33 = vcombine.low %v5580_v27, %v5587_v13  ;;  %v5973_v31 = vadd.f32 %v5972_v36, %v5971_v40  ;;  %v5605_v46 = vcombine.low %v5597_v1, %v5604_v3  ;;  %v5629_v35 = vrot.slane %v6963_v23, %v7082_v20 }
 0x1e7   : > { %v5976_v60 = vsel %vm930_vm0, %v5778_v44, 0.0  ;;  %v5622_v0 = vcombine.low %v5614_v55, %v5621_v34  ;;  %v5788_v22 = vcombine.high %v5650_v59, %v5650_v59  ;;  %v5795_v45 = vrot.slane %v5650_v59, %v7082_v20 }
 0x1e8   : > { %v5975_v58 = vadd.f32 %v5974_v41, %v5973_v31  ;;  %v5787_v42 = vcombine.high %v5785_v10, %v5785_v10  ;;  %v5978_v51 = vsel %vm930_vm0, %v5786_v38, 0.0  ;;  %v6252_v29 = vcombine.low %v6059_v11, %v6063_v24 }
 0x1e9   : > { %v6253_v52 = vcombine.low %v6067_v28, %v6071_v25  ;;  %v5651_v39 = vmul.f32 %v5571_v21, %v5204_v56  ;;  %v5652_v63 = vmul.f32 %v5588_v33, %v5205_v32  ;;  %v5980_v50 = vsel %vm930_vm0, %v5785_v10, 0.0  ;;  %v6029_v28 = vld [vmem:[%s7094_s20 + $0x2ae] sm:$0xff] }
 0x1ea   : > { %v5977_v47 = vadd.f32 %v5976_v60, %v5975_v58  ;;  %v6075_v18 = vrot.slane %v6042_v12, %v7074_v14  ;;  %v6079_v49 = vrot.slane %v6042_v12, %v7076_v15  ;;  %v6083_v61 = vrot.slane %v6042_v12, %v7078_v16 }
 0x1eb   : > { %v6087_v53 = vrot.slane %v6042_v12, %v7080_v17  ;;  %v5802_v26 = vrot.slane %v5788_v22, %v7082_v20  ;;  %v5803_v57 = vcombine.high %v5795_v45, %v5795_v45  ;;  %v5805_v43 = vcombine.high %v5651_v39, %v5651_v39 }
 0x1ec   : > { %v5979_v19 = vadd.f32 %v5978_v51, %v5977_v47  ;;  %v5822_v44 = vcombine.high %v5652_v63, %v5652_v63  ;;  %v5982_v30 = vsel %vm930_vm0, %v5787_v42, 0.0  ;;  %v6260_v9 = vrot.slane %v6252_v29, %v7082_v20 }
 0x1ed   : > { %v6267_v54 = vrot.slane %v6253_v52, %v7082_v20  ;;  %v5653_v27 = vmul.f32 %v5605_v46, %v5206_v37  ;;  %v8948_v8 = vmul.f32 %v5629_v35, %v5208_v62  ;;  %v5654_v1 = vmul.f32 %v5622_v0, %v5207_v48 }
 0x1ee   : > { %v5981_v13 = vadd.f32 %v5980_v50, %v5979_v19  ;;  %v5984_v3 = vsel %vm930_vm0, %v5795_v45, 0.0  ;;  %v6269_v12 = vcombine.low %v6075_v18, %v6079_v49  ;;  %v6270_v55 = vcombine.low %v6083_v61, %v6087_v53  ;;  %v6030_v53 = vld [vmem:[%s7094_s20 + $0x2b6] sm:$0xff] }
 0x1ef   : > { %v5804_v34 = vcombine.high %v5802_v26, %v5802_v26  ;;  %v5812_v59 = vrot.slane %v5651_v39, %v7082_v20  ;;  %v5819_v36 = vrot.slane %v5805_v43, %v7082_v20  ;;  %v5829_v10 = vrot.slane %v5652_v63, %v7082_v20 }
 0x1f0   : > { %v5983_v23 = vadd.f32 %v5982_v30, %v5981_v13  ;;  %v8958_v38 = vrot.slane %v5822_v44, %v7082_v20  ;;  %v5986_v40 = vsel %vm930_vm0, %v5803_v57, 0.0  ;;  %v6268_v41 = vcombine.low %v6260_v9, %v6267_v54 }
 0x1f1   : > { %v5988_v24 = vsel %vm930_vm0, %v5802_v26, 0.0  ;;  %v6091_v25 = vrot.slane %v8952_v2, %v7061_v4  ;;  %v6095_v21 = vrot.slane %v8952_v2, %v7063_v5  ;;  %v6099_v33 = vrot.slane %v8952_v2, %v7065_v6 }
 0x1f2   : > { %v5985_v11 = vadd.f32 %v5984_v3, %v5983_v23  ;;  %v6103_v31 = vrot.slane %v8952_v2, %v7067_v7  ;;  %v6277_v56 = vrot.slane %v6269_v12, %v7082_v20  ;;  %v6284_v32 = vrot.slane %v6270_v55, %v7082_v20  ;;  %v9014_v23 = vld [vmem:[%s7059_s16 + $0x167] sm:$0xff] }
 0x1f3   : > { %v5820_v46 = vcombine.high %v5812_v59, %v5812_v59  ;;  %v5839_v35 = vcombine.high %v5653_v27, %v5653_v27  ;;  %v8974_v60 = vrot.slane %v5653_v27, %v7082_v20  ;;  %v5821_v22 = vcombine.high %v5819_v36, %v5819_v36 }
 0x1f4   : > { %v5987_v0 = vadd.f32 %v5986_v40, %v5985_v11  ;;  %v5837_v45 = vcombine.high %v5829_v10, %v5829_v10  ;;  %v5990_v58 = vsel %vm930_vm0, %v5804_v34, 0.0  ;;  %v6476_v42 = vmul.f32 %v6268_v41, %v6029_v28 }
 0x1f5   : > { %v5838_v51 = vcombine.high %v8958_v38, %v8958_v38  ;;  %v5856_v29 = vcombine.high %v5654_v1, %v5654_v1  ;;  %v5992_v39 = vsel %vm930_vm0, %v5812_v59, 0.0  ;;  %v6285_v63 = vcombine.low %v6277_v56, %v6284_v32  ;;  %v6031_v32 = vld [vmem:[%s7094_s20 + $0x2be] sm:$0xff] }
 0x1f6   : > { %v5989_v52 = vadd.f32 %v5988_v24, %v5987_v0  ;;  %v6286_v47 = vcombine.low %v6091_v25, %v6095_v21  ;;  %v6287_v50 = vcombine.low %v6099_v33, %v6103_v31  ;;  %v6502_v37 = vcombine.high %v6476_v42, %v6476_v42 }
 0x1f7   : > { %v8981_v62 = vrot.slane %v5839_v35, %v7082_v20  ;;  %v5854_v18 = vcombine.high %v8974_v60, %v8974_v60  ;;  %v8986_v49 = vrot.slane %v5654_v1, %v7082_v20  ;;  %v5994_v48 = vsel %vm930_vm0, %v5820_v46, 0.0 }
 0x1f8   : > { %v5991_v61 = vadd.f32 %v5990_v58, %v5989_v52  ;;  %v5996_v26 = vsel %vm930_vm0, %v5819_v36, 0.0  ;;  %v6107_v57 = vrot.slane %v8952_v2, %v7074_v14  ;;  %v6509_v43 = vrot.slane %v6476_v42, %v7082_v20 }
 0x1f9   : > { %v6111_v44 = vrot.slane %v8952_v2, %v7076_v15  ;;  %v6115_v30 = vrot.slane %v8952_v2, %v7078_v16  ;;  %v6119_v9 = vrot.slane %v8952_v2, %v7080_v17  ;;  %v6294_v54 = vrot.slane %v6286_v47, %v7082_v20 }
 0x1fa   : > { %v5993_v19 = vadd.f32 %v5992_v39, %v5991_v61  ;;  %v6301_v27 = vrot.slane %v6287_v50, %v7082_v20  ;;  %v6477_v13 = vmul.f32 %v6285_v63, %v6030_v53  ;;  %v6516_v1 = vrot.slane %v6502_v37, %v7082_v20 }
 0x1fb   : > { %v5855_v3 = vcombine.high %v8981_v62, %v8981_v62  ;;  %v9006_v12 = vrot.slane %v5856_v29, %v7082_v20  ;;  %v5879_v55 = vrot.slane %v8948_v8, %v7082_v20  ;;  %v5998_v2 = vsel %vm930_vm0, %v5821_v22, 0.0 }
 0x1fc   : > { %v5995_v34 = vadd.f32 %v5994_v48, %v5993_v19  ;;  %v6000_v59 = vsel %vm930_vm0, %v5829_v10, 0.0  ;;  %v6002_v36 = vsel %vm930_vm0, %v5837_v45, 0.0  ;;  %v6517_v40 = vcombine.high %v6509_v43, %v6509_v43 }
 0x1fd   : > { %v6004_v11 = vsel %vm930_vm0, %v8958_v38, 0.0  ;;  %v6303_v24 = vcombine.low %v6107_v57, %v6111_v44  ;;  %v6304_v28 = vcombine.low %v6115_v30, %v6119_v9  ;;  %v6302_v25 = vcombine.low %v6294_v54, %v6301_v27 }
 0x1fe   : > { %v5997_v41 = vadd.f32 %v5996_v26, %v5995_v34  ;;  %v6518_v21 = vcombine.high %v6516_v1, %v6516_v1  ;;  %v6519_v33 = vcombine.high %v6477_v13, %v6477_v13  ;;  %v6526_v31 = vrot.slane %v6477_v13, %v7082_v20 }
 0x1ff   : > { %v6123_v10 = vrot.slane %v9014_v23, %v7061_v4  ;;  %v6127_v46 = vrot.slane %v9014_v23, %v7063_v5  ;;  %v6762_v35 = vsel %vm930_vm0, %v6509_v43, 0.0  ;;  %v6131_v38 = vrot.slane %v9014_v23, %v7065_v6 }
 0x200   : > { %v5999_v56 = vadd.f32 %v5998_v2, %v5997_v41  ;;  %v6135_v0 = vrot.slane %v9014_v23, %v7067_v7  ;;  %v6763_v22 = vsel %vm930_vm0, %v6517_v40, 0.0  ;;  %v6765_v45 = vsel %vm930_vm0, %v6516_v1, 0.0 }
 0x201   : > { %v6311_v42 = vrot.slane %v6303_v24, %v7082_v20  ;;  %v6318_v29 = vrot.slane %v6304_v28, %v7082_v20  ;;  %v6764_v52 = vadd.f32 %v6763_v22, %v6762_v35  ;;  %v6478_v39 = vmul.f32 %v6302_v25, %v6031_v32  ;;  %v9070_v22 = vld [vmem:[%s7059_s16 + $0x16f] sm:$0xff] }
 0x202   : > { %v6001_v58 = vadd.f32 %v6000_v59, %v5999_v56  ;;  %v6533_v63 = vrot.slane %v6519_v33, %v7082_v20  ;;  %v6534_v47 = vcombine.high %v6526_v31, %v6526_v31  ;;  %v6767_v50 = vsel %vm930_vm0, %v6518_v21, 0.0 }
 0x203   : > { %v5871_v37 = vcombine.high %v8986_v49, %v8986_v49  ;;  %v6006_v53 = vsel %vm930_vm0, %v5838_v51, 0.0  ;;  %v6766_v48 = vadd.f32 %v6765_v45, %v6764_v52  ;;  %v6008_v26 = vsel %vm930_vm0, %v8974_v60, 0.0  ;;  %v6032_v60 = vld [vmem:[%s7094_s20 + $0x2c6] sm:$0xff] }
 0x204   : > { %v6003_v61 = vadd.f32 %v6002_v36, %v6001_v58  ;;  %v6010_v57 = vsel %vm930_vm0, %v5854_v18, 0.0  ;;  %v6320_v43 = vcombine.low %v6123_v10, %v6127_v46  ;;  %v6769_v19 = vsel %vm930_vm0, %v6526_v31, 0.0 }
 0x205   : > { %v6319_v30 = vcombine.low %v6311_v42, %v6318_v29  ;;  %v6321_v9 = vcombine.low %v6131_v38, %v6135_v0  ;;  %v6768_v54 = vadd.f32 %v6767_v50, %v6766_v48  ;;  %v6535_v27 = vcombine.high %v6533_v63, %v6533_v63 }
 0x206   : > { %v6005_v44 = vadd.f32 %v6004_v11, %v6003_v61  ;;  %v6536_v13 = vcombine.high %v6478_v39, %v6478_v39  ;;  %v6543_v1 = vrot.slane %v6478_v39, %v7082_v20  ;;  %v6771_v51 = vsel %vm930_vm0, %v6534_v47, 0.0 }
 0x207   : > { %v6012_v2 = vsel %vm930_vm0, %v8981_v62, 0.0  ;;  %v6139_v18 = vrot.slane %v9014_v23, %v7074_v14  ;;  %v6770_v59 = vadd.f32 %v6769_v19, %v6768_v54  ;;  %v6143_v36 = vrot.slane %v9014_v23, %v7076_v15 }
 0x208   : > { %v6007_v34 = vadd.f32 %v6006_v53, %v6005_v44  ;;  %v6147_v40 = vrot.slane %v9014_v23, %v7078_v16  ;;  %v6151_v41 = vrot.slane %v9014_v23, %v7080_v17  ;;  %v6773_v11 = vsel %vm930_vm0, %v6533_v63, 0.0 }
 0x209   : > { %v6328_v28 = vrot.slane %v6320_v43, %v7082_v20  ;;  %v6335_v25 = vrot.slane %v6321_v9, %v7082_v20  ;;  %v6772_v21 = vadd.f32 %v6771_v51, %v6770_v59  ;;  %v6479_v33 = vmul.f32 %v6319_v30, %v6032_v60 }
 0x20a   : > { %v6009_v24 = vadd.f32 %v6008_v26, %v6007_v34  ;;  %v6550_v31 = vrot.slane %v6536_v13, %v7082_v20  ;;  %v6551_v56 = vcombine.high %v6543_v1, %v6543_v1  ;;  %v6775_v32 = vsel %vm930_vm0, %v6535_v27, 0.0 }
 0x20b   : > { %v5872_v10 = vcombine.high %v9006_v12, %v9006_v12  ;;  %v6014_v23 = vsel %vm930_vm0, %v5855_v3, 0.0  ;;  %v6774_v35 = vadd.f32 %v6773_v11, %v6772_v21  ;;  %v6016_v38 = vsel %vm930_vm0, %v8986_v49, 0.0 }
 0x20c   : > { %v6011_v46 = vadd.f32 %v6010_v57, %v6009_v24  ;;  %v6018_v0 = vsel %vm930_vm0, %v5871_v37, 0.0  ;;  %v6337_v45 = vcombine.low %v6139_v18, %v6143_v36  ;;  %v6777_v58 = vsel %vm930_vm0, %v6543_v1, 0.0  ;;  %v6033_v37 = vld [vmem:[%s7094_s20 + $0x2ce] sm:$0xff] }
 0x20d   : > { %v6336_v29 = vcombine.low %v6328_v28, %v6335_v25  ;;  %v6338_v52 = vcombine.low %v6147_v40, %v6151_v41  ;;  %v6776_v39 = vadd.f32 %v6775_v32, %v6774_v35  ;;  %v6552_v63 = vcombine.high %v6550_v31, %v6550_v31 }
 0x20e   : > { %v6013_v42 = vadd.f32 %v6012_v2, %v6011_v46  ;;  %v6553_v62 = vcombine.high %v6479_v33, %v6479_v33  ;;  %v6560_v3 = vrot.slane %v6479_v33, %v7082_v20  ;;  %v6779_v47 = vsel %vm930_vm0, %v6551_v56, 0.0  ;;  %v6034_v33 = vld [vmem:[%s7094_s20 + $0x2d6] sm:$0xff] }
 0x20f   : > { %v6020_v49 = vsel %vm930_vm0, %v9006_v12, 0.0  ;;  %v6155_v61 = vrot.slane %v9070_v22, %v7061_v4  ;;  %v6778_v53 = vadd.f32 %v6777_v58, %v6776_v39  ;;  %v6159_v48 = vrot.slane %v9070_v22, %v7063_v5 }
 0x210   : > { %v6015_v50 = vadd.f32 %v6014_v23, %v6013_v42  ;;  %v6163_v26 = vrot.slane %v9070_v22, %v7065_v6  ;;  %v6167_v57 = vrot.slane %v9070_v22, %v7067_v7  ;;  %v6781_v43 = vsel %vm930_vm0, %v6550_v31, 0.0 }
 0x211   : > { %v6345_v44 = vrot.slane %v6337_v45, %v7082_v20  ;;  %v6352_v12 = vrot.slane %v6338_v52, %v7082_v20  ;;  %v6780_v30 = vadd.f32 %v6779_v47, %v6778_v53  ;;  %v6480_v9 = vmul.f32 %v6336_v29, %v6033_v37 }
 0x212   : > { %v6017_v19 = vadd.f32 %v6016_v38, %v6015_v50  ;;  %v6567_v54 = vrot.slane %v6553_v62, %v7082_v20  ;;  %v6568_v27 = vcombine.high %v6560_v3, %v6560_v3  ;;  %v6783_v13 = vsel %vm930_vm0, %v6552_v63, 0.0 }
 0x213   : > { %v6782_v51 = vadd.f32 %v6781_v43, %v6780_v30  ;;  %v6022_v34 = vsel %vm930_vm0, %v5872_v10, 0.0  ;;  %v6024_v2 = vsel %vm930_vm0, %v5879_v55, 0.0  ;;  %v6354_v60 = vcombine.low %v6155_v61, %v6159_v48  ;;  %v6035_v61 = vld [vmem:[%s7094_s20 + $0x2de] sm:$0xff] }
 0x214   : > { %v6019_v1 = vadd.f32 %v6018_v0, %v6017_v19  ;;  %v6785_v18 = vsel %vm930_vm0, %v6560_v3, 0.0  ;;  %v6353_v36 = vcombine.low %v6345_v44, %v6352_v12  ;;  %v6355_v40 = vcombine.low %v6163_v26, %v6167_v57 }
 0x215   : > { %v6784_v41 = vadd.f32 %v6783_v13, %v6782_v51  ;;  %v6569_v11 = vcombine.high %v6567_v54, %v6567_v54  ;;  %v6570_v24 = vcombine.high %v6480_v9, %v6480_v9  ;;  %v6577_v28 = vrot.slane %v6480_v9, %v7082_v20 }
 0x216   : > { %v6021_v59 = vadd.f32 %v6020_v49, %v6019_v1  ;;  %v6787_v25 = vsel %vm930_vm0, %v6568_v27, 0.0  ;;  %v6171_v8 = vrot.slane %v9070_v22, %v7074_v14  ;;  %v6175_v55 = vrot.slane %v9070_v22, %v7076_v15 }
 0x217   : > { %v6786_v31 = vadd.f32 %v6785_v18, %v6784_v41  ;;  %v6179_v56 = vrot.slane %v9070_v22, %v7078_v16  ;;  %v6183_v32 = vrot.slane %v9070_v22, %v7080_v17  ;;  %v6789_v10 = vsel %vm930_vm0, %v6567_v54, 0.0  ;;  %v6046_v22 = vld [vmem:[%s7059_s16 + $0x177] sm:$0xff] }
 0x218   : > { %v6023_v21 = vadd.f32 %v6022_v34, %v6021_v59  ;;  %v6362_v23 = vrot.slane %v6354_v60, %v7082_v20  ;;  %v6369_v35 = vrot.slane %v6355_v40, %v7082_v20  ;;  %v6481_v0 = vmul.f32 %v6353_v36, %v6034_v33 }
 0x219   : > { %v6788_v38 = vadd.f32 %v6787_v25, %v6786_v31  ;;  %v6584_v45 = vrot.slane %v6570_v24, %v7082_v20  ;;  %v6585_v58 = vcombine.high %v6577_v28, %v6577_v28  ;;  %v6791_v42 = vsel %vm930_vm0, %v6569_v11, 0.0  ;;  %v6036_v11 = vld [vmem:[%s7094_s20 + $0x2e6] sm:$0xff] }
 0x21a   : > { %v6025_v46 = vadd.f32 %v6024_v2, %v6023_v21  ;;  %v6793_v52 = vsel %vm930_vm0, %v6577_v28, 0.0  ;;  %v6370_v39 = vcombine.low %v6362_v23, %v6369_v35  ;;  %v6371_v63 = vcombine.low %v6171_v8, %v6175_v55 }
 0x21b   : > { %v6790_v29 = vadd.f32 %v6789_v10, %v6788_v38  ;;  %v6372_v62 = vcombine.low %v6179_v56, %v6183_v32  ;;  %v6586_v47 = vcombine.high %v6584_v45, %v6584_v45  ;;  %v6587_v50 = vcombine.high %v6481_v0, %v6481_v0 }
 0x21c   : > { %6026 = vadd.xlane.f32.xlu0 %v6025_v46  ;;  %v6594_v49 = vrot.slane %v6481_v0, %v7082_v20  ;;  %v6795_v37 = vsel %vm930_vm0, %v6585_v58, 0.0  ;;  %v6187_v48 = vrot.slane %v6046_v22, %v7061_v4  ;;  %v6191_v26 = vrot.slane %v6046_v22, %v7063_v5  ;;  %v6047_v0 = vld [vmem:[%s7059_s16 + $0x17f] sm:$0xff] }
 0x21d   : > { %v6792_v3 = vadd.f32 %v6791_v42, %v6790_v29  ;;  %v6195_v57 = vrot.slane %v6046_v22, %v7065_v6  ;;  %v6797_v43 = vsel %vm930_vm0, %v6584_v45, 0.0  ;;  %v6199_v19 = vrot.slane %v6046_v22, %v7067_v7 }
 0x21e   : > { %v6379_v44 = vrot.slane %v6371_v63, %v7082_v20  ;;  %v6386_v12 = vrot.slane %v6372_v62, %v7082_v20  ;;  %v6482_v9 = vmul.f32 %v6370_v39, %v6035_v61  ;;  %v6601_v54 = vrot.slane %v6587_v50, %v7082_v20  ;;  %v6037_v62 = vld [vmem:[%s7094_s20 + $0x2ee] sm:$0xff] }
 0x21f   : > { %v6794_v53 = vadd.f32 %v6793_v52, %v6792_v3  ;;  %v6602_v27 = vcombine.high %v6594_v49, %v6594_v49  ;;  %v6799_v13 = vsel %vm930_vm0, %v6586_v47, 0.0  ;;  %v6801_v51 = vsel %vm930_vm0, %v6594_v49, 0.0 }
 0x220   : > { %v6387_v34 = vcombine.low %v6379_v44, %v6386_v12  ;;  %v6388_v2 = vcombine.low %v6187_v48, %v6191_v26  ;;  %v6389_v60 = vcombine.low %v6195_v57, %v6199_v19  ;;  %v6603_v59 = vcombine.high %v6601_v54, %v6601_v54 }
 0x221   : > { %v6796_v30 = vadd.f32 %v6795_v37, %v6794_v53  ;;  %v6604_v36 = vcombine.high %v6482_v9, %v6482_v9  ;;  %v6611_v40 = vrot.slane %v6482_v9, %v7082_v20  ;;  %v6803_v41 = vsel %vm930_vm0, %v6602_v27, 0.0 }
 0x222   : > { %v6203_v28 = vrot.slane %v6046_v22, %v7074_v14  ;;  %v6207_v25 = vrot.slane %v6046_v22, %v7076_v15  ;;  %v6211_v21 = vrot.slane %v6046_v22, %v7078_v16  ;;  %v6805_v33 = vsel %vm930_vm0, %v6601_v54, 0.0 }
 0x223   : > { %v6798_v1 = vadd.f32 %v6797_v43, %v6796_v30  ;;  %v6215_v8 = vrot.slane %v6046_v22, %v7080_v17  ;;  %v6396_v31 = vrot.slane %v6388_v2, %v7082_v20  ;;  %v6403_v55 = vrot.slane %v6389_v60, %v7082_v20 }
 0x224   : > { %v6483_v32 = vmul.f32 %v6387_v34, %v6036_v11  ;;  %v6618_v10 = vrot.slane %v6604_v36, %v7082_v20  ;;  %v6619_v46 = vcombine.high %v6611_v40, %v6611_v40  ;;  %v6807_v23 = vsel %vm930_vm0, %v6603_v59, 0.0 }
 0x225   : > { %v6800_v18 = vadd.f32 %v6799_v13, %v6798_v1  ;;  %v6809_v38 = vsel %vm930_vm0, %v6611_v40, 0.0  ;;  %v6404_v45 = vcombine.low %v6396_v31, %v6403_v55  ;;  %v6405_v58 = vcombine.low %v6203_v28, %v6207_v25  ;;  %v6038_v1 = vld [vmem:[%s7094_s20 + $0x2f6] sm:$0xff] }
 0x226   : > { %v6406_v42 = vcombine.low %v6211_v21, %v6215_v8  ;;  %v6620_v52 = vcombine.high %v6618_v10, %v6618_v10  ;;  %v6621_v22 = vcombine.high %v6483_v32, %v6483_v32  ;;  %v6628_v39 = vrot.slane %v6483_v32, %v7082_v20  ;;  %v6039_v32 = vld [vmem:[%s7094_s20 + $0x2fe] sm:$0xff] }
 0x227   : > { %v6802_v24 = vadd.f32 %v6801_v51, %v6800_v18  ;;  %v6811_v63 = vsel %vm930_vm0, %v6619_v46, 0.0  ;;  %v6219_v47 = vrot.slane %v6047_v0, %v7061_v4  ;;  %v6223_v50 = vrot.slane %v6047_v0, %v7063_v5 }
 0x228   : > { %v6227_v49 = vrot.slane %v6047_v0, %v7065_v6  ;;  %v6813_v37 = vsel %vm930_vm0, %v6618_v10, 0.0  ;;  %v6231_v61 = vrot.slane %v6047_v0, %v7067_v7  ;;  %v6413_v53 = vrot.slane %v6405_v58, %v7082_v20 }
 0x229   : > { %v6804_v56 = vadd.f32 %v6803_v41, %v6802_v24  ;;  %v6420_v48 = vrot.slane %v6406_v42, %v7082_v20  ;;  %v6484_v57 = vmul.f32 %v6404_v45, %v6037_v62  ;;  %v6635_v43 = vrot.slane %v6621_v22, %v7082_v20 }
 0x22a   : > { %v6636_v19 = vcombine.high %v6628_v39, %v6628_v39  ;;  %v6815_v4 = vsel %vm930_vm0, %v6620_v52, 0.0  ;;  %v6817_v5 = vsel %vm930_vm0, %v6628_v39, 0.0  ;;  %v6422_v12 = vcombine.low %v6219_v47, %v6223_v50  ;;  %v6040_v50 = vld [vmem:[%s7094_s20 + $0x306] sm:$0xff] }
 0x22b   : > { %v6806_v35 = vadd.f32 %v6805_v33, %v6804_v56  ;;  %v6421_v6 = vcombine.low %v6413_v53, %v6420_v48  ;;  %v6423_v30 = vcombine.low %v6227_v49, %v6231_v61  ;;  %v6637_v7 = vcombine.high %v6635_v43, %v6635_v43 }
 0x22c   : > { %v6638_v54 = vcombine.high %v6484_v57, %v6484_v57  ;;  %v6645_v27 = vrot.slane %v6484_v57, %v7082_v20  ;;  %v6819_v13 = vsel %vm930_vm0, %v6636_v19, 0.0  ;;  %v6235_v34 = vrot.slane %v6047_v0, %v7074_v14 }
 0x22d   : > { %v6808_v29 = vadd.f32 %v6807_v23, %v6806_v35  ;;  %v6239_v2 = vrot.slane %v6047_v0, %v7076_v15  ;;  %v6243_v60 = vrot.slane %v6047_v0, %v7078_v16  ;;  %v6821_v18 = vsel %vm930_vm0, %v6635_v43, 0.0 }
 0x22e   : > { %v6247_v59 = vrot.slane %v6047_v0, %v7080_v17  ;;  %v6430_v36 = vrot.slane %v6422_v12, %v7082_v20  ;;  %v6437_v40 = vrot.slane %v6423_v30, %v7082_v20  ;;  %v6485_v11 = vmul.f32 %v6421_v6, %v6038_v1 }
 0x22f   : > { %v6810_v3 = vadd.f32 %v6809_v38, %v6808_v29  ;;  %v6652_v24 = vrot.slane %v6638_v54, %v7082_v20  ;;  %v6653_v28 = vcombine.high %v6645_v27, %v6645_v27  ;;  %v6823_v14 = vsel %vm930_vm0, %v6637_v7, 0.0 }
 0x230   : > { %v6825_v15 = vsel %vm930_vm0, %v6645_v27, 0.0  ;;  %v6438_v16 = vcombine.low %v6430_v36, %v6437_v40  ;;  %v6439_v21 = vcombine.low %v6235_v34, %v6239_v2  ;;  %v6440_v33 = vcombine.low %v6243_v60, %v6247_v59  ;;  %v6041_v27 = vld [vmem:[%s7094_s20 + $0x30e] sm:$0x3] }
 0x231   : > { %v6812_v26 = vadd.f32 %v6811_v63, %v6810_v3  ;;  %v6654_v17 = vcombine.high %v6652_v24, %v6652_v24  ;;  %v6655_v31 = vcombine.high %v6485_v11, %v6485_v11  ;;  %v6662_v55 = vrot.slane %v6485_v11, %v7082_v20 }
 0x232   : > { %v6827_v56 = vsel %vm930_vm0, %v6653_v28, 0.0  ;;  %v6829_v46 = vsel %vm930_vm0, %v6652_v24, 0.0  ;;  %v6447_v23 = vrot.slane %v6439_v21, %v7082_v20  ;;  %v6454_v35 = vrot.slane %v6440_v33, %v7082_v20  ;;  %v1029_v33 = vpop.xlane.xlu0 %1028 }
 0x233   : > { %v6814_v44 = vadd.f32 %v6813_v37, %v6812_v26  ;;  %v6486_v0 = vmul.f32 %v6438_v16, %v6039_v32  ;;  %v6669_v45 = vrot.slane %v6655_v31, %v7082_v20  ;;  %v6670_v58 = vcombine.high %v6662_v55, %v6662_v55 }
 0x234   : > { %v6831_v42 = vsel %vm930_vm0, %v6654_v17, 0.0  ;;  %v6833_v52 = vsel %vm930_vm0, %v6662_v55, 0.0  ;;  %v6455_v22 = vcombine.low %v6447_v23, %v6454_v35  ;;  %v2695_v17 = vpop.xlane.xlu1 %2694 }
 0x235   : > { %v6816_v9 = vadd.f32 %v6815_v4, %v6814_v44  ;;  %v6671_v63 = vcombine.high %v6669_v45, %v6669_v45  ;;  %v6672_v62 = vcombine.high %v6486_v0, %v6486_v0  ;;  %v6679_v3 = vrot.slane %v6486_v0, %v7082_v20  ;;  %v6964_v4 = vld [vmem:[%s7059_s16 + $0x187] ss:$0 sm:$0xff] }
 0x236   : > { %v6835_v47 = vsel %vm930_vm0, %v6670_v58, 0.0  ;;  %v6837_v37 = vsel %vm930_vm0, %v6669_v45, 0.0  ;;  %v6487_v53 = vmul.f32 %v6455_v22, %v6040_v50  ;;  %v6462_v7 = vrot.slane %v6964_v4, %v7082_v20 }
 0x237   : > { %v6818_v51 = vadd.f32 %v6817_v5, %v6816_v9  ;;  %v6686_v48 = vrot.slane %v6672_v62, %v7082_v20  ;;  %v6687_v26 = vcombine.high %v6679_v3, %v6679_v3  ;;  %v6839_v57 = vsel %vm930_vm0, %v6671_v63, 0.0 }
 0x238   : > { %v6841_v19 = vsel %vm930_vm0, %v6679_v3, 0.0  ;;  %v6689_v6 = vcombine.high %v6487_v53, %v6487_v53  ;;  %v6696_v12 = vrot.slane %v6487_v53, %v7082_v20  ;;  %v6488_v60 = vmul.f32 %v6462_v7, %v6041_v27 }
 0x239   : > { %v6820_v41 = vadd.f32 %v6819_v13, %v6818_v51  ;;  %v6688_v5 = vcombine.high %v6686_v48, %v6686_v48  ;;  %v6843_v30 = vsel %vm930_vm0, %v6687_v26, 0.0  ;;  %v6845_v54 = vsel %vm930_vm0, %v6686_v48, 0.0 }
 0x23a   : > { %v6703_v1 = vrot.slane %v6689_v6, %v7082_v20  ;;  %v6704_v51 = vcombine.high %v6696_v12, %v6696_v12  ;;  %v6712_v11 = vrot.slane %v6488_v60, %v7082_v20 }
 0x23b   : > { %v6822_v25 = vadd.f32 %v6821_v18, %v6820_v41  ;;  %v6847_v34 = vsel %vm930_vm0, %v6688_v5, 0.0  ;;  %v6849_v18 = vsel %vm930_vm0, %v6696_v12, 0.0 }
 0x23c   : > { %v6705_v36 = vcombine.high %v6703_v1, %v6703_v1  ;;  %v6851_v40 = vsel %vm930_vm0, %v6704_v51, 0.0  ;;  %v6853_v24 = vsel %vm930_vm0, %v6703_v1, 0.0 }
 0x23d   : > { %v6824_v8 = vadd.f32 %v6823_v14, %v6822_v25 }
 0x23e   : > { %v6855_v14 = vsel %vm930_vm0, %v6705_v36, 0.0 }
 0x23f   : > { %v6826_v10 = vadd.f32 %v6825_v15, %v6824_v8  ;;  %v6857_v15 = vsel %vm930_vm0, %v6712_v11, 0.0  ;;  %v1862_v8 = vpop.xlane.xlu0 %1861 }
 0x240   : > { %v1863_v31 = vadd.f32 %v1862_v8, %v1029_v33 }
 0x241   : > { %v6828_v38 = vadd.f32 %v6827_v56, %v6826_v10  ;;  %v3528_v56 = vpop.xlane.xlu1 %3527 }
 0x242   : > { %v2696_v55 = vadd.f32 %v2695_v17, %v1863_v31 }
 0x243   : > { %v6830_v29 = vadd.f32 %v6829_v46, %v6828_v38  ;;  %v4361_v32 = vpop.xlane.xlu0 %4360 }
 0x244   : > { %v3529_v20 = vadd.f32 %v3528_v56, %v2696_v55 }
 0x245   : > { %v6832_v39 = vadd.f32 %v6831_v42, %v6830_v29 }
 0x246   : > { %v4362_v10 = vadd.f32 %v4361_v32, %v3529_v20 }
 0x247   : > { %v6834_v49 = vadd.f32 %v6833_v52, %v6832_v39 }
 0x249   : > { %v6836_v61 = vadd.f32 %v6835_v47, %v6834_v49 }
 0x24b   : > { %v6838_v43 = vadd.f32 %v6837_v37, %v6836_v61 }
 0x24d   : > { %v6840_v44 = vadd.f32 %v6839_v57, %v6838_v43 }
 0x24f   : > { %v6842_v9 = vadd.f32 %v6841_v19, %v6840_v44 }
 0x251   : > { %v6844_v13 = vadd.f32 %v6843_v30, %v6842_v9 }
 0x253   : > { %v6846_v2 = vadd.f32 %v6845_v54, %v6844_v13 }
 0x255   : > { %v6848_v59 = vadd.f32 %v6847_v34, %v6846_v2 }
 0x257   : > { %v6850_v41 = vadd.f32 %v6849_v18, %v6848_v59 }
 0x259   : > { %v6852_v28 = vadd.f32 %v6851_v40, %v6850_v41 }
 0x25b   : > { %v6854_v25 = vadd.f32 %v6853_v24, %v6852_v28 }
 0x25d   : > { %v6856_v16 = vadd.f32 %v6855_v14, %v6854_v25 }
 0x25f   : > { %v6858_v21 = vadd.f32 %v6857_v15, %v6856_v16 }
 0x261   : > { %6859 = vadd.xlane.f32.xlu1 %v6858_v21 }
 0x264   : > { %v5194_v46 = vpop.xlane.xlu1 %5193 }
 0x265   : > { %v5195_v23 = vadd.f32 %v5194_v46, %v4362_v10 }
 0x2a9   : > { %v6027_v35 = vpop.xlane.xlu0 %6026 }
 0x2aa   : > { %v6028_v38 = vadd.f32 %v6027_v35, %v5195_v23 }
 0x2ee   : > { %v6860_v0 = vpop.xlane.xlu1 %6859 }
 0x2ef   : > { %v6861_v45 = vadd.f32 %v6860_v0, %v6028_v38 }
 0x2f1   : > { %6863 = vst.msk [vmem:[%s196_s24] sm:$0x3] %vm6862_vm1, %v6861_v45 }
 0x2f2 PF: > { %s12_s11 = sadd.s32 1, %s7014_s11   ;;  %s9219_s9 = smov %s7010_s10 }
 0x2f3   : > { %p9_p6 = scmp.ge.s32.totalorder %s12_s11, 4   ;;  %s9220_s10 = smov %s9222_s12 }
 0x2f5   :  { %11 = sbr.rel (!%p9_p6) target bundleno = 2 (0x2), region = 61 }

</bundles_post_ra>
